<compile_context>
chip_gen: v5e
topology: v5e:2x2
jax: 0.10.0
libtpu: 0.0.40
codegen_flags: <defaults>
</compile_context>

<pallas_src>
import functools

import jax
import jax.numpy as jnp
from jax import lax
from jax.experimental import pallas as pl
from jax.experimental.pallas import tpu as pltpu

# ---- config (synthetic small-shape stand-in for efficientnet-b0) ----
MODE = "classification"
N_OUT = 6                      # mode == 'classification' -> 6 outputs
N_OUT_PAD = 128                # lane-dense head output; sliced to N_OUT in wrapper
NC = 128                       # stand-in for enet.classifier.fc.in_features (1280 in b0)
STEM_CH = 32                   # real b0 stem width
HEAD_HIDDEN = 512              # nn.Linear(2*nc, 512) / GroupNorm(32, 512)
N_GROUPS = 32
GROUP_SIZE = HEAD_HIDDEN // N_GROUPS
GN_EPS = 1e-5


# ---------------------------------------------------------------------------
# Encoder kernel: fused (3x3 s2 conv + SiLU) -> (1x1 conv + SiLU) -> global
# per-image max/sum pooling.  The feature map stays in VMEM only.
# ---------------------------------------------------------------------------
def _encoder_pool_kernel(Ho, Wo, x_ref, wtap_ref, b1_ref, w2_ref, b2_ref,
                         mx_ref, sm_ref):
    """x_ref: (1, Ho+1, Wo+1, 4*C) space-to-depth phases of one padded image.

    The 3x3/stride-2 conv over the padded image is exactly a 2x2/stride-1 conv
    over the phase-stacked tensor (7 of 16 weight blocks are zero), so the
    patch gather reduces to 4 contiguous slices of the in-VMEM block.
    """
    x = x_ref[0]                                   # (Ho+1, Wo+1, 4C) bf16, no f32 trip
    acc = None
    for t, (oi, oj) in enumerate(((0, 0), (0, 1), (1, 0), (1, 1))):
        tap = x[oi:oi + Ho, oj:oj + Wo, :]         # contiguous static slice
        tap2d = tap.reshape(Ho * Wo, tap.shape[-1])
        part = jnp.dot(tap2d, wtap_ref[t],          # bf16 x bf16 -> f32 acc
                       preferred_element_type=jnp.float32)
        acc = part if acc is None else acc + part
    h = acc + b1_ref[...]                          # (Ho*Wo, STEM_CH) f32, VMEM only
    h = h * (1.0 / (1.0 + jnp.exp(-h)))            # SiLU (f32, EUP exp)
    h = jnp.dot(h.astype(jnp.bfloat16), w2_ref[...],
                preferred_element_type=jnp.float32) + b2_ref[...]
    h = h * (1.0 / (1.0 + jnp.exp(-h)))            # SiLU (f32)
    # Per-image global pooled stats are the only thing written back to HBM
    # (lane-dense 128 columns, f32 for exact accumulation in the head).
    mx_ref[0] = jnp.max(h, axis=0, keepdims=True)  # (1, NC)
    sm_ref[0] = jnp.sum(h, axis=0, keepdims=True)  # (1, NC)


def space_to_depth_pad(x_nchw):
    """NCHW -> padded NHWC -> 4 stride-2 phases stacked on channels (1x relayout,
    no im2col expansion in HBM)."""
    x = jnp.transpose(x_nchw, (0, 2, 3, 1))
    xp = jnp.pad(x, ((0, 0), (1, 1), (1, 1), (0, 0)))
    ph = [xp[:, pr::2, pc::2, :] for pr in (0, 1) for pc in (0, 1)]
    return jnp.concatenate(ph, axis=-1)            # (N, H/2+1, W/2+1, 4C)


def encoder_pool_forward(x_nchw, params):
    # TODO(synk): pretrained EfficientNet-B0 MBConv stack replaced by this
    # structural stand-in (stem 3x3/s2 + SiLU, 1x1 conv + SiLU -> NC channels).
    N, C, H, W = x_nchw.shape
    assert H % 2 == 0 and W % 2 == 0
    Ho, Wo = H // 2, W // 2
    x_s2d = space_to_depth_pad(x_nchw).astype(jnp.bfloat16)   # halve input DMA bytes
    Hs, Ws = x_s2d.shape[1], x_s2d.shape[2]
    kern = functools.partial(_encoder_pool_kernel, Ho, Wo)
    # Per-image blocks (Ho*Wo = 256 rows here). For real-b0 resolutions, tile
    # larger row blocks / add a K grid with a VMEM accumulator and set
    # pltpu.CompilerParams(vmem_limit_bytes=...) (v7x has 64 MiB VMEM).
    mx, sm = pl.pallas_call(
        kern,
        out_shape=(jax.ShapeDtypeStruct((N, 1, NC), jnp.float32),
                   jax.ShapeDtypeStruct((N, 1, NC), jnp.float32)),
        grid=(N,),
        in_specs=[
            pl.BlockSpec((1, Hs, Ws, 4 * C), lambda i: (i, 0, 0, 0)),
            pl.BlockSpec((4, 4 * C, STEM_CH), lambda i: (0, 0, 0)),
            pl.BlockSpec((1, STEM_CH), lambda i: (0, 0)),
            pl.BlockSpec((STEM_CH, NC), lambda i: (0, 0)),
            pl.BlockSpec((1, NC), lambda i: (0, 0)),
        ],
        out_specs=[pl.BlockSpec((1, 1, NC), lambda i: (i, 0, 0)),
                   pl.BlockSpec((1, 1, NC), lambda i: (i, 0, 0))],
        compiler_params=pltpu.CompilerParams(
            dimension_semantics=("parallel",)),     # v7x: shard images over 2 TCs
    )(x_s2d, params["stem_w_taps"], params["stem_b"],
      params["feat_w"], params["feat_b"])
    return mx, sm, Ho * Wo


# ---------------------------------------------------------------------------
# Head kernel: finish AdaptiveConcatPool2d over the n slices + Flatten + Linear
# + Mish + GroupNorm(32, 512) + Dropout(eval) + Linear, all in one VMEM pass.
# ---------------------------------------------------------------------------
def _head_kernel(S_total, mx_ref, sm_ref, w1m_ref, w1a_ref, b1_ref,
                 g_ref, bt_ref, gmat_ref, gmat_t_ref, w2_ref, b2_ref, o_ref):
    # Pooling over the permuted (c, h*n, w) map == max / mean over all slices'
    # spatial positions, i.e. max-of-maxes and sum-of-sums / (n*Ho*Wo).
    mx = jnp.max(mx_ref[...], axis=1).astype(jnp.bfloat16)            # (B, NC)
    av = (jnp.sum(sm_ref[...], axis=1) * (1.0 / S_total)).astype(jnp.bfloat16)
    # AdaptiveConcatPool2d = [max | avg]; avoid a lane concat by splitting w1.
    h = (jnp.dot(mx, w1m_ref[...], preferred_element_type=jnp.float32)
         + jnp.dot(av, w1a_ref[...], preferred_element_type=jnp.float32)
         + b1_ref[...])                                                # (B, 512) f32
    # Mish: x * tanh(softplus(x)), numerically stable, f32 on the EUP.
    sp = jnp.maximum(h, 0.0) + jnp.log1p(jnp.exp(-jnp.abs(h)))
    h = h * jnp.tanh(sp)
    # GroupNorm(32, 512): per-(sample, group) stats via one-hot matmuls (f32);
    # one reduce + one broadcast matmul per statistic (no layout-hostile reshape).
    G, Gt = gmat_ref[...], gmat_t_ref[...]
    mean_g = jnp.dot(h, G, preferred_element_type=jnp.float32) * (1.0 / GROUP_SIZE)
    ex2_g = jnp.dot(h * h, G, preferred_element_type=jnp.float32) * (1.0 / GROUP_SIZE)
    var_g = jnp.maximum(ex2_g - mean_g * mean_g, 0.0)    # clamp f32 cancellation
    inv_g = lax.rsqrt(var_g + GN_EPS)                    # (B, 32)
    scale = jnp.dot(inv_g, Gt, preferred_element_type=jnp.float32)
    shift = jnp.dot(-mean_g * inv_g, Gt, preferred_element_type=jnp.float32)
    h = (h * scale + shift) * g_ref[...] + bt_ref[...]
    # Dropout(p) is identity in eval mode.
    o_ref[...] = jnp.dot(h.astype(jnp.bfloat16), w2_ref[...],
                         preferred_element_type=jnp.float32) + b2_ref[...]


def head_forward(mx, sm, params, s_total):
    """mx, sm: (B, n, NC) f32 per-slice pooled stats (tiny); single-shot call,
    every operand lives whole in VMEM."""
    B = mx.shape[0]
    kern = functools.partial(_head_kernel, float(s_total))
    return pl.pallas_call(
        kern,
        out_shape=jax.ShapeDtypeStruct((B, N_OUT_PAD), jnp.float32),
    )(mx, sm, params["w1_max"], params["w1_avg"], params["b1"],
      params["gamma"], params["beta"], params["gmat"], params["gmat_t"],
      params["w2"], params["b2"])


# ---------------------------------------------------------------------------
# Full forward (mirrors effnet.forward, classification mode)
# ---------------------------------------------------------------------------
def effnet_forward(params, x):
    B, n, C, H, W = x.shape
    xf = x.reshape(B * n, C, H, W)                           # view(-1, C, H, W)
    # Encoder + per-image global max/sum pooling fused in one kernel: the full
    # feature map never round-trips HBM.
    mx, sm, spatial = encoder_pool_forward(xf, params)       # each (B*n, 1, NC)
    # Reference: view(-1, n, c, h, w).permute(0,2,1,3,4).view(-1, c, h*n, w)
    # followed by global max/avg pooling -> order-independent, so combining the
    # per-slice stats over n is exact.
    mx = mx.reshape(B, n, NC)
    sm = sm.reshape(B, n, NC)
    out_pad = head_forward(mx, sm, params, s_total=n * spatial)   # (B, 128) f32
    # TODO(synk): only classification mode; hybrid would split (x[:, :1], x[:, 1:]).
    return out_pad[:, :N_OUT]


# ---------------------------------------------------------------------------
# Parameter construction
# ---------------------------------------------------------------------------
def _pack_stem_weight(w3x3):
    """(3,3,C,OC) 3x3/s2 weights -> (4, 4C, OC) 2x2-offset weights over the
    phase-stacked input (7 of 16 (offset, phase) blocks are zero)."""
    _, _, C, OC = w3x3.shape
    W = jnp.zeros((2, 2, 4, C, OC), w3x3.dtype)
    for di in range(3):
        for dj in range(3):
            oi, oj = di // 2, dj // 2
            p = 2 * (di % 2) + (dj % 2)
            W = W.at[oi, oj, p].set(w3x3[di, dj])
    return W.reshape(4, 4 * C, OC)


def init_params(key, in_ch):
    ks = jax.random.split(key, 8)

    def w(k, shape, scale=0.05):
        return (scale * jax.random.normal(k, shape)).astype(jnp.float32)

    group_ids = jnp.arange(HEAD_HIDDEN) // GROUP_SIZE
    gmat = (group_ids[:, None] == jnp.arange(N_GROUPS)[None, :]).astype(jnp.float32)

    w2 = jnp.zeros((HEAD_HIDDEN, N_OUT_PAD), jnp.float32)
    w2 = w2.at[:, :N_OUT].set(w(ks[5], (HEAD_HIDDEN, N_OUT)))
    b2 = jnp.zeros((1, N_OUT_PAD), jnp.float32)
    b2 = b2.at[0, :N_OUT].set(w(ks[6], (N_OUT,), 0.01))

    return {
        # encoder (stand-in): bf16 weights for the MXU, f32 biases
        "stem_w_taps": _pack_stem_weight(w(ks[0], (3, 3, in_ch, STEM_CH))
                                         ).astype(jnp.bfloat16),
        "stem_b": jnp.zeros((1, STEM_CH), jnp.float32),
        "feat_w": w(ks[1], (STEM_CH, NC)).astype(jnp.bfloat16),
        "feat_b": jnp.zeros((1, NC), jnp.float32),
        # head: first Linear(2*NC, 512) split into max / avg halves (no concat)
        "w1_max": w(ks[2], (NC, HEAD_HIDDEN)).astype(jnp.bfloat16),
        "w1_avg": w(ks[3], (NC, HEAD_HIDDEN)).astype(jnp.bfloat16),
        "b1": w(ks[4], (1, HEAD_HIDDEN), 0.01),
        "gamma": jnp.ones((1, HEAD_HIDDEN), jnp.float32),    # GroupNorm affine init
        "beta": jnp.zeros((1, HEAD_HIDDEN), jnp.float32),
        "gmat": gmat,                                        # (512, 32) one-hot
        "gmat_t": gmat.T,                                    # (32, 512)
        "w2": w2.astype(jnp.bfloat16),                       # padded to 128 lanes
        "b2": b2,
    }


if __name__ == "__main__":
    key = jax.random.PRNGKey(0)
    pkey, xkey = jax.random.split(key)
    B, n, C, H, W = 2, 3, 3, 32, 32          # (batch, slices, channels, H, W)
    x = jax.random.normal(xkey, (B, n, C, H, W), dtype=jnp.float32)
    params = init_params(pkey, C)
    out = jax.jit(effnet_forward)(params, x)
    out = jax.block_until_ready(out)
    assert out.shape == (B, N_OUT) and out.dtype == jnp.float32
    assert bool(jnp.all(jnp.isfinite(out)))
    print("KERNEL_OK")
</pallas_src>

<mosaic_0001>
module attributes {stable_mosaic.version = 11 : i64} {
  func.func @_encoder_pool_kernel(%arg0: i32, %arg1: memref<1x17x17x12xbf16, #tpu.memory_space<vmem>>, %arg2: memref<4x12x32xbf16, #tpu.memory_space<vmem>>, %arg3: memref<1x32xf32, #tpu.memory_space<vmem>>, %arg4: memref<32x128xbf16, #tpu.memory_space<vmem>>, %arg5: memref<1x128xf32, #tpu.memory_space<vmem>>, %arg6: memref<1x1x128xf32, #tpu.memory_space<vmem>>, %arg7: memref<1x1x128xf32, #tpu.memory_space<vmem>>) attributes {dimension_semantics = [#tpu.dimension_semantics<parallel>], iteration_bounds = array<i64: 6>, scalar_prefetch = 0 : i64, scratch_operands = 0 : i64, tpu.core_type = #tpu.core_type<tc>, window_params = [{transform_indices = @transform_0, window_bounds = array<i64: 1, 17, 17, 12>}, {pipeline_mode = #tpu.pipeline_mode<synchronous>, transform_indices = @transform_1, window_bounds = array<i64: 4, 12, 32>}, {pipeline_mode = #tpu.pipeline_mode<synchronous>, transform_indices = @transform_2, window_bounds = array<i64: 1, 32>}, {pipeline_mode = #tpu.pipeline_mode<synchronous>, transform_indices = @transform_3, window_bounds = array<i64: 32, 128>}, {pipeline_mode = #tpu.pipeline_mode<synchronous>, transform_indices = @transform_4, window_bounds = array<i64: 1, 128>}, {transform_indices = @transform_5, window_bounds = array<i64: 1, 1, 128>}, {transform_indices = @transform_6, window_bounds = array<i64: 1, 1, 128>}]} {
    %c0 = arith.constant 0 : index
    %c0_0 = arith.constant 0 : index
    %c0_1 = arith.constant 0 : index
    %c0_2 = arith.constant 0 : index
    %0 = vector.load %arg1[%c0, %c0_0, %c0_1, %c0_2] : memref<1x17x17x12xbf16, #tpu.memory_space<vmem>>, vector<1x17x17x12xbf16>
    %1 = vector.shape_cast %0 : vector<1x17x17x12xbf16> to vector<17x17x12xbf16>
    %2 = vector.extract_strided_slice %1 {offsets = [0, 0, 0], sizes = [16, 16, 12], strides = [1, 1, 1]} : vector<17x17x12xbf16> to vector<16x16x12xbf16>
    %3 = vector.shape_cast %2 : vector<16x16x12xbf16> to vector<256x12xbf16>
    %c0_3 = arith.constant 0 : index
    %c0_4 = arith.constant 0 : index
    %c0_5 = arith.constant 0 : index
    %4 = vector.load %arg2[%c0_3, %c0_4, %c0_5] : memref<4x12x32xbf16, #tpu.memory_space<vmem>>, vector<1x12x32xbf16>
    %5 = vector.shape_cast %4 : vector<1x12x32xbf16> to vector<12x32xbf16>
    %cst = arith.constant dense<0.000000e+00> : vector<256x32xf32>
    %6 = tpu.matmul %3, %5, %cst {dimension_numbers = #tpu.dot_dimension_numbers<[1], [0], [0], [1], [0, 0, 1, 1], [], []>} : vector<256x12xbf16>, vector<12x32xbf16>, vector<256x32xf32> -> vector<256x32xf32>
    %7 = vector.extract_strided_slice %1 {offsets = [0, 1, 0], sizes = [16, 16, 12], strides = [1, 1, 1]} : vector<17x17x12xbf16> to vector<16x16x12xbf16>
    %8 = vector.shape_cast %7 : vector<16x16x12xbf16> to vector<256x12xbf16>
    %c1 = arith.constant 1 : index
    %c0_6 = arith.constant 0 : index
    %c0_7 = arith.constant 0 : index
    %9 = vector.load %arg2[%c1, %c0_6, %c0_7] : memref<4x12x32xbf16, #tpu.memory_space<vmem>>, vector<1x12x32xbf16>
    %10 = vector.shape_cast %9 : vector<1x12x32xbf16> to vector<12x32xbf16>
    %cst_8 = arith.constant dense<0.000000e+00> : vector<256x32xf32>
    %11 = tpu.matmul %8, %10, %cst_8 {dimension_numbers = #tpu.dot_dimension_numbers<[1], [0], [0], [1], [0, 0, 1, 1], [], []>} : vector<256x12xbf16>, vector<12x32xbf16>, vector<256x32xf32> -> vector<256x32xf32>
    %12 = arith.addf %6, %11 : vector<256x32xf32>
    %13 = vector.extract_strided_slice %1 {offsets = [1, 0, 0], sizes = [16, 16, 12], strides = [1, 1, 1]} : vector<17x17x12xbf16> to vector<16x16x12xbf16>
    %14 = vector.shape_cast %13 : vector<16x16x12xbf16> to vector<256x12xbf16>
    %c2 = arith.constant 2 : index
    %c0_9 = arith.constant 0 : index
    %c0_10 = arith.constant 0 : index
    %15 = vector.load %arg2[%c2, %c0_9, %c0_10] : memref<4x12x32xbf16, #tpu.memory_space<vmem>>, vector<1x12x32xbf16>
    %16 = vector.shape_cast %15 : vector<1x12x32xbf16> to vector<12x32xbf16>
    %cst_11 = arith.constant dense<0.000000e+00> : vector<256x32xf32>
    %17 = tpu.matmul %14, %16, %cst_11 {dimension_numbers = #tpu.dot_dimension_numbers<[1], [0], [0], [1], [0, 0, 1, 1], [], []>} : vector<256x12xbf16>, vector<12x32xbf16>, vector<256x32xf32> -> vector<256x32xf32>
    %18 = arith.addf %12, %17 : vector<256x32xf32>
    %19 = vector.extract_strided_slice %1 {offsets = [1, 1, 0], sizes = [16, 16, 12], strides = [1, 1, 1]} : vector<17x17x12xbf16> to vector<16x16x12xbf16>
    %20 = vector.shape_cast %19 : vector<16x16x12xbf16> to vector<256x12xbf16>
    %c3 = arith.constant 3 : index
    %c0_12 = arith.constant 0 : index
    %c0_13 = arith.constant 0 : index
    %21 = vector.load %arg2[%c3, %c0_12, %c0_13] : memref<4x12x32xbf16, #tpu.memory_space<vmem>>, vector<1x12x32xbf16>
    %22 = vector.shape_cast %21 : vector<1x12x32xbf16> to vector<12x32xbf16>
    %cst_14 = arith.constant dense<0.000000e+00> : vector<256x32xf32>
    %23 = tpu.matmul %20, %22, %cst_14 {dimension_numbers = #tpu.dot_dimension_numbers<[1], [0], [0], [1], [0, 0, 1, 1], [], []>} : vector<256x12xbf16>, vector<12x32xbf16>, vector<256x32xf32> -> vector<256x32xf32>
    %24 = arith.addf %18, %23 : vector<256x32xf32>
    %c0_15 = arith.constant 0 : index
    %c0_16 = arith.constant 0 : index
    %25 = vector.load %arg3[%c0_15, %c0_16] : memref<1x32xf32, #tpu.memory_space<vmem>>, vector<1x32xf32>
    %26 = vector.broadcast %25 : vector<1x32xf32> to vector<256x32xf32>
    %27 = arith.addf %24, %26 : vector<256x32xf32>
    %cst_17 = arith.constant 0.000000e+00 : f32
    %28 = vector.broadcast %cst_17 : f32 to vector<256x32xf32>
    %29 = arith.subf %28, %27 : vector<256x32xf32>
    %30 = math.exp %29 : vector<256x32xf32>
    %cst_18 = arith.constant 1.000000e+00 : f32
    %31 = vector.broadcast %cst_18 : f32 to vector<256x32xf32>
    %32 = arith.addf %31, %30 : vector<256x32xf32>
    %cst_19 = arith.constant 1.000000e+00 : f32
    %33 = vector.broadcast %cst_19 : f32 to vector<256x32xf32>
    %34 = arith.divf %33, %32 : vector<256x32xf32>
    %35 = arith.mulf %27, %34 : vector<256x32xf32>
    %36 = arith.truncf %35 : vector<256x32xf32> to vector<256x32xbf16>
    %c0_20 = arith.constant 0 : index
    %c0_21 = arith.constant 0 : index
    %37 = vector.load %arg4[%c0_20, %c0_21] : memref<32x128xbf16, #tpu.memory_space<vmem>>, vector<32x128xbf16>
    %cst_22 = arith.constant dense<0.000000e+00> : vector<256x128xf32>
    %38 = tpu.matmul %36, %37, %cst_22 {dimension_numbers = #tpu.dot_dimension_numbers<[1], [0], [0], [1], [0, 0, 1, 1], [], []>} : vector<256x32xbf16>, vector<32x128xbf16>, vector<256x128xf32> -> vector<256x128xf32>
    %c0_23 = arith.constant 0 : index
    %c0_24 = arith.constant 0 : index
    %39 = vector.load %arg5[%c0_23, %c0_24] : memref<1x128xf32, #tpu.memory_space<vmem>>, vector<1x128xf32>
    %40 = vector.broadcast %39 : vector<1x128xf32> to vector<256x128xf32>
    %41 = arith.addf %38, %40 : vector<256x128xf32>
    %cst_25 = arith.constant 0.000000e+00 : f32
    %42 = vector.broadcast %cst_25 : f32 to vector<256x128xf32>
    %43 = arith.subf %42, %41 : vector<256x128xf32>
    %44 = math.exp %43 : vector<256x128xf32>
    %cst_26 = arith.constant 1.000000e+00 : f32
    %45 = vector.broadcast %cst_26 : f32 to vector<256x128xf32>
    %46 = arith.addf %45, %44 : vector<256x128xf32>
    %cst_27 = arith.constant 1.000000e+00 : f32
    %47 = vector.broadcast %cst_27 : f32 to vector<256x128xf32>
    %48 = arith.divf %47, %46 : vector<256x128xf32>
    %49 = arith.mulf %41, %48 : vector<256x128xf32>
    %cst_28 = arith.constant dense<0xFF800000> : vector<128xf32>
    %50 = vector.multi_reduction <maximumf>, %49, %cst_28 [0] : vector<256x128xf32> to vector<128xf32>
    %51 = vector.shape_cast %50 : vector<128xf32> to vector<1x128xf32>
    %c0_29 = arith.constant 0 : index
    %c0_30 = arith.constant 0 : index
    %c0_31 = arith.constant 0 : index
    %52 = vector.load %arg6[%c0_29, %c0_30, %c0_31] : memref<1x1x128xf32, #tpu.memory_space<vmem>>, vector<1x1x128xf32>
    %53 = vector.shape_cast %52 : vector<1x1x128xf32> to vector<1x128xf32>
    %54 = vector.shape_cast %51 : vector<1x128xf32> to vector<1x1x128xf32>
    tpu.vector_store %arg6[%c0_29, %c0_30, %c0_31], %54 {strides = array<i32>} : memref<1x1x128xf32, #tpu.memory_space<vmem>>, vector<1x1x128xf32>,
    %cst_32 = arith.constant dense<0.000000e+00> : vector<128xf32>
    %55 = vector.multi_reduction <add>, %49, %cst_32 [0] : vector<256x128xf32> to vector<128xf32>
    %56 = vector.shape_cast %55 : vector<128xf32> to vector<1x128xf32>
    %c0_33 = arith.constant 0 : index
    %c0_34 = arith.constant 0 : index
    %c0_35 = arith.constant 0 : index
    %57 = vector.load %arg7[%c0_33, %c0_34, %c0_35] : memref<1x1x128xf32, #tpu.memory_space<vmem>>, vector<1x1x128xf32>
    %58 = vector.shape_cast %57 : vector<1x1x128xf32> to vector<1x128xf32>
    %59 = vector.shape_cast %56 : vector<1x128xf32> to vector<1x1x128xf32>
    tpu.vector_store %arg7[%c0_33, %c0_34, %c0_35], %59 {strides = array<i32>} : memref<1x1x128xf32, #tpu.memory_space<vmem>>, vector<1x1x128xf32>,
    return
  }
  func.func @transform_0(%arg0: i32) -> (i32, i32, i32, i32) {
    %c0_i32 = arith.constant 0 : i32
    %c0_i32_0 = arith.constant 0 : i32
    %c0_i32_1 = arith.constant 0 : i32
    %c0_i32_2 = arith.constant 0 : i32
    return %arg0, %c0_i32, %c0_i32_0, %c0_i32_1 : i32, i32, i32, i32
  }
  func.func @transform_1(%arg0: i32) -> (i32, i32, i32) {
    %c0_i32 = arith.constant 0 : i32
    %c0_i32_0 = arith.constant 0 : i32
    %c0_i32_1 = arith.constant 0 : i32
    %c0_i32_2 = arith.constant 0 : i32
    return %c0_i32, %c0_i32_0, %c0_i32_1 : i32, i32, i32
  }
  func.func @transform_2(%arg0: i32) -> (i32, i32) {
    %c0_i32 = arith.constant 0 : i32
    %c0_i32_0 = arith.constant 0 : i32
    %c0_i32_1 = arith.constant 0 : i32
    return %c0_i32, %c0_i32_0 : i32, i32
  }
  func.func @transform_3(%arg0: i32) -> (i32, i32) {
    %c0_i32 = arith.constant 0 : i32
    %c0_i32_0 = arith.constant 0 : i32
    %c0_i32_1 = arith.constant 0 : i32
    return %c0_i32, %c0_i32_0 : i32, i32
  }
  func.func @transform_4(%arg0: i32) -> (i32, i32) {
    %c0_i32 = arith.constant 0 : i32
    %c0_i32_0 = arith.constant 0 : i32
    %c0_i32_1 = arith.constant 0 : i32
    return %c0_i32, %c0_i32_0 : i32, i32
  }
  func.func @transform_5(%arg0: i32) -> (i32, i32, i32) {
    %c0_i32 = arith.constant 0 : i32
    %c0_i32_0 = arith.constant 0 : i32
    %c0_i32_1 = arith.constant 0 : i32
    return %arg0, %c0_i32, %c0_i32_0 : i32, i32, i32
  }
  func.func @transform_6(%arg0: i32) -> (i32, i32, i32) {
    %c0_i32 = arith.constant 0 : i32
    %c0_i32_0 = arith.constant 0 : i32
    %c0_i32_1 = arith.constant 0 : i32
    return %arg0, %c0_i32, %c0_i32_0 : i32, i32, i32
  }
}

module attributes {stable_mosaic.version = 11 : i64} {
  func.func @_head_kernel(%arg0: memref<2x3x128xf32, #tpu.memory_space<vmem>>, %arg1: memref<2x3x128xf32, #tpu.memory_space<vmem>>, %arg2: memref<128x512xbf16, #tpu.memory_space<vmem>>, %arg3: memref<128x512xbf16, #tpu.memory_space<vmem>>, %arg4: memref<1x512xf32, #tpu.memory_space<vmem>>, %arg5: memref<1x512xf32, #tpu.memory_space<vmem>>, %arg6: memref<1x512xf32, #tpu.memory_space<vmem>>, %arg7: memref<512x32xf32, #tpu.memory_space<vmem>>, %arg8: memref<32x512xf32, #tpu.memory_space<vmem>>, %arg9: memref<512x128xbf16, #tpu.memory_space<vmem>>, %arg10: memref<1x128xf32, #tpu.memory_space<vmem>>, %arg11: memref<2x128xf32, #tpu.memory_space<vmem>>) attributes {dimension_semantics = [], scalar_prefetch = 0 : i64, scratch_operands = 0 : i64, tpu.core_type = #tpu.core_type<tc>} {
    %c0 = arith.constant 0 : index
    %c0_0 = arith.constant 0 : index
    %c0_1 = arith.constant 0 : index
    %0 = vector.load %arg0[%c0, %c0_0, %c0_1] : memref<2x3x128xf32, #tpu.memory_space<vmem>>, vector<2x3x128xf32>
    %cst = arith.constant dense<0xFF800000> : vector<2x128xf32>
    %1 = vector.multi_reduction <maximumf>, %0, %cst [1] : vector<2x3x128xf32> to vector<2x128xf32>
    %2 = arith.truncf %1 : vector<2x128xf32> to vector<2x128xbf16>
    %c0_2 = arith.constant 0 : index
    %c0_3 = arith.constant 0 : index
    %c0_4 = arith.constant 0 : index
    %3 = vector.load %arg1[%c0_2, %c0_3, %c0_4] : memref<2x3x128xf32, #tpu.memory_space<vmem>>, vector<2x3x128xf32>
    %cst_5 = arith.constant dense<0.000000e+00> : vector<2x128xf32>
    %4 = vector.multi_reduction <add>, %3, %cst_5 [1] : vector<2x3x128xf32> to vector<2x128xf32>
    %cst_6 = arith.constant 0.00130208337 : f32
    %5 = vector.broadcast %cst_6 : f32 to vector<2x128xf32>
    %6 = arith.mulf %4, %5 : vector<2x128xf32>
    %7 = arith.truncf %6 : vector<2x128xf32> to vector<2x128xbf16>
    %c0_7 = arith.constant 0 : index
    %c0_8 = arith.constant 0 : index
    %8 = vector.load %arg2[%c0_7, %c0_8] : memref<128x512xbf16, #tpu.memory_space<vmem>>, vector<128x512xbf16>
    %cst_9 = arith.constant dense<0.000000e+00> : vector<2x512xf32>
    %9 = tpu.matmul %2, %8, %cst_9 {dimension_numbers = #tpu.dot_dimension_numbers<[1], [0], [0], [1], [0, 0, 1, 1], [], []>} : vector<2x128xbf16>, vector<128x512xbf16>, vector<2x512xf32> -> vector<2x512xf32>
    %c0_10 = arith.constant 0 : index
    %c0_11 = arith.constant 0 : index
    %10 = vector.load %arg3[%c0_10, %c0_11] : memref<128x512xbf16, #tpu.memory_space<vmem>>, vector<128x512xbf16>
    %cst_12 = arith.constant dense<0.000000e+00> : vector<2x512xf32>
    %11 = tpu.matmul %7, %10, %cst_12 {dimension_numbers = #tpu.dot_dimension_numbers<[1], [0], [0], [1], [0, 0, 1, 1], [], []>} : vector<2x128xbf16>, vector<128x512xbf16>, vector<2x512xf32> -> vector<2x512xf32>
    %12 = arith.addf %9, %11 : vector<2x512xf32>
    %c0_13 = arith.constant 0 : index
    %c0_14 = arith.constant 0 : index
    %13 = vector.load %arg4[%c0_13, %c0_14] : memref<1x512xf32, #tpu.memory_space<vmem>>, vector<1x512xf32>
    %14 = vector.broadcast %13 : vector<1x512xf32> to vector<2x512xf32>
    %15 = arith.addf %12, %14 : vector<2x512xf32>
    %cst_15 = arith.constant 0.000000e+00 : f32
    %16 = vector.broadcast %cst_15 : f32 to vector<2x512xf32>
    %17 = arith.maximumf %15, %16 : vector<2x512xf32>
    %18 = math.absf %15 : vector<2x512xf32>
    %cst_16 = arith.constant 0.000000e+00 : f32
    %19 = vector.broadcast %cst_16 : f32 to vector<2x512xf32>
    %20 = arith.subf %19, %18 : vector<2x512xf32>
    %21 = math.exp %20 : vector<2x512xf32>
    %22 = math.log1p %21 : vector<2x512xf32>
    %23 = arith.addf %17, %22 : vector<2x512xf32>
    %24 = math.tanh %23 : vector<2x512xf32>
    %25 = arith.mulf %15, %24 : vector<2x512xf32>
    %c0_17 = arith.constant 0 : index
    %c0_18 = arith.constant 0 : index
    %26 = vector.load %arg7[%c0_17, %c0_18] : memref<512x32xf32, #tpu.memory_space<vmem>>, vector<512x32xf32>
    %c0_19 = arith.constant 0 : index
    %c0_20 = arith.constant 0 : index
    %27 = vector.load %arg8[%c0_19, %c0_20] : memref<32x512xf32, #tpu.memory_space<vmem>>, vector<32x512xf32>
    %cst_21 = arith.constant dense<0.000000e+00> : vector<2x32xf32>
    %28 = tpu.matmul %25, %26, %cst_21 {dimension_numbers = #tpu.dot_dimension_numbers<[1], [0], [0], [1], [0, 0, 1, 1], [], []>} : vector<2x512xf32>, vector<512x32xf32>, vector<2x32xf32> -> vector<2x32xf32>
    %cst_22 = arith.constant 6.250000e-02 : f32
    %29 = vector.broadcast %cst_22 : f32 to vector<2x32xf32>
    %30 = arith.mulf %28, %29 : vector<2x32xf32>
    %31 = arith.mulf %25, %25 : vector<2x512xf32>
    %cst_23 = arith.constant dense<0.000000e+00> : vector<2x32xf32>
    %32 = tpu.matmul %31, %26, %cst_23 {dimension_numbers = #tpu.dot_dimension_numbers<[1], [0], [0], [1], [0, 0, 1, 1], [], []>} : vector<2x512xf32>, vector<512x32xf32>, vector<2x32xf32> -> vector<2x32xf32>
    %cst_24 = arith.constant 6.250000e-02 : f32
    %33 = vector.broadcast %cst_24 : f32 to vector<2x32xf32>
    %34 = arith.mulf %32, %33 : vector<2x32xf32>
    %35 = arith.mulf %30, %30 : vector<2x32xf32>
    %36 = arith.subf %34, %35 : vector<2x32xf32>
    %cst_25 = arith.constant 0.000000e+00 : f32
    %37 = vector.broadcast %cst_25 : f32 to vector<2x32xf32>
    %38 = arith.maximumf %36, %37 : vector<2x32xf32>
    %cst_26 = arith.constant 9.99999974E-6 : f32
    %39 = vector.broadcast %cst_26 : f32 to vector<2x32xf32>
    %40 = arith.addf %38, %39 : vector<2x32xf32>
    %41 = math.rsqrt %40 : vector<2x32xf32>
    %cst_27 = arith.constant dense<0.000000e+00> : vector<2x512xf32>
    %42 = tpu.matmul %41, %27, %cst_27 {dimension_numbers = #tpu.dot_dimension_numbers<[1], [0], [0], [1], [0, 0, 1, 1], [], []>} : vector<2x32xf32>, vector<32x512xf32>, vector<2x512xf32> -> vector<2x512xf32>
    %cst_28 = arith.constant 0.000000e+00 : f32
    %43 = vector.broadcast %cst_28 : f32 to vector<2x32xf32>
    %44 = arith.subf %43, %30 : vector<2x32xf32>
    %45 = arith.mulf %44, %41 : vector<2x32xf32>
    %cst_29 = arith.constant dense<0.000000e+00> : vector<2x512xf32>
    %46 = tpu.matmul %45, %27, %cst_29 {dimension_numbers = #tpu.dot_dimension_numbers<[1], [0], [0], [1], [0, 0, 1, 1], [], []>} : vector<2x32xf32>, vector<32x512xf32>, vector<2x512xf32> -> vector<2x512xf32>
    %47 = arith.mulf %25, %42 : vector<2x512xf32>
    %48 = arith.addf %47, %46 : vector<2x512xf32>
    %c0_30 = arith.constant 0 : index
    %c0_31 = arith.constant 0 : index
    %49 = vector.load %arg5[%c0_30, %c0_31] : memref<1x512xf32, #tpu.memory_space<vmem>>, vector<1x512xf32>
    %50 = vector.broadcast %49 : vector<1x512xf32> to vector<2x512xf32>
    %51 = arith.mulf %48, %50 : vector<2x512xf32>
    %c0_32 = arith.constant 0 : index
    %c0_33 = arith.constant 0 : index
    %52 = vector.load %arg6[%c0_32, %c0_33] : memref<1x512xf32, #tpu.memory_space<vmem>>, vector<1x512xf32>
    %53 = vector.broadcast %52 : vector<1x512xf32> to vector<2x512xf32>
    %54 = arith.addf %51, %53 : vector<2x512xf32>
    %55 = arith.truncf %54 : vector<2x512xf32> to vector<2x512xbf16>
    %c0_34 = arith.constant 0 : index
    %c0_35 = arith.constant 0 : index
    %56 = vector.load %arg9[%c0_34, %c0_35] : memref<512x128xbf16, #tpu.memory_space<vmem>>, vector<512x128xbf16>
    %cst_36 = arith.constant dense<0.000000e+00> : vector<2x128xf32>
    %57 = tpu.matmul %55, %56, %cst_36 {dimension_numbers = #tpu.dot_dimension_numbers<[1], [0], [0], [1], [0, 0, 1, 1], [], []>} : vector<2x512xbf16>, vector<512x128xbf16>, vector<2x128xf32> -> vector<2x128xf32>
    %c0_37 = arith.constant 0 : index
    %c0_38 = arith.constant 0 : index
    %58 = vector.load %arg10[%c0_37, %c0_38] : memref<1x128xf32, #tpu.memory_space<vmem>>, vector<1x128xf32>
    %59 = vector.broadcast %58 : vector<1x128xf32> to vector<2x128xf32>
    %60 = arith.addf %57, %59 : vector<2x128xf32>
    %c0_39 = arith.constant 0 : index
    %c0_40 = arith.constant 0 : index
    %61 = vector.load %arg11[%c0_39, %c0_40] : memref<2x128xf32, #tpu.memory_space<vmem>>, vector<2x128xf32>
    tpu.vector_store %arg11[%c0_39, %c0_40], %60 {strides = array<i32>} : memref<2x128xf32, #tpu.memory_space<vmem>>, vector<2x128xf32>,
    return
  }
}

</mosaic_0001>

<bundles_post_ra>
// kernel: effnet_forward.2
= control target key start
LH: loop header
LB: loop body
LE: loop exit
PB: predicated region body
PF: predicated region fallthrough
CT: control target
= control target key end

     0   :  { %s3586_s21 = smov 0   ;;  %s5416_s0 = inlined_call_operand.vmem [shape: bf16[6,17,17,12], index: 0, kind: input, shape index: {}]   ;;  %s5417_s1 = inlined_call_operand.vmem [shape: bf16[4,12,32], index: 1, kind: input, shape index: {}]   ;;  %s5418_s2 = inlined_call_operand.vmem [shape: f32[1,32], index: 2, kind: input, shape index: {}]   ;;  %s5419_s3 = inlined_call_operand.vmem [shape: bf16[32,128], index: 3, kind: input, shape index: {}]   ;;  %s5420_s4 = inlined_call_operand.vmem [shape: f32[1,128], index: 4, kind: input, shape index: {}]   ;;  %s5421_s5 = inlined_call_operand.vmem [shape: f32[6,1,128], index: 5, kind: output, shape index: {0}]   ;;  %s5422_s6 = inlined_call_operand.vmem [shape: f32[6,1,128], index: 6, kind: output, shape index: {1}]  }
   0x1 LB: > { %s3061_s22 = sadd.s32 4294967295, %s3549_s21   ;;  %p3065_p0 = scmp.ge.s32.totalorder %s3549_s21, 1  ;;  %s3549_s21 = sphi %s3586_s21, %s17_s21  }
   0x2   : > { %p215_p1 = scmp.lt.s32.totalorder %s3549_s21, 7 }
   0x4   : > { %p216_p2 = pnand %p3065_p0, %p215_p1 }
   0x5   : > { %p246_p3 = scmp.lt.s32.totalorder (!%p216_p2), %s3061_s22, 5 }
   0x6   : > { %219 = sbr.rel (%p216_p2) target bundleno = 738 (0x2e2), region = 40 }
   0xb   : > { %v3071_v0 = vld [vmem:[%s5417_s1 + $0x8] sm:$0xf]  ;;  %v3265_v1 = vld [vmem:[%s5417_s1 + $0x8] sm:$0x30]  ;;  %vm803_vm0 = vcmask 1045504   ;;  %s5546_s22 = smov (!%p246_p3, %s3061_s22), 5 }
   0xc   : > { %v3072_v2 = vor.u32 %v3265_v1, %v3071_v0  ;;  %v3181_v3 = vld [vmem:[%s5417_s1 + $0x10] sm:$0xf]  ;;  %v3266_v4 = vld [vmem:[%s5417_s1 + $0x10] sm:$0x30]  ;;  %v3203_v7 = vld [vmem:[%s5417_s1 + $0x18] sm:$0xf]  ;;  %s253_s13 = scalar_lea.vmem %s5421_s5, %s5546_s22  ;;  %s256_s16 = scalar_lea.vmem %s5422_s6, %s5546_s22 }
   0xd   : > { %v3182_v6 = vor.u32 %v3266_v4, %v3181_v3  ;;  %v3267_v8 = vld [vmem:[%s5417_s1 + $0x18] sm:$0x30]  ;;  %s3273_s11 = smul.u32 204, %s5546_s22  ;;  %vm311_vm1 = vsmask.f32 3328  ;;  %vm754_vm3 = vcmask 97280  }
   0xe   : > { %v805_v5 = vsel %vm803_vm0, %v3072_v2, 0  ;;  %vm312_vm2 = vsmask.f32 7440  ;;  %v3204_v9 = vor.u32 %v3267_v8, %v3203_v7  ;;  %v3155_v12 = vld [vmem:[%s5417_s1] sm:$0xf]  ;;  %vm2135_vm13 = vcmask 261120  }
   0xf   : > { %3270 = vmatpush.bf16.msra.mxu1 %v805_v5  ;;  %3271 = vmatpush.bf16.msra.mxu2 %v805_v5  ;;  %v1138_v10 = vsel %vm803_vm0, %v3182_v6, 0  ;;  %s3620_s14 = scalar_lea.vmem %s5416_s0, %s3273_s11  ;;  %v3264_v13 = vld [vmem:[%s5417_s1] sm:$0x30]  ;;  %vm3639_vm4 = vmor %vm311_vm1, %vm312_vm2 }
  0x10   : > { %3272 = vmatpush.bf16.msra.mxu3 %v805_v5  ;;  %814 = vmatpush.bf16.msra.mxu0 %v805_v5  ;;  %v1300_v11 = vsel %vm803_vm0, %v3204_v9, 0  ;;  %v270_v14 = vld [vmem:[%s3620_s14 + $0x30] sm:$0xf]  ;;  %v271_v15 = vld [vmem:[%s3620_s14 + $0x34] sm:$0xf]  ;;  %v3156_v26 = vor.u32 %v3264_v13, %v3155_v12 }
  0x11   : > { %v272_v16 = vld [vmem:[%s3620_s14 + $0x38] sm:$0x1]  ;;  %v411_v17 = vshrl.u32 %v270_v14, 16  ;;  %v414_v18 = vshll.u32 %v270_v14, 16  ;;  %v420_v19 = vshll.u32 %v271_v15, 16  ;;  %v424_v20 = vshrl.u32 %v271_v15, 16 }
  0x12   : > { %v282_v21 = vld [vmem:[%s3620_s14 + $0x60] sm:$0xf]  ;;  %v430_v22 = vshll.u32 %v272_v16, 16  ;;  %v283_v23 = vld [vmem:[%s3620_s14 + $0x64] sm:$0xf]  ;;  %v1030_v7 = vsel %vm803_vm0, %v3156_v26, 0 }
  0x13   : > { %1147 = vmatpush.bf16.msrb.mxu2 %v1138_v10  ;;  %v284_v24 = vld [vmem:[%s3620_s14 + $0x68] sm:$0x1]  ;;  %v507_v25 = vshrl.u32 %v282_v21, 16  ;;  %v413_v27 = vrot.slane %v411_v17, 4  ;;  %v416_v28 = vrot.slane %v414_v18, 5  ;;  %v422_v29 = vrot.slane %v420_v19, 5  ;;  %1039 = vmatpush.bf16.msrb.mxu1 %v1030_v7 }
  0x14   : > { %1309 = vmatpush.bf16.msrb.mxu3 %v1300_v11  ;;  %v426_v30 = vrot.slane %v424_v20, 4  ;;  %v294_v31 = vld [vmem:[%s3620_s14 + $0x90] sm:$0xf]  ;;  %v432_v32 = vrot.slane %v430_v22, 5  ;;  %v510_v34 = vshll.u32 %v282_v21, 16  ;;  %v516_v35 = vshll.u32 %v283_v23, 16 }
  0x15   : > { %v509_v33 = vrot.slane %v507_v25, 4  ;;  %v417_v36 = vor.u32 %v416_v28, %v413_v27  ;;  %v520_v38 = vshrl.u32 %v283_v23, 16  ;;  %v526_v39 = vshll.u32 %v284_v24, 16  ;;  %v295_v40 = vld [vmem:[%s3620_s14 + $0x94] sm:$0xf] }
  0x16   : > { %v427_v37 = vor.u32 %v426_v30, %v422_v29  ;;  %v512_v42 = vrot.slane %v510_v34, 5  ;;  %v518_v43 = vrot.slane %v516_v35, 5  ;;  %v603_v44 = vshrl.u32 %v294_v31, 16  ;;  %v296_v51 = vld [vmem:[%s3620_s14 + $0x98] sm:$0x1] }
  0x17   : > { %v606_v45 = vshll.u32 %v294_v31, 16  ;;  %v418_v46 = vrot.slane %v417_v36, 4  ;;  %v522_v48 = vrot.slane %v520_v38, 4  ;;  %v528_v49 = vrot.slane %v526_v39, 5  ;;  %v273_v3 = vld [vmem:[%s3620_s14 + $0x3c] sm:$0xf] }
  0x18   : > { %v428_v47 = vrot.slane %v427_v37, 4  ;;  %v513_v50 = vor.u32 %v512_v42, %v509_v33  ;;  %v605_v52 = vrot.slane %v603_v44, 4  ;;  %v612_v54 = vshll.u32 %v295_v40, 16  ;;  %v274_v8 = vld [vmem:[%s3620_s14 + $0x40] sm:$0xf] }
  0x19   : > { %v608_v53 = vrot.slane %v606_v45, 5  ;;  %v423_v55 = vsel %vm3639_vm4, %v418_v46, %v422_v29  ;;  %v523_v57 = vor.u32 %v522_v48, %v518_v43  ;;  %v616_v58 = vshrl.u32 %v295_v40, 16  ;;  %v275_v13 = vld [vmem:[%s3620_s14 + $0x44] sm:$0x1]  ;;  %v285_v18 = vld [vmem:[%s3620_s14 + $0x6c] sm:$0xf] }
  0x1a   : > { %v433_v56 = vsel %vm3639_vm4, %v428_v47, %v432_v32  ;;  %v709_v59 = vunpack.c.l.b16 %v423_v55  ;;  %v514_v61 = vrot.slane %v513_v50, 4  ;;  %v614_v0 = vrot.slane %v612_v54, 5  ;;  %v286_v27 = vld [vmem:[%s3620_s14 + $0x70] sm:$0xf]  ;;  %v287_v31 = vld [vmem:[%s3620_s14 + $0x74] sm:$0x1] }
  0x1b   : > { %v710_v60 = vunpack.c.l.b16 %v433_v56  ;;  %v609_v62 = vor.u32 %v608_v53, %v605_v52  ;;  %v524_v63 = vrot.slane %v523_v57, 4  ;;  %v618_v1 = vrot.slane %v616_v58, 4  ;;  %v297_v37 = vld [vmem:[%s3620_s14 + $0x9c] sm:$0xf]  ;;  %v298_v50 = vld [vmem:[%s3620_s14 + $0xa0] sm:$0xf] }
  0x1c   : > { %v622_v2 = vshll.u32 %v296_v51, 16  ;;  %v519_v5 = vsel %vm3639_vm4, %v514_v61, %v518_v43  ;;  %v435_v16 = vshrl.u32 %v273_v3, 16  ;;  %v438_v17 = vshll.u32 %v273_v3, 16  ;;  %v299_v55 = vld [vmem:[%s3620_s14 + $0xa4] sm:$0x1] }
  0x1d   : > { %v3649_v4 = vpack.c.b16 %v710_v60, %v709_v59  ;;  %v610_v6 = vrot.slane %v609_v62, 4  ;;  %v529_v9 = vsel %vm3639_vm4, %v524_v63, %v528_v49  ;;  %v717_v10 = vunpack.c.l.b16 %v519_v5  ;;  %v276_v57 = vld [vmem:[%s3620_s14 + $0x48] sm:$0xf] }
  0x1e   : > { %v619_v11 = vor.u32 %v618_v1, %v614_v0  ;;  %v624_v12 = vrot.slane %v622_v2, 5  ;;  %v718_v14 = vunpack.c.l.b16 %v529_v9  ;;  %v444_v21 = vshll.u32 %v274_v8, 16 }
  0x1f   : > { %3077 = vmatmul.msk.bf16.vlgmr.msra.gmra.mxu1 %vm754_vm3, %v3649_v4  ;;  %v615_v15 = vsel %vm3639_vm4, %v610_v6, %v614_v0  ;;  %v448_v22 = vshrl.u32 %v274_v8, 16  ;;  %v437_v24 = vrot.slane %v435_v16, 4  ;;  %v440_v25 = vrot.slane %v438_v17, 5  ;;  %v288_v17 = vld [vmem:[%s3620_s14 + $0x78] sm:$0xf] }
  0x20   : > { %v620_v19 = vrot.slane %v619_v11, 4  ;;  %v725_v20 = vunpack.c.l.b16 %v615_v15  ;;  %v3663_v23 = vpack.c.b16 %v718_v14, %v717_v10  ;;  %v454_v26 = vshll.u32 %v275_v13, 16  ;;  %v277_v11 = vld [vmem:[%s3620_s14 + $0x4c] sm:$0xf] }
  0x21   : > { %v446_v29 = vrot.slane %v444_v21, 5  ;;  %v450_v30 = vrot.slane %v448_v22, 4  ;;  %v531_v32 = vshrl.u32 %v285_v18, 16  ;;  %v441_v34 = vor.u32 %v440_v25, %v437_v24 }
  0x22   : > { %v625_v28 = vsel %vm3639_vm4, %v620_v19, %v624_v12  ;;  %3081 = vmatmul.msk.bf16.vlgmr.msra.gmra.mxu2 %vm754_vm3, %v3663_v23  ;;  %v456_v35 = vrot.slane %v454_v26, 5  ;;  %v534_v36 = vshll.u32 %v285_v18, 16  ;;  %v540_v40 = vshll.u32 %v286_v27, 16  ;;  %v278_v12 = vld [vmem:[%s3620_s14 + $0x50] sm:$0x1] }
  0x23   : > { %v726_v33 = vunpack.c.l.b16 %v625_v28  ;;  %v451_v38 = vor.u32 %v450_v30, %v446_v29  ;;  %v533_v39 = vrot.slane %v531_v32, 4  ;;  %v544_v42 = vshrl.u32 %v286_v27, 16  ;;  %v289_v30 = vld [vmem:[%s3620_s14 + $0x7c] sm:$0xf] }
  0x24   : > { %v442_v44 = vrot.slane %v441_v34, 4  ;;  %v536_v45 = vrot.slane %v534_v36, 5  ;;  %v550_v46 = vshll.u32 %v287_v31, 16  ;;  %v542_v48 = vrot.slane %v540_v40, 5  ;;  %v290_v36 = vld [vmem:[%s3620_s14 + $0x80] sm:$0x1] }
  0x25   : > { %v3672_v43 = vpack.c.b16 %v726_v33, %v725_v20  ;;  %v452_v47 = vrot.slane %v451_v38, 4  ;;  %v546_v49 = vrot.slane %v544_v42, 4  ;;  %v627_v51 = vshrl.u32 %v297_v37, 16  ;;  %v300_v42 = vld [vmem:[%s3620_s14 + $0xa8] sm:$0xf] }
  0x26   : > { %v447_v52 = vsel %vm3639_vm4, %v442_v44, %v446_v29  ;;  %v537_v53 = vor.u32 %v536_v45, %v533_v39  ;;  %v552_v54 = vrot.slane %v550_v46, 5  ;;  %v630_v56 = vshll.u32 %v297_v37, 16 }
  0x27   : > { %3085 = vmatmul.msk.bf16.vlgmr.msra.gmra.mxu3 %vm754_vm3, %v3672_v43  ;;  %v457_v58 = vsel %vm3639_vm4, %v452_v47, %v456_v35  ;;  %v711_v59 = vunpack.c.l.b16 %v447_v52  ;;  %v547_v60 = vor.u32 %v546_v49, %v542_v48  ;;  %v629_v61 = vrot.slane %v627_v51, 4 }
  0x28   : > { %v712_v62 = vunpack.c.l.b16 %v457_v58  ;;  %v538_v63 = vrot.slane %v537_v53, 4  ;;  %v632_v0 = vrot.slane %v630_v56, 5  ;;  %v636_v1 = vshll.u32 %v298_v50, 16 }
  0x29   : > { %v548_v2 = vrot.slane %v547_v60, 4  ;;  %v640_v3 = vshrl.u32 %v298_v50, 16  ;;  %v646_v5 = vshll.u32 %v299_v55, 16  ;;  %v459_v6 = vshrl.u32 %v276_v57, 16  ;;  %v301_v55 = vld [vmem:[%s3620_s14 + $0xac] sm:$0xf] }
  0x2a   : > { %v3683_v7 = vpack.c.b16 %v712_v62, %v711_v59  ;;  %v543_v8 = vsel %vm3639_vm4, %v538_v63, %v542_v48  ;;  %v633_v9 = vor.u32 %v632_v0, %v629_v61  ;;  %v638_v10 = vrot.slane %v636_v1, 5  ;;  %v302_v61 = vld [vmem:[%s3620_s14 + $0xb0] sm:$0x1]  ;;  %v279_v62 = vld [vmem:[%s3620_s14 + $0x54] sm:$0xf] }
  0x2b   : > { %v553_v13 = vsel %vm3639_vm4, %v548_v2, %v552_v54  ;;  %v719_v14 = vunpack.c.l.b16 %v543_v8  ;;  %v642_v15 = vrot.slane %v640_v3, 4  ;;  %v648_v16 = vrot.slane %v646_v5, 5 }
  0x2c   : > { %v720_v18 = vunpack.c.l.b16 %v553_v13  ;;  %v634_v19 = vrot.slane %v633_v9, 4  ;;  %v461_v20 = vrot.slane %v459_v6, 4  ;;  %v462_v21 = vshll.u32 %v276_v57, 16 }
  0x2d   : > { %v643_v22 = vor.u32 %v642_v15, %v638_v10  ;;  %v468_v24 = vshll.u32 %v277_v11, 16  ;;  %v472_v25 = vshrl.u32 %v277_v11, 16  ;;  %v478_v26 = vshll.u32 %v278_v12, 16 }
  0x2e   : > { %v3694_v27 = vpack.c.b16 %v720_v18, %v719_v14  ;;  %v639_v28 = vsel %vm3639_vm4, %v634_v19, %v638_v10  ;;  %v464_v29 = vrot.slane %v462_v21, 5  ;;  %v555_v31 = vshrl.u32 %v288_v17, 16  ;;  %v281_v18 = vld [vmem:[%s3620_s14 + $0x5c] sm:$0x1] }
  0x2f   : > { %3078 = vmatmul.msk.bf16.gmra.mxu1 %vm754_vm3, %v3683_v7  ;;  %v644_v32 = vrot.slane %v643_v22, 4  ;;  %v727_v33 = vunpack.c.l.b16 %v639_v28  ;;  %v470_v34 = vrot.slane %v468_v24, 5  ;;  %v474_v35 = vrot.slane %v472_v25, 4  ;;  %v291_v24 = vld [vmem:[%s3620_s14 + $0x84] sm:$0xf] }
  0x30   : > { %v465_v37 = vor.u32 %v464_v29, %v461_v20  ;;  %v480_v38 = vrot.slane %v478_v26, 5  ;;  %v557_v39 = vrot.slane %v555_v31, 4  ;;  %v558_v40 = vshll.u32 %v288_v17, 16  ;;  %v280_v17 = vld [vmem:[%s3620_s14 + $0x58] sm:$0xf] }
  0x31   : > { %v649_v44 = vsel %vm3639_vm4, %v644_v32, %v648_v16  ;;  %v475_v45 = vor.u32 %v474_v35, %v470_v34  ;;  %v564_v46 = vshll.u32 %v289_v30, 16  ;;  %v568_v47 = vshrl.u32 %v289_v30, 16 }
  0x32   : > { %3082 = vmatmul.msk.bf16.gmra.mxu2 %vm754_vm3, %v3694_v27  ;;  %v728_v48 = vunpack.c.l.b16 %v649_v44  ;;  %v466_v49 = vrot.slane %v465_v37, 4  ;;  %v560_v50 = vrot.slane %v558_v40, 5  ;;  %v574_v51 = vshll.u32 %v290_v36, 16  ;;  %v292_v37 = vld [vmem:[%s3620_s14 + $0x88] sm:$0xf] }
  0x33   : > { %v476_v52 = vrot.slane %v475_v45, 4  ;;  %v566_v53 = vrot.slane %v564_v46, 5  ;;  %v570_v54 = vrot.slane %v568_v47, 4  ;;  %v651_v56 = vshrl.u32 %v300_v42, 16  ;;  %v293_v47 = vld [vmem:[%s3620_s14 + $0x8c] sm:$0x1] }
  0x34   : > { %v3706_v57 = vpack.c.b16 %v728_v48, %v727_v33  ;;  %v471_v58 = vsel %vm3639_vm4, %v466_v49, %v470_v34  ;;  %v561_v59 = vor.u32 %v560_v50, %v557_v39  ;;  %v576_v60 = vrot.slane %v574_v51, 5  ;;  %v303_v50 = vld [vmem:[%s3620_s14 + $0xb4] sm:$0xf] }
  0x35   : > { %v481_v63 = vsel %vm3639_vm4, %v476_v52, %v480_v38  ;;  %v713_v0 = vunpack.c.l.b16 %v471_v58  ;;  %v571_v1 = vor.u32 %v570_v54, %v566_v53  ;;  %v653_v2 = vrot.slane %v651_v56, 4 }
  0x36   : > { %v714_v3 = vunpack.c.l.b16 %v481_v63  ;;  %v562_v5 = vrot.slane %v561_v59, 4  ;;  %v654_v6 = vshll.u32 %v300_v42, 16  ;;  %v660_v8 = vshll.u32 %v301_v55, 16  ;;  %v304_v63 = vld [vmem:[%s3620_s14 + $0xb8] sm:$0xf] }
  0x37   : > { %3086 = vmatmul.msk.bf16.gmra.mxu3 %vm754_vm3, %v3706_v57  ;;  %v572_v9 = vrot.slane %v571_v1, 4  ;;  %v664_v10 = vshrl.u32 %v301_v55, 16  ;;  %v670_v11 = vshll.u32 %v302_v61, 16  ;;  %v483_v12 = vshrl.u32 %v279_v62, 16 }
  0x38   : > { %v3716_v13 = vpack.c.b16 %v714_v3, %v713_v0  ;;  %v567_v14 = vsel %vm3639_vm4, %v562_v5, %v566_v53  ;;  %v656_v15 = vrot.slane %v654_v6, 5  ;;  %v662_v16 = vrot.slane %v660_v8, 5  ;;  %v305_v6 = vld [vmem:[%s3620_s14 + $0xbc] sm:$0x1]  ;;  %v258_v8 = vld [vmem:[%s3620_s14] sm:$0xf] }
  0x39   : > { %v577_v19 = vsel %vm3639_vm4, %v572_v9, %v576_v60  ;;  %v721_v20 = vunpack.c.l.b16 %v567_v14  ;;  %v666_v21 = vrot.slane %v664_v10, 4  ;;  %v672_v22 = vrot.slane %v670_v11, 5 }
  0x3a   : > { %v722_v25 = vunpack.c.l.b16 %v577_v19  ;;  %v657_v26 = vor.u32 %v656_v15, %v653_v2  ;;  %v485_v28 = vrot.slane %v483_v12, 4  ;;  %v486_v29 = vshll.u32 %v279_v62, 16 }
  0x3b   : > { %v667_v30 = vor.u32 %v666_v21, %v662_v16  ;;  %v492_v31 = vshll.u32 %v280_v17, 16  ;;  %v496_v32 = vshrl.u32 %v280_v17, 16  ;;  %v502_v33 = vshll.u32 %v281_v18, 16 }
  0x3c   : > { %v3725_v34 = vpack.c.b16 %v722_v25, %v721_v20  ;;  %v658_v35 = vrot.slane %v657_v26, 4  ;;  %v488_v36 = vrot.slane %v486_v29, 5  ;;  %v579_v38 = vshrl.u32 %v291_v24, 16  ;;  %v259_v26 = vld [vmem:[%s3620_s14 + $0x4] sm:$0xf] }
  0x3d   : > { %v668_v39 = vrot.slane %v667_v30, 4  ;;  %v494_v40 = vrot.slane %v492_v31, 5  ;;  %v498_v42 = vrot.slane %v496_v32, 4  ;;  %v504_v44 = vrot.slane %v502_v33, 5  ;;  %v260_v32 = vld [vmem:[%s3620_s14 + $0x8] sm:$0x1] }
  0x3e   : > { %v663_v45 = vsel %vm3639_vm4, %v658_v35, %v662_v16  ;;  %v489_v46 = vor.u32 %v488_v36, %v485_v28  ;;  %v581_v48 = vrot.slane %v579_v38, 4  ;;  %v582_v49 = vshll.u32 %v291_v24, 16  ;;  %v261_v38 = vld [vmem:[%s3620_s14 + $0xc] sm:$0xf] }
  0x3f   : > { %3079 = vmatmul.msk.bf16.gmra.mxu1 %vm754_vm3, %v3716_v13  ;;  %v673_v51 = vsel %vm3639_vm4, %v668_v39, %v672_v22  ;;  %v729_v52 = vunpack.c.l.b16 %v663_v45  ;;  %v499_v53 = vor.u32 %v498_v42, %v494_v40  ;;  %v588_v54 = vshll.u32 %v292_v37, 16 }
  0x40   : > { %v730_v55 = vunpack.c.l.b16 %v673_v51  ;;  %v490_v56 = vrot.slane %v489_v46, 4  ;;  %v584_v58 = vrot.slane %v582_v49, 5  ;;  %v592_v59 = vshrl.u32 %v292_v37, 16 }
  0x41   : > { %v500_v60 = vrot.slane %v499_v53, 4  ;;  %v590_v61 = vrot.slane %v588_v54, 5  ;;  %v598_v62 = vshll.u32 %v293_v47, 16  ;;  %v675_v0 = vshrl.u32 %v303_v50, 16 }
  0x42   : > { %3083 = vmatmul.msk.bf16.gmra.mxu2 %vm754_vm3, %v3725_v34  ;;  %v3739_v1 = vpack.c.b16 %v730_v55, %v729_v52  ;;  %v495_v2 = vsel %vm3639_vm4, %v490_v56, %v494_v40  ;;  %v585_v3 = vor.u32 %v584_v58, %v581_v48  ;;  %v594_v5 = vrot.slane %v592_v59, 4  ;;  %v262_v52 = vld [vmem:[%s3620_s14 + $0x10] sm:$0xf] }
  0x43   : > { %v505_v9 = vsel %vm3639_vm4, %v500_v60, %v504_v44  ;;  %v715_v10 = vunpack.c.l.b16 %v495_v2  ;;  %v600_v11 = vrot.slane %v598_v62, 5  ;;  %v677_v15 = vrot.slane %v675_v0, 4 }
  0x44   : > { %v586_v12 = vrot.slane %v585_v3, 4  ;;  %v595_v14 = vor.u32 %v594_v5, %v590_v61  ;;  %v678_v16 = vshll.u32 %v303_v50, 16  ;;  %v684_v17 = vshll.u32 %v304_v63, 16 }
  0x45   : > { %v688_v18 = vshrl.u32 %v304_v63, 16  ;;  %v694_v19 = vshll.u32 %v305_v6, 16  ;;  %v315_v20 = vshrl.u32 %v258_v8, 16  ;;  %v716_v21 = vunpack.c.l.b16 %v505_v9 }
  0x46   : > { %v591_v22 = vsel %vm3639_vm4, %v586_v12, %v590_v61  ;;  %v596_v24 = vrot.slane %v595_v14, 4  ;;  %v680_v25 = vrot.slane %v678_v16, 5  ;;  %v686_v29 = vrot.slane %v684_v17, 5 }
  0x47   : > { %3087 = vmatmul.msk.bf16.gmra.mxu3 %vm754_vm3, %v3739_v1  ;;  %v723_v28 = vunpack.c.l.b16 %v591_v22  ;;  %v690_v30 = vrot.slane %v688_v18, 4  ;;  %v696_v31 = vrot.slane %v694_v19, 5  ;;  %v317_v36 = vrot.slane %v315_v20, 4 }
  0x48   : > { %v601_v33 = vsel %vm3639_vm4, %v596_v24, %v600_v11  ;;  %v681_v35 = vor.u32 %v680_v25, %v677_v15  ;;  %v318_v37 = vshll.u32 %v258_v8, 16  ;;  %v324_v42 = vshll.u32 %v259_v26, 16 }
  0x49   : > { %v724_v39 = vunpack.c.l.b16 %v601_v33  ;;  %v691_v40 = vor.u32 %v690_v30, %v686_v29  ;;  %v328_v44 = vshrl.u32 %v259_v26, 16  ;;  %v3756_v45 = vpack.c.b16 %v716_v21, %v715_v10  ;;  %v263_v10 = vld [vmem:[%s3620_s14 + $0x14] sm:$0x1]  ;;  %v264_v26 = vld [vmem:[%s3620_s14 + $0x18] sm:$0xf] }
  0x4a   : > { %v682_v46 = vrot.slane %v681_v35, 4  ;;  %v320_v47 = vrot.slane %v318_v37, 5  ;;  %v334_v48 = vshll.u32 %v260_v32, 16  ;;  %v326_v50 = vrot.slane %v324_v42, 5  ;;  %v3248_v37 = vld [vmem:[%s3620_s14 + $0xc] sm:$0xff] }
  0x4b   : > { %v692_v49 = vrot.slane %v691_v40, 4  ;;  %v330_v51 = vrot.slane %v328_v44, 4  ;;  %v339_v53 = vshrl.u32 %v261_v38, 16  ;;  %v3759_v54 = vpack.c.b16 %v724_v39, %v723_v28  ;;  %v265_v28 = vld [vmem:[%s3620_s14 + $0x1c] sm:$0xf] }
  0x4c   : > { %v687_v55 = vsel %vm3639_vm4, %v682_v46, %v686_v29  ;;  %v321_v56 = vor.u32 %v320_v47, %v317_v36  ;;  %v336_v58 = vrot.slane %v334_v48, 5  ;;  %v342_v62 = vshll.u32 %v261_v38, 16  ;;  %v3247_v29 = vld [vmem:[%s3620_s14] sm:$0xff] }
  0x4d   : > { %v697_v59 = vsel %vm3639_vm4, %v692_v49, %v696_v31  ;;  %v731_v60 = vunpack.c.l.b16 %v687_v55  ;;  %v331_v61 = vor.u32 %v330_v51, %v326_v50  ;;  %v348_v2 = vshll.u32 %v262_v52, 16  ;;  %v266_v47 = vld [vmem:[%s3620_s14 + $0x20] sm:$0x1] }
  0x4e   : > { %v732_v63 = vunpack.c.l.b16 %v697_v59  ;;  %v322_v0 = vrot.slane %v321_v56, 4  ;;  %v352_v3 = vshrl.u32 %v262_v52, 16  ;;  %v341_v6 = vrot.slane %v339_v53, 4  ;;  %v267_v56 = vld [vmem:[%s3620_s14 + $0x24] sm:$0xf] }
  0x4f   : > { %3080 = vmatmul.msk.bf16.gmra.mxu1 %vm754_vm3, %v3756_v45  ;;  %v332_v5 = vrot.slane %v331_v61, 4  ;;  %v344_v8 = vrot.slane %v342_v62, 5  ;;  %v350_v11 = vrot.slane %v348_v2, 5  ;;  %v358_v20 = vshll.u32 %v263_v10, 16  ;;  %v3249_v2 = vld [vmem:[%s3620_s14 + $0x18] sm:$0xff] }
  0x50   : > { %v327_v9 = vsel %vm3639_vm4, %v322_v0, %v326_v50  ;;  %v354_v12 = vrot.slane %v352_v3, 4  ;;  %v3774_v16 = vpack.c.b16 %v732_v63, %v731_v60  ;;  %v363_v30 = vshrl.u32 %v264_v26, 16 }
  0x51   : > { %v337_v14 = vsel %vm3639_vm4, %v332_v5, %v336_v58  ;;  %v701_v15 = vunpack.c.l.b16 %v327_v9  ;;  %v345_v18 = vor.u32 %v344_v8, %v341_v6  ;;  %v360_v25 = vrot.slane %v358_v20, 5  ;;  %v268_v58 = vld [vmem:[%s3620_s14 + $0x28] sm:$0xf] }
  0x52   : > { %3084 = vmatmul.msk.bf16.gmra.mxu2 %vm754_vm3, %v3759_v54  ;;  %v702_v17 = vunpack.c.l.b16 %v337_v14  ;;  %v355_v19 = vor.u32 %v354_v12, %v350_v11  ;;  %v366_v31 = vshll.u32 %v264_v26, 16  ;;  %v372_v35 = vshll.u32 %v265_v28, 16 }
  0x53   : > { %v346_v22 = vrot.slane %v345_v18, 4  ;;  %v376_v36 = vshrl.u32 %v265_v28, 16  ;;  %v365_v40 = vrot.slane %v363_v30, 4  ;;  %v382_v51 = vshll.u32 %v266_v47, 16  ;;  %v3254_v47 = vld [vmem:[%s3620_s14 + $0x54] sm:$0xff] }
  0x54   : > { %v733_v21 = vpack.c.b16 %v702_v17, %v701_v15  ;;  %v356_v24 = vrot.slane %v355_v19, 4  ;;  %v368_v42 = vrot.slane %v366_v31, 5  ;;  %v374_v44 = vrot.slane %v372_v35, 5  ;;  %v3252_v31 = vld [vmem:[%s3620_s14 + $0x3c] sm:$0xff] }
  0x55   : > { %v351_v32 = vsel %vm3639_vm4, %v346_v22, %v350_v11  ;;  %v378_v46 = vrot.slane %v376_v36, 4  ;;  %v384_v55 = vrot.slane %v382_v51, 5  ;;  %v387_v59 = vshrl.u32 %v267_v56, 16  ;;  %v269_v11 = vld [vmem:[%s3620_s14 + $0x2c] sm:$0x1] }
  0x56   : > { %3073 = vmatmul.msk.bf16.vlgmr.msra.gmra.mxu0 %vm754_vm3, %v733_v21  ;;  %v361_v33 = vsel %vm3639_vm4, %v356_v24, %v360_v25  ;;  %v703_v38 = vunpack.c.l.b16 %v351_v32  ;;  %v369_v49 = vor.u32 %v368_v42, %v365_v40  ;;  %v390_v60 = vshll.u32 %v267_v56, 16  ;;  %v3250_v24 = vld [vmem:[%s3620_s14 + $0x24] sm:$0xff] }
  0x57   : > { %3088 = vmatmul.msk.bf16.gmra.mxu3 %vm754_vm3, %v3774_v16  ;;  %v704_v39 = vunpack.c.l.b16 %v361_v33  ;;  %v379_v50 = vor.u32 %v378_v46, %v374_v44  ;;  %v396_v63 = vshll.u32 %v268_v58, 16  ;;  %v400_v0 = vshrl.u32 %v268_v58, 16  ;;  %v3269_v42 = vld [vmem:[%s5419_s3 + $0x8] sm:$0xff] }
  0x58   : > { %v370_v52 = vrot.slane %v369_v49, 4  ;;  %v389_v6 = vrot.slane %v387_v59, 4  ;;  %v392_v8 = vrot.slane %v390_v60, 5  ;;  %v406_v17 = vshll.u32 %v269_v11, 16  ;;  %2190 = vmatpush.bf16.msrb.mxu0 %v3269_v42 }
  0x59   : > { %v734_v48 = vpack.c.b16 %v704_v39, %v703_v38  ;;  %v380_v53 = vrot.slane %v379_v50, 4  ;;  %v398_v9 = vrot.slane %v396_v63, 5  ;;  %v402_v10 = vrot.slane %v400_v0, 4 }
  0x5a   : > { %v375_v61 = vsel %vm3639_vm4, %v370_v52, %v374_v44  ;;  %v393_v14 = vor.u32 %v392_v8, %v389_v6  ;;  %v408_v20 = vrot.slane %v406_v17, 5  ;;  %v3897_v6 = vld [vmem:[%s5418_s2] ss:$0 sm:$0xff] }
  0x5b   : > { %v385_v62 = vsel %vm3639_vm4, %v380_v53, %v384_v55  ;;  %v705_v3 = vunpack.c.l.b16 %v375_v61  ;;  %v403_v15 = vor.u32 %v402_v10, %v398_v9  ;;  %v3255_v53 = vld [vmem:[%s3620_s14 + $0x60] sm:$0xff] }
  0x5c   : > { %v706_v5 = vunpack.c.l.b16 %v385_v62  ;;  %v394_v18 = vrot.slane %v393_v14, 4  ;;  %v3256_v62 = vld [vmem:[%s3620_s14 + $0x6c] sm:$0xff] }
  0x5d   : > { %v404_v19 = vrot.slane %v403_v15, 4 }
  0x5e   : > { %v735_v12 = vpack.c.b16 %v706_v5, %v705_v3  ;;  %v399_v21 = vsel %vm3639_vm4, %v394_v18, %v398_v9 }
  0x5f   : > { %3157 = vmatmul.msk.bf16.vlgmr.msrb.gmra.mxu1 %vm754_vm3, %v3247_v29  ;;  %v409_v22 = vsel %vm3639_vm4, %v404_v19, %v408_v20  ;;  %v707_v25 = vunpack.c.l.b16 %v399_v21  ;;  %v3251_v29 = vld [vmem:[%s3620_s14 + $0x30] sm:$0xff] }
  0x60   : > { %v708_v26 = vunpack.c.l.b16 %v409_v22 }
  0x62   : > { %3183 = vmatmul.msk.bf16.vlgmr.msrb.gmra.mxu2 %vm754_vm3, %v3248_v37  ;;  %v736_v28 = vpack.c.b16 %v708_v26, %v707_v25 }
  0x66   : > { %3074 = vmatmul.msk.bf16.gmra.mxu0 %vm754_vm3, %v734_v48 }
  0x67   : > { %3205 = vmatmul.msk.bf16.vlgmr.msrb.gmra.mxu3 %vm754_vm3, %v734_v48 }
  0x6f   : > { %3158 = vmatmul.msk.bf16.gmra.mxu1 %vm754_vm3, %v3248_v37  ;;  %v3253_v37 = vld [vmem:[%s3620_s14 + $0x48] sm:$0xff] }
  0x72   : > { %3184 = vmatmul.msk.bf16.gmra.mxu2 %vm754_vm3, %v3249_v2 }
  0x76   : > { %3075 = vmatmul.msk.bf16.gmra.mxu0 %vm754_vm3, %v735_v12 }
  0x77   : > { %3206 = vmatmul.msk.bf16.gmra.mxu3 %vm754_vm3, %v735_v12 }
  0x7f   : > { %3159 = vmatmul.msk.bf16.gmra.mxu1 %vm754_vm3, %v3249_v2 }
  0x82   : > { %3185 = vmatmul.msk.bf16.gmra.mxu2 %vm754_vm3, %v3250_v24 }
  0x86   : > { %3076 = vmatmul.msk.bf16.gmra.mxu0 %vm754_vm3, %v736_v28 }
  0x87   : > { %3207 = vmatmul.msk.bf16.gmra.mxu3 %vm754_vm3, %v736_v28 }
  0x8f   : > { %3160 = vmatmul.msk.bf16.gmra.mxu1 %vm754_vm3, %v3250_v24 }
  0x92   : > { %3186 = vmatmul.msk.bf16.gmra.mxu2 %vm754_vm3, %v3251_v29 }
  0x97   : > { %3208 = vmatmul.msk.bf16.gmra.mxu3 %vm754_vm3, %v3649_v4 }
  0x9c   : > { %v3818_v30 = vpop.f32.mrf.mxu1 }
  0x9f   : > { %3161 = vmatmul.msk.bf16.gmra.mxu1 %vm754_vm3, %v3251_v29  ;;  %v3268_v29 = vld [vmem:[%s5419_s3] sm:$0xff] }
  0xa0   : > { %2191 = vmatpush.bf16.msrb.mxu0 %v3268_v29 }
  0xa2   : > { %3187 = vmatmul.msk.bf16.gmra.mxu2 %vm754_vm3, %v3252_v31 }
  0xa4   : > { %v3823_v32 = vpop.f32.mrf.mxu1 }
  0xa5   : > { %v3825_v33 = vpop.f32.mrf.mxu2 }
  0xa7   : > { %3209 = vmatmul.msk.bf16.gmra.mxu3 %vm754_vm3, %v3683_v7 }
  0xaa   : > { %v3829_v35 = vpop.f32.mrf.mxu3 }
  0xac   : > { %v3831_v36 = vpop.f32.mrf.mxu1 }
  0xad   : > { %v3833_v4 = vpop.f32.mrf.mxu2 }
  0xaf   : > { %3162 = vmatmul.msk.bf16.gmra.mxu1 %vm754_vm3, %v3252_v31 }
  0xb2   : > { %v3837_v38 = vpop.f32.mrf.mxu3  ;;  %3188 = vmatmul.msk.bf16.gmra.mxu2 %vm754_vm3, %v3253_v37 }
  0xb4   : > { %v3840_v39 = vpop.f32.mrf.mxu1 }
  0xb5   : > { %v3842_v40 = vpop.f32.mrf.mxu2 }
  0xb7   : > { %3210 = vmatmul.msk.bf16.gmra.mxu3 %vm754_vm3, %v3716_v13 }
  0xba   : > { %v3846_v7 = vpop.f32.mrf.mxu3 }
  0xbc   : > { %v3851_v44 = vpop.f32.mrf.mxu1 }
  0xbd   : > { %v3853_v46 = vpop.f32.mrf.mxu2 }
  0xbf   : > { %3163 = vmatmul.msk.bf16.gmra.mxu1 %vm754_vm3, %v3253_v37 }
  0xc2   : > { %v3857_v48 = vpop.f32.mrf.mxu3  ;;  %3189 = vmatmul.msk.bf16.gmra.mxu2 %vm754_vm3, %v3254_v47 }
  0xc4   : > { %v3860_v13 = vpop.f32.mrf.mxu1 }
  0xc5   : > { %v3862_v49 = vpop.f32.mrf.mxu2 }
  0xc7   : > { %3211 = vmatmul.msk.bf16.gmra.mxu3 %vm754_vm3, %v3756_v45 }
  0xca   : > { %v3866_v50 = vpop.f32.mrf.mxu3 }
  0xcc   : > { %v3868_v51 = vpop.f32.mrf.mxu1 }
  0xcd   : > { %v3870_v52 = vpop.f32.mrf.mxu2 }
  0xcf   : > { %3164 = vmatmul.msk.bf16.gmra.mxu1 %vm754_vm3, %v3254_v47 }
  0xd2   : > { %v3874_v55 = vpop.f32.mrf.mxu3  ;;  %3190 = vmatmul.msk.bf16.gmra.mxu2 %vm754_vm3, %v3255_v53 }
  0xd3   : > { %v816_v59 = vpop.f32.mrf.mxu0 }
  0xd4   : > { %v3877_v56 = vpop.f32.mrf.mxu1 }
  0xd5   : > { %v3879_v58 = vpop.f32.mrf.mxu2 }
  0xd7   : > { %3212 = vmatmul.msk.bf16.gmra.mxu3 %vm754_vm3, %v3663_v23 }
  0xda   : > { %v3883_v45 = vpop.f32.mrf.mxu3 }
  0xdb   : > { %v818_v63 = vpop.f32.mrf.mxu0 }
  0xdc   : > { %v1041_v60 = vpop.f32.mrf.mxu1 }
  0xdd   : > { %v3885_v61 = vpop.f32.mrf.mxu2  ;;  %v1042_v2 = vadd.f32 %v1041_v60, %v816_v59 }
  0xdf   : > { %3165 = vmatmul.msk.bf16.gmra.mxu1 %vm754_vm3, %v3255_v53 }
  0xe2   : > { %v3889_v0 = vpop.f32.mrf.mxu3  ;;  %3191 = vmatmul.msk.bf16.gmra.mxu2 %vm754_vm3, %v3256_v62 }
  0xe3   : > { %v821_v9 = vpop.f32.mrf.mxu0 }
  0xe4   : > { %v1043_v3 = vpop.f32.mrf.mxu1 }
  0xe5   : > { %v1149_v5 = vpop.f32.mrf.mxu2  ;;  %v1044_v14 = vadd.f32 %v1043_v3, %v818_v63 }
  0xe6   : > { %v1229_v23 = vadd.f32 %v1149_v5, %v1042_v2 }
  0xe7   : > { %3213 = vmatmul.msk.bf16.gmra.mxu3 %vm754_vm3, %v3694_v27  ;;  %v3257_v27 = vld [vmem:[%s3620_s14 + $0x78] sm:$0xff] }
  0xea   : > { %v1311_v8 = vpop.f32.mrf.mxu3 }
  0xeb   : > { %v1391_v10 = vadd.f32 %v1311_v8, %v1229_v23  ;;  %v823_v24 = vpop.f32.mrf.mxu0  ;;  %v3258_v8 = vld [vmem:[%s3620_s14 + $0x84] sm:$0xff] }
  0xec   : > { %v1046_v11 = vpop.f32.mrf.mxu1 }
  0xed   : > { %v3900_v12 = vadd.f32 %v3897_v6, %v1391_v10  ;;  %v1151_v15 = vpop.f32.mrf.mxu2  ;;  %v1047_v22 = vadd.f32 %v1046_v11, %v821_v9 }
  0xee   : > { %v1230_v18 = vadd.f32 %v1151_v15, %v1044_v14 }
  0xef   : > { %v1459_v17 = vsub.f32 0.0, %v3900_v12  ;;  %3166 = vmatmul.msk.bf16.gmra.mxu1 %vm754_vm3, %v3256_v62 }
  0xf1   : > { %v1491_v19 = vmul.f32 1.442695, %v1459_v17 }
  0xf2   : > { %v1313_v20 = vpop.f32.mrf.mxu3  ;;  %3192 = vmatmul.msk.bf16.gmra.mxu2 %vm754_vm3, %v3257_v27 }
  0xf3   : > { %3284 = vpow2.f32 %v1491_v19  ;;  %v1392_v21 = vadd.f32 %v1313_v20, %v1230_v18  ;;  %v826_v3 = vpop.f32.mrf.mxu0 }
  0xf4   : > { %v1048_v25 = vpop.f32.mrf.mxu1 }
  0xf5   : > { %v3907_v26 = vadd.f32 %v3897_v6, %v1392_v21  ;;  %v1154_v28 = vpop.f32.mrf.mxu2  ;;  %v1049_v2 = vadd.f32 %v1048_v25, %v823_v24 }
  0xf6   : > { %v1231_v37 = vadd.f32 %v1154_v28, %v1047_v22 }
  0xf7   : > { %v1460_v31 = vsub.f32 0.0, %v3907_v26  ;;  %3214 = vmatmul.msk.bf16.gmra.mxu3 %vm754_vm3, %v3725_v34 }
  0xf9   : > { %v3285_v42 = vpop.eup %3284  ;;  %v1493_v47 = vmul.f32 1.442695, %v1460_v31 }
  0xfa   : > { %v1555_v53 = vadd.f32 1.0, %v3285_v42  ;;  %v1316_v59 = vpop.f32.mrf.mxu3 }
  0xfb   : > { %3286 = vpow2.f32 %v1493_v47  ;;  %v1393_v60 = vadd.f32 %v1316_v59, %v1231_v37  ;;  %v828_v28 = vpop.f32.mrf.mxu0 }
  0xfc   : > { %3288 = vrcp.f32 %v1555_v53  ;;  %v1051_v62 = vpop.f32.mrf.mxu1  ;;  %vm1592_vm6 = vweird.f32 %v1555_v53 }
  0xfd   : > { %v3916_v63 = vadd.f32 %v3897_v6, %v1393_v60  ;;  %v1156_v5 = vpop.f32.mrf.mxu2  ;;  %v1052_v22 = vadd.f32 %v1051_v62, %v826_v3  ;;  %v1596_v62 = vand.u32 2147483647, %v1555_v53  ;;  %v1598_v3 = vand.u32 2147483648, %v1555_v53 }
  0xfe   : > { %v1232_v34 = vadd.f32 %v1156_v5, %v1049_v2 }
  0xff   : > { %v1461_v23 = vsub.f32 0.0, %v3916_v63  ;;  %3167 = vmatmul.msk.bf16.gmra.mxu1 %vm754_vm3, %v3257_v27  ;;  %vm1597_vm9 = vcmp.eq.f32.partialorder %v1596_v62, 8.507059e+37 }
 0x101   : > { %v3287_v9 = vpop.eup %3286  ;;  %v1495_v10 = vmul.f32 1.442695, %v1461_v23 }
 0x102   : > { %v3289_v11 = vpop.eup %3288  ;;  %v1556_v14 = vadd.f32 1.0, %v3287_v9  ;;  %v1318_v15 = vpop.f32.mrf.mxu3  ;;  %3193 = vmatmul.msk.bf16.gmra.mxu2 %vm754_vm3, %v3258_v8 }
 0x103   : > { %v1588_v17 = vmul.f32 %v3289_v11, %v1555_v53  ;;  %3290 = vpow2.f32 %v1495_v10  ;;  %v1394_v18 = vadd.f32 %v1318_v15, %v1232_v34  ;;  %vm1593_vm5 = vweird.f32 %v3289_v11  ;;  %v3942_v53 = vld [vmem:[%s3620_s14 + $0x90] sm:$0xff] }
 0x104   : > { %3292 = vrcp.f32 %v1556_v14  ;;  %v1053_v19 = vpop.f32.mrf.mxu1  ;;  %v1611_v23 = vand.u32 2147483647, %v1556_v14  ;;  %vm3931_vm7 = vmor %vm1592_vm6, %vm1593_vm5  ;;  %v1613_v10 = vand.u32 2147483648, %v1556_v14  ;;  %vm1607_vm10 = vweird.f32 %v1556_v14 }
 0x105   : > { %v1589_v20 = vsub.f32 1.0, %v1588_v17  ;;  %v3923_v21 = vadd.f32 %v3897_v6, %v1394_v18  ;;  %v1159_v24 = vpop.f32.mrf.mxu2 }
 0x106   : > { %v1233_v37 = vadd.f32 %v1159_v24, %v1052_v22  ;;  %v1599_v22 = vor.u32 1.1754944e-38, %v1598_v3  ;;  %v1054_v24 = vadd.f32 %v1053_v19, %v828_v28  ;;  %vm1612_vm11 = vcmp.eq.f32.partialorder %v1611_v23, 8.507059e+37 }
 0x107   : > { %v1590_v27 = vmul.f32 %v3289_v11, %v1589_v20  ;;  %v1462_v25 = vsub.f32 0.0, %v3923_v21  ;;  %3215 = vmatmul.msk.bf16.gmra.mxu3 %vm754_vm3, %v3759_v54 }
 0x109   : > { %v3291_v29 = vpop.eup %3290  ;;  %v1497_v31 = vmul.f32 1.442695, %v1462_v25  ;;  %v1591_v60 = vadd.f32 %v3289_v11, %v1590_v27 }
 0x10a   : > { %v3293_v42 = vpop.eup %3292  ;;  %v3928_v47 = vadd.f32 1.0, %v3291_v29  ;;  %v1321_v59 = vpop.f32.mrf.mxu3 }
 0x10b   : > { %v1603_v2 = vmul.f32 %v3293_v42, %v1556_v14  ;;  %3294 = vpow2.f32 %v1497_v31  ;;  %v1395_v34 = vadd.f32 %v1321_v59, %v1233_v37  ;;  %v1595_v17 = vsel %vm3931_vm7, %v3289_v11, %v1591_v60  ;;  %v831_v60 = vpop.f32.mrf.mxu0 }
 0x10c   : > { %3296 = vrcp.f32 %v3928_v47  ;;  %v1056_v5 = vpop.f32.mrf.mxu1  ;;  %vm1608_vm8 = vweird.f32 %v3293_v42  ;;  %v1600_v11 = vsel %vm1597_vm9, %v1599_v22, %v1595_v17  ;;  %v1614_v37 = vor.u32 1.1754944e-38, %v1613_v10 }
 0x10d   : > { %v1604_v54 = vsub.f32 1.0, %v1603_v2  ;;  %v1161_v15 = vpop.f32.mrf.mxu2  ;;  %v3938_v20 = vadd.f32 %v3897_v6, %v1395_v34  ;;  %vm1609_vm12 = vmor %vm1607_vm10, %vm1608_vm8  ;;  %v1057_v62 = vadd.f32 %v1056_v5, %v831_v60  ;;  %v2067_v23 = vmul.f32 %v1600_v11, %v3900_v12 }
 0x10e   : > { %vm1622_vm15 = vweird.f32 %v3928_v47  ;;  %v1626_v11 = vand.u32 2147483647, %v3928_v47 }
 0x10f   : > { %v1605_v18 = vmul.f32 %v3293_v42, %v1604_v54  ;;  %3168 = vmatmul.msk.bf16.gmra.mxu1 %vm754_vm3, %v3258_v8  ;;  %v1463_v29 = vsub.f32 0.0, %v3938_v20  ;;  %v1234_v8 = vadd.f32 %v1161_v15, %v1054_v24 }
 0x110   : > { %vm1627_vm2 = vcmp.eq.f32.partialorder %v1626_v11, 8.507059e+37 }
 0x111   : > { %v3295_v27 = vpop.eup %3294  ;;  %v1606_v25 = vadd.f32 %v3293_v42, %v1605_v18  ;;  %v1499_v28 = vmul.f32 1.442695, %v1463_v29  ;;  %v1628_v18 = vand.u32 2147483648, %v3928_v47 }
 0x112   : > { %v3945_v31 = vpop.eup %3296  ;;  %v3947_v59 = vadd.f32 1.0, %v3295_v27  ;;  %v1323_v2 = vpop.f32.mrf.mxu3  ;;  %3194 = vmatmul.msk.bf16.gmra.mxu2 %vm754_vm3, %v3942_v53 }
 0x113   : > { %v1610_v54 = vsel %vm1609_vm12, %v3293_v42, %v1606_v25  ;;  %v1618_v19 = vmul.f32 %v3945_v31, %v3928_v47  ;;  %v1396_v10 = vadd.f32 %v1323_v2, %v1234_v8  ;;  %vm1623_vm14 = vweird.f32 %v3945_v31  ;;  %v833_v2 = vpop.f32.mrf.mxu0 }
 0x114   : > { %v1615_v14 = vsel %vm1612_vm11, %v1614_v37, %v1610_v54  ;;  %3298 = vrcp.f32 %v3947_v59  ;;  %v1058_v3 = vpop.f32.mrf.mxu1  ;;  %v1629_v37 = vor.u32 1.1754944e-38, %v1628_v18  ;;  %vm3972_vm0 = vmor %vm1622_vm15, %vm1623_vm14  ;;  %vm1637_vm5 = vweird.f32 %v3947_v59 }
 0x115   : > { %v2068_v34 = vmul.f32 %v1615_v14, %v3907_v26  ;;  %v1619_v9 = vsub.f32 1.0, %v1618_v19  ;;  %3300 = vpow2.f32 %v1499_v28  ;;  %v1164_v42 = vpop.f32.mrf.mxu2  ;;  %v3961_v22 = vadd.f32 %v3897_v6, %v1396_v10 }
 0x116   : > { %v1235_v5 = vadd.f32 %v1164_v42, %v1057_v62  ;;  %v1641_v62 = vand.u32 2147483647, %v3947_v59 }
 0x117   : > { %v1620_v15 = vmul.f32 %v3945_v31, %v1619_v9  ;;  %3216 = vmatmul.msk.bf16.gmra.mxu3 %vm754_vm3, %v3672_v43  ;;  %v2099_v17 = vpack.c.bf16 %v2068_v34, %v2067_v23  ;;  %v1464_v24 = vsub.f32 0.0, %v3961_v22  ;;  %v1059_v23 = vadd.f32 %v1058_v3, %v833_v2 }
 0x118   : > { %v1643_v34 = vand.u32 2147483648, %v3947_v59  ;;  %vm1642_vm7 = vcmp.eq.f32.partialorder %v1641_v62, 8.507059e+37 }
 0x119   : > { %3229 = vmatmul.msk.bf16.vlgmr.msrb.gmra.mxu0 %vm2135_vm13, %v2099_v17  ;;  %v1621_v26 = vadd.f32 %v3945_v31, %v1620_v15  ;;  %v1501_v8 = vmul.f32 1.442695, %v1464_v24 }
 0x11a   : > { %v3299_v12 = vpop.eup %3298  ;;  %v1326_v27 = vpop.f32.mrf.mxu3  ;;  %v1644_v18 = vor.u32 1.1754944e-38, %v1643_v34 }
 0x11b   : > { %v3301_v25 = vpop.eup %3300  ;;  %v1633_v43 = vmul.f32 %v3299_v12, %v3947_v59  ;;  %v1397_v29 = vadd.f32 %v1326_v27, %v1235_v5  ;;  %v1625_v47 = vsel %vm3972_vm0, %v3945_v31, %v1621_v26  ;;  %vm1638_vm1 = vweird.f32 %v3299_v12  ;;  %v3260_v5 = vld [vmem:[%s3620_s14 + $0x9c] sm:$0xff] }
 0x11c   : > { %v3970_v60 = vadd.f32 1.0, %v3301_v25  ;;  %v1061_v54 = vpop.f32.mrf.mxu1  ;;  %v1630_v3 = vsel %vm1627_vm2, %v1629_v37, %v1625_v47  ;;  %vm1639_vm6 = vmor %vm1637_vm5, %vm1638_vm1 }
 0x11d   : > { %v1634_v28 = vsub.f32 1.0, %v1633_v43  ;;  %v3978_v14 = vadd.f32 %v3897_v6, %v1397_v29  ;;  %v1166_v9 = vpop.f32.mrf.mxu2 }
 0x11e   : > { %3302 = vrcp.f32 %v3970_v60  ;;  %v1236_v15 = vadd.f32 %v1166_v9, %v1059_v23  ;;  %vm1652_vm8 = vweird.f32 %v3970_v60 }
 0x11f   : > { %v1635_v10 = vmul.f32 %v3299_v12, %v1634_v28  ;;  %3304 = vpow2.f32 %v1501_v8  ;;  %v1465_v42 = vsub.f32 0.0, %v3978_v14  ;;  %3169 = vmatmul.msk.bf16.gmra.mxu1 %vm754_vm3, %v3942_v53  ;;  %v2069_v53 = vmul.f32 %v1630_v3, %v3916_v63 }
 0x121   : > { %v1636_v17 = vadd.f32 %v3299_v12, %v1635_v10  ;;  %v1503_v31 = vmul.f32 1.442695, %v1465_v42 }
 0x122   : > { %v1328_v26 = vpop.f32.mrf.mxu3  ;;  %3195 = vmatmul.msk.bf16.gmra.mxu2 %vm754_vm3, %v3260_v5 }
 0x123   : > { %v1640_v24 = vsel %vm1639_vm6, %v3299_v12, %v1636_v17  ;;  %3306 = vpow2.f32 %v1503_v31  ;;  %v1398_v27 = vadd.f32 %v1328_v26, %v1236_v15  ;;  %v1062_v12 = vadd.f32 %v1061_v54, %v3818_v30 }
 0x124   : > { %v3992_v25 = vpop.eup %3302  ;;  %v1645_v43 = vsel %vm1642_vm7, %v1644_v18, %v1640_v24  ;;  %v1063_v29 = vpop.f32.mrf.mxu1  ;;  %v4017_v18 = vld [vmem:[%s3620_s14 + $0xa8] sm:$0xff] }
 0x125   : > { %v3305_v11 = vpop.eup %3304  ;;  %v2070_v59 = vmul.f32 %v1645_v43, %v3923_v21  ;;  %v1648_v37 = vmul.f32 %v3992_v25, %v3970_v60  ;;  %v3999_v8 = vadd.f32 %v3897_v6, %v1398_v27  ;;  %v1169_v19 = vpop.f32.mrf.mxu2  ;;  %v1064_v31 = vadd.f32 %v1063_v29, %v3823_v32 }
 0x126   : > { %v1560_v2 = vadd.f32 1.0, %v3305_v11  ;;  %v1237_v63 = vadd.f32 %v1169_v19, %v1062_v12  ;;  %vm1653_vm9 = vweird.f32 %v3992_v25  ;;  %v1658_v27 = vand.u32 2147483648, %v3970_v60 }
 0x127   : > { %v1466_v28 = vsub.f32 0.0, %v3999_v8  ;;  %3217 = vmatmul.msk.bf16.gmra.mxu3 %vm754_vm3, %v3706_v57  ;;  %v2100_v62 = vpack.c.bf16 %v2070_v59, %v2069_v53  ;;  %v1649_v23 = vsub.f32 1.0, %v1648_v37  ;;  %v1656_v32 = vand.u32 2147483647, %v3970_v60  ;;  %vm4028_vm10 = vmor %vm1652_vm8, %vm1653_vm9 }
 0x128   : > { %3308 = vrcp.f32 %v1560_v2  ;;  %v1671_v29 = vand.u32 2147483647, %v1560_v2  ;;  %vm1667_vm12 = vweird.f32 %v1560_v2 }
 0x129   : > { %v3307_v21 = vpop.eup %3306  ;;  %v1505_v47 = vmul.f32 1.442695, %v1466_v28  ;;  %3230 = vmatmul.msk.bf16.gmra.mxu0 %vm2135_vm13, %v2100_v62  ;;  %v1650_v54 = vmul.f32 %v3992_v25, %v1649_v23  ;;  %v1659_v23 = vor.u32 1.1754944e-38, %v1658_v27  ;;  %vm1657_vm14 = vcmp.eq.f32.partialorder %v1656_v32, 8.507059e+37 }
 0x12a   : > { %v4006_v34 = vadd.f32 1.0, %v3307_v21  ;;  %v1331_v9 = vpop.f32.mrf.mxu3  ;;  %vm1672_vm0 = vcmp.eq.f32.partialorder %v1671_v29, 8.507059e+37 }
 0x12b   : > { %3310 = vpow2.f32 %v1505_v47  ;;  %v1399_v30 = vadd.f32 %v1331_v9, %v1237_v63  ;;  %v1651_v26 = vadd.f32 %v3992_v25, %v1650_v54  ;;  %v306_v9 = vld [vmem:[%s3620_s14 + $0xc0] sm:$0xf] }
 0x12c   : > { %3312 = vrcp.f32 %v4006_v34  ;;  %v1066_v10 = vpop.f32.mrf.mxu1  ;;  %v1265_v27 = vshll.u32 %v306_v9, 16  ;;  %vm1682_vm2 = vweird.f32 %v4006_v34 }
 0x12d   : > { %v4011_v57 = vadd.f32 %v3897_v6, %v1399_v30  ;;  %v1171_v15 = vpop.f32.mrf.mxu2  ;;  %v1655_v60 = vsel %vm4028_vm10, %v3992_v25, %v1651_v26 }
 0x12e   : > { %v3309_v42 = vpop.eup %3308  ;;  %v1238_v11 = vadd.f32 %v1171_v15, %v1064_v31  ;;  %v307_v15 = vld [vmem:[%s3620_s14 + $0xc4] sm:$0xf]  ;;  %v1067_v31 = vadd.f32 %v1066_v10, %v3831_v36 }
 0x12f   : > { %v1663_v3 = vmul.f32 %v3309_v42, %v1560_v2  ;;  %v1467_v17 = vsub.f32 0.0, %v4011_v57  ;;  %3170 = vmatmul.msk.bf16.gmra.mxu1 %vm754_vm3, %v3260_v5  ;;  %v1673_v5 = vand.u32 2147483648, %v1560_v2  ;;  %vm1668_vm11 = vweird.f32 %v3309_v42 }
 0x130   : > { %vm1669_vm15 = vmor %vm1667_vm12, %vm1668_vm11  ;;  %v1275_v19 = vshrl.u32 %v307_v15, 16 }
 0x131   : > { %v3311_v24 = vpop.eup %3310  ;;  %v1664_v53 = vsub.f32 1.0, %v1663_v3  ;;  %v1507_v43 = vmul.f32 1.442695, %v1467_v17  ;;  %v1674_v30 = vor.u32 1.1754944e-38, %v1673_v5  ;;  %v1660_v3 = vsel %vm1657_vm14, %v1659_v23, %v1655_v60 }
 0x132   : > { %v4023_v59 = vpop.eup %3312  ;;  %v4026_v37 = vadd.f32 1.0, %v3311_v24  ;;  %v1333_v12 = vpop.f32.mrf.mxu3  ;;  %3196 = vmatmul.msk.bf16.gmra.mxu2 %vm754_vm3, %v4017_v18  ;;  %v1262_v24 = vshrl.u32 %v306_v9, 16  ;;  %v2071_v36 = vmul.f32 %v1660_v3, %v3938_v20  ;;  %v1277_v3 = vrot.slane %v1275_v19, 4 }
 0x133   : > { %v1665_v28 = vmul.f32 %v3309_v42, %v1664_v53  ;;  %3314 = vpow2.f32 %v1507_v43  ;;  %v1678_v63 = vmul.f32 %v4023_v59, %v4006_v34  ;;  %v1400_v47 = vadd.f32 %v1333_v12, %v1238_v11 }
 0x134   : > { %3316 = vrcp.f32 %v4026_v37  ;;  %v1068_v62 = vpop.f32.mrf.mxu1  ;;  %v1271_v11 = vshll.u32 %v307_v15, 16  ;;  %v1264_v23 = vrot.slane %v1262_v24, 4  ;;  %v1701_v20 = vand.u32 2147483647, %v4026_v37  ;;  %v308_v24 = vld [vmem:[%s3620_s14 + $0xc8] sm:$0x1] }
 0x135   : > { %v1666_v21 = vadd.f32 %v3309_v42, %v1665_v28  ;;  %v1174_v54 = vpop.f32.mrf.mxu2  ;;  %v4043_v25 = vadd.f32 %v3897_v6, %v1400_v47  ;;  %v1679_v2 = vsub.f32 1.0, %v1678_v63  ;;  %v1069_v47 = vadd.f32 %v1068_v62, %v3840_v39 }
 0x136   : > { %v1239_v5 = vadd.f32 %v1174_v54, %v1067_v31  ;;  %v4058_v9 = vrot.slane %v1271_v11, 5  ;;  %v1703_v31 = vand.u32 2147483648, %v4026_v37  ;;  %vm1683_vm5 = vweird.f32 %v4023_v59 }
 0x137   : > { %v1670_v17 = vsel %vm1669_vm15, %v3309_v42, %v1666_v21  ;;  %3218 = vmatmul.msk.bf16.gmra.mxu3 %vm754_vm3, %v3739_v1  ;;  %v1468_v43 = vsub.f32 0.0, %v4043_v25  ;;  %v1686_v1 = vand.u32 2147483647, %v4006_v34  ;;  %v1680_v60 = vmul.f32 %v4023_v59, %v1679_v2  ;;  %v4065_v2 = vld [vmem:[%s3620_s14 + $0xb4] sm:$0xff]  ;;  %vm4094_vm9 = vmor %vm1682_vm2, %vm1683_vm5 }
 0x138   : > { %v1675_v26 = vsel %vm1672_vm0, %v1674_v30, %v1670_v17  ;;  %vm1697_vm7 = vweird.f32 %v4026_v37  ;;  %v1278_v19 = vor.u32 %v1277_v3, %v4058_v9  ;;  %vm1702_vm10 = vcmp.eq.f32.partialorder %v1701_v20, 8.507059e+37 }
 0x139   : > { %v3315_v53 = vpop.eup %3314  ;;  %v2072_v29 = vmul.f32 %v1675_v26, %v3961_v22  ;;  %v1509_v28 = vmul.f32 1.442695, %v1468_v43  ;;  %v1267_v22 = vrot.slane %v1265_v27, 5  ;;  %v1681_v39 = vadd.f32 %v4023_v59, %v1680_v60 }
 0x13a   : > { %v3317_v32 = vpop.eup %3316  ;;  %v4050_v42 = vadd.f32 1.0, %v3315_v53  ;;  %v1336_v12 = vpop.f32.mrf.mxu3  ;;  %vm4075_vm6 = vcmp.eq.f32.partialorder %v1686_v1, 8.507059e+37 }
 0x13b   : > { %v1693_v10 = vmul.f32 %v3317_v32, %v4026_v37  ;;  %v1401_v30 = vadd.f32 %v1336_v12, %v1239_v5  ;;  %v2101_v54 = vpack.c.bf16 %v2072_v29, %v2071_v36  ;;  %vm1698_vm1 = vweird.f32 %v3317_v32 }
 0x13c   : > { %3318 = vrcp.f32 %v4050_v42  ;;  %v1071_v63 = vpop.f32.mrf.mxu1  ;;  %vm4084_vm8 = vmor %vm1697_vm7, %vm1698_vm1  ;;  %v1268_v12 = vor.u32 %v1267_v22, %v1264_v23  ;;  %v1281_v36 = vshll.u32 %v308_v24, 16  ;;  %v1685_v23 = vsel %vm4094_vm9, %v4023_v59, %v1681_v39 }
 0x13d   : > { %v1694_v21 = vsub.f32 1.0, %v1693_v10  ;;  %3320 = vpow2.f32 %v1509_v28  ;;  %v1176_v15 = vpop.f32.mrf.mxu2  ;;  %v4072_v62 = vadd.f32 %v3897_v6, %v1401_v30  ;;  %3231 = vmatmul.msk.bf16.gmra.mxu0 %vm2135_vm13, %v2101_v54  ;;  %v1704_v28 = vor.u32 1.1754944e-38, %v1703_v31 }
 0x13e   : > { %v1240_v26 = vadd.f32 %v1176_v15, %v1069_v47  ;;  %v1072_v20 = vadd.f32 %v1071_v63, %v3851_v44  ;;  %v1269_v3 = vrot.slane %v1268_v12, 4  ;;  %v1283_v59 = vrot.slane %v1281_v36, 5 }
 0x13f   : > { %v1695_v17 = vmul.f32 %v3317_v32, %v1694_v21  ;;  %3171 = vmatmul.msk.bf16.gmra.mxu1 %vm754_vm3, %v4017_v18  ;;  %v1688_v18 = vand.u32 2147483648, %v4006_v34  ;;  %v1469_v29 = vsub.f32 0.0, %v4072_v62  ;;  %vm1712_vm12 = vweird.f32 %v4050_v42 }
 0x140   : > { %v1274_v27 = vsel %vm3639_vm4, %v1269_v3, %v4058_v9 }
 0x141   : > { %v1696_v53 = vadd.f32 %v3317_v32, %v1695_v17  ;;  %v1511_v21 = vmul.f32 1.442695, %v1469_v29  ;;  %v1689_v30 = vor.u32 1.1754944e-38, %v1688_v18  ;;  %v1279_v17 = vrot.slane %v1278_v19, 4 }
 0x142   : > { %v4081_v43 = vpop.eup %3318  ;;  %v1338_v5 = vpop.f32.mrf.mxu3  ;;  %3197 = vmatmul.msk.bf16.gmra.mxu2 %vm754_vm3, %v4065_v2 }
 0x143   : > { %v3321_v1 = vpop.eup %3320  ;;  %v1700_v10 = vsel %vm4084_vm8, %v3317_v32, %v1696_v53  ;;  %v1402_v60 = vadd.f32 %v1338_v5, %v1240_v26  ;;  %v1708_v34 = vmul.f32 %v4081_v43, %v4050_v42  ;;  %v1690_v31 = vsel %vm4075_vm6, %v1689_v30, %v1685_v23 }
 0x144   : > { %v4107_v22 = vadd.f32 1.0, %v3321_v1  ;;  %v1073_v47 = vpop.f32.mrf.mxu1  ;;  %v1705_v54 = vsel %vm1702_vm10, %v1704_v28, %v1700_v10  ;;  %v2073_v63 = vmul.f32 %v1690_v31, %v3978_v14  ;;  %v1284_v29 = vsel %vm3639_vm4, %v1279_v17, %v1283_v59 }
 0x145   : > { %v4110_v32 = vadd.f32 %v3897_v6, %v1402_v60  ;;  %v1179_v15 = vpop.f32.mrf.mxu2  ;;  %v2074_v39 = vmul.f32 %v1705_v54, %v3999_v8  ;;  %v1709_v18 = vsub.f32 1.0, %v1708_v34  ;;  %v1074_v1 = vadd.f32 %v1073_v47, %v3860_v13 }
 0x146   : > { %3322 = vrcp.f32 %v4107_v22  ;;  %v1241_v24 = vadd.f32 %v1179_v15, %v1072_v20  ;;  %v1288_v10 = vunpack.c.l.b16 %v1274_v27  ;;  %v1289_v41 = vunpack.c.l.b16 %v1284_v29 }
 0x147   : > { %3324 = vpow2.f32 %v1511_v21  ;;  %v1470_v26 = vsub.f32 0.0, %v4110_v32  ;;  %3219 = vmatmul.msk.bf16.gmra.mxu3 %vm754_vm3, %v3774_v16  ;;  %v1710_v16 = vmul.f32 %v4081_v43, %v1709_v18  ;;  %v2102_v12 = vpack.c.bf16 %v2074_v39, %v2073_v63  ;;  %v3263_v21 = vld [vmem:[%s3620_s14 + $0xc0] sm:$0xff] }
 0x148   : > { %v1718_v28 = vand.u32 2147483648, %v4050_v42  ;;  %vm1713_vm4 = vweird.f32 %v4081_v43  ;;  %v1733_v13 = vand.u32 2147483648, %v4107_v22  ;;  %v1731_v20 = vand.u32 2147483647, %v4107_v22 }
 0x149   : > { %v1513_v44 = vmul.f32 1.442695, %v1470_v26  ;;  %v1711_v30 = vadd.f32 %v4081_v43, %v1710_v16  ;;  %v1290_v59 = vpack.c.b16 %v1289_v41, %v1288_v10  ;;  %vm4149_vm14 = vmor %vm1712_vm12, %vm1713_vm4  ;;  %vm1727_vm15 = vweird.f32 %v4107_v22 }
 0x14a   : > { %v1341_v53 = vpop.f32.mrf.mxu3  ;;  %vm1732_vm1 = vcmp.eq.f32.partialorder %v1731_v20, 8.507059e+37 }
 0x14b   : > { %3326 = vpow2.f32 %v1513_v44  ;;  %v1403_v11 = vadd.f32 %v1341_v53, %v1241_v24  ;;  %v1715_v39 = vsel %vm4149_vm14, %v4081_v43, %v1711_v30  ;;  %v1719_v44 = vor.u32 1.1754944e-38, %v1718_v28 }
 0x14c   : > { %v3323_v5 = vpop.eup %3322  ;;  %v1076_v8 = vpop.f32.mrf.mxu1 }
 0x14d   : > { %v3325_v19 = vpop.eup %3324  ;;  %v1723_v36 = vmul.f32 %v3323_v5, %v4107_v22  ;;  %v4129_v14 = vadd.f32 %v3897_v6, %v1403_v11  ;;  %v1181_v9 = vpop.f32.mrf.mxu2  ;;  %3232 = vmatmul.msk.bf16.gmra.mxu0 %vm2135_vm13, %v2102_v12  ;;  %vm1728_vm11 = vweird.f32 %v3323_v5  ;;  %v1077_v12 = vadd.f32 %v1076_v8, %v3868_v51 }
 0x14e   : > { %v4132_v37 = vadd.f32 1.0, %v3325_v19  ;;  %v1242_v34 = vadd.f32 %v1181_v9, %v1074_v1  ;;  %vm1729_vm0 = vmor %vm1727_vm15, %vm1728_vm11 }
 0x14f   : > { %v1724_v60 = vsub.f32 1.0, %v1723_v36  ;;  %v1471_v23 = vsub.f32 0.0, %v4129_v14  ;;  %3172 = vmatmul.msk.bf16.gmra.mxu1 %vm754_vm3, %v4065_v2  ;;  %v1716_v2 = vand.u32 2147483647, %v4050_v42  ;;  %v1734_v42 = vor.u32 1.1754944e-38, %v1733_v13 }
 0x150   : > { %3328 = vrcp.f32 %v4132_v37  ;;  %vm1742_vm7 = vweird.f32 %v4132_v37 }
 0x151   : > { %v3327_v47 = vpop.eup %3326  ;;  %v1725_v54 = vmul.f32 %v3323_v5, %v1724_v60  ;;  %v1515_v15 = vmul.f32 1.442695, %v1471_v23  ;;  %vm1717_vm2 = vcmp.eq.f32.partialorder %v1716_v2, 8.507059e+37 }
 0x152   : > { %v4147_v3 = vadd.f32 1.0, %v3327_v47  ;;  %v1343_v17 = vpop.f32.mrf.mxu3  ;;  %3198 = vmatmul.msk.bf16.gmra.mxu2 %vm754_vm3, %v3263_v21  ;;  %v1720_v29 = vsel %vm1717_vm2, %v1719_v44, %v1715_v39 }
 0x153   : > { %v1726_v26 = vadd.f32 %v3323_v5, %v1725_v54  ;;  %3330 = vpow2.f32 %v1515_v15  ;;  %v1404_v24 = vadd.f32 %v1343_v17, %v1242_v34  ;;  %v2075_v41 = vmul.f32 %v1720_v29, %v4011_v57 }
 0x154   : > { %3332 = vrcp.f32 %v4147_v3  ;;  %v1078_v18 = vpop.f32.mrf.mxu1  ;;  %v1763_v47 = vand.u32 2147483648, %v4147_v3  ;;  %v1761_v20 = vand.u32 2147483647, %v4147_v3  ;;  %v1748_v17 = vand.u32 2147483648, %v4132_v37 }
 0x155   : > { %v1730_v63 = vsel %vm1729_vm0, %v3323_v5, %v1726_v26  ;;  %v4161_v53 = vadd.f32 %v3897_v6, %v1404_v24  ;;  %v1184_v27 = vpop.f32.mrf.mxu2  ;;  %v1079_v15 = vadd.f32 %v1078_v18, %v3877_v56  ;;  %vm1757_vm6 = vweird.f32 %v4147_v3 }
 0x156   : > { %v4163_v22 = vpop.eup %3328  ;;  %v1735_v11 = vsel %vm1732_vm1, %v1734_v42, %v1730_v63  ;;  %v1243_v9 = vadd.f32 %v1184_v27, %v1077_v12  ;;  %v1746_v24 = vand.u32 2147483647, %v4132_v37  ;;  %v1764_v44 = vor.u32 1.1754944e-38, %v1763_v47 }
 0x157   : > { %v1738_v43 = vmul.f32 %v4163_v22, %v4132_v37  ;;  %v1472_v16 = vsub.f32 0.0, %v4161_v53  ;;  %3220 = vmatmul.msk.bf16.gmra.mxu3 %vm754_vm3, %v1290_v59  ;;  %v2076_v5 = vmul.f32 %v1735_v11, %v4043_v25  ;;  %vm1743_vm5 = vweird.f32 %v4163_v22 }
 0x158   : > { %vm4198_vm9 = vmor %vm1742_vm7, %vm1743_vm5  ;;  %vm1762_vm10 = vcmp.eq.f32.partialorder %v1761_v20, 8.507059e+37  ;;  %v1749_v29 = vor.u32 1.1754944e-38, %v1748_v17  ;;  %vm1747_vm4 = vcmp.eq.f32.partialorder %v1746_v24, 8.507059e+37 }
 0x159   : > { %v3331_v19 = vpop.eup %3330  ;;  %v1739_v36 = vsub.f32 1.0, %v1738_v43  ;;  %v1517_v1 = vmul.f32 1.442695, %v1472_v16  ;;  %v2103_v51 = vpack.c.bf16 %v2076_v5, %v2075_v41 }
 0x15a   : > { %v3333_v10 = vpop.eup %3332  ;;  %v4172_v28 = vadd.f32 1.0, %v3331_v19  ;;  %v1346_v60 = vpop.f32.mrf.mxu3 }
 0x15b   : > { %v1753_v23 = vmul.f32 %v3333_v10, %v4147_v3  ;;  %3334 = vpow2.f32 %v1517_v1  ;;  %v1740_v34 = vmul.f32 %v4163_v22, %v1739_v36  ;;  %v1405_v21 = vadd.f32 %v1346_v60, %v1243_v9 }
 0x15c   : > { %3336 = vrcp.f32 %v4172_v28  ;;  %v1081_v8 = vpop.f32.mrf.mxu1  ;;  %vm1758_vm3 = vweird.f32 %v3333_v10  ;;  %vm1772_vm15 = vweird.f32 %v4172_v28 }
 0x15d   : > { %v1754_v25 = vsub.f32 1.0, %v1753_v23  ;;  %v1186_v30 = vpop.f32.mrf.mxu2  ;;  %v4179_v57 = vadd.f32 %v3897_v6, %v1405_v21  ;;  %v1741_v54 = vadd.f32 %v4163_v22, %v1740_v34  ;;  %3233 = vmatmul.msk.bf16.gmra.mxu0 %vm2135_vm13, %v2103_v51  ;;  %vm1759_vm8 = vmor %vm1757_vm6, %vm1758_vm3  ;;  %v1082_v16 = vadd.f32 %v1081_v8, %v3825_v33 }
 0x15e   : > { %v1244_v42 = vadd.f32 %v1186_v30, %v1079_v15 }
 0x15f   : > { %v1755_v13 = vmul.f32 %v3333_v10, %v1754_v25  ;;  %v1473_v31 = vsub.f32 0.0, %v4179_v57  ;;  %v1745_v11 = vsel %vm4198_vm9, %v4163_v22, %v1741_v54 }
 0x160   : > { %v1750_v19 = vsel %vm1747_vm4, %v1749_v29, %v1745_v11 }
 0x161   : > { %v3335_v2 = vpop.eup %3334  ;;  %v1756_v59 = vadd.f32 %v3333_v10, %v1755_v13  ;;  %v1519_v63 = vmul.f32 1.442695, %v1473_v31  ;;  %v2077_v41 = vmul.f32 %v1750_v19, %v4072_v62 }
 0x162   : > { %v4189_v26 = vpop.eup %3336  ;;  %v4194_v39 = vadd.f32 1.0, %v3335_v2  ;;  %v1348_v56 = vpop.f32.mrf.mxu3 }
 0x163   : > { %v1760_v3 = vsel %vm1759_vm8, %v3333_v10, %v1756_v59  ;;  %v1768_v37 = vmul.f32 %v4189_v26, %v4172_v28  ;;  %v1406_v12 = vadd.f32 %v1348_v56, %v1244_v42  ;;  %vm1773_vm12 = vweird.f32 %v4189_v26 }
 0x164   : > { %3338 = vrcp.f32 %v4194_v39  ;;  %v1083_v27 = vpop.f32.mrf.mxu1  ;;  %v1765_v43 = vsel %vm1762_vm10, %v1764_v44, %v1760_v3  ;;  %v1793_v54 = vand.u32 2147483648, %v4194_v39  ;;  %v1791_v31 = vand.u32 2147483647, %v4194_v39  ;;  %vm4235_vm1 = vmor %vm1772_vm15, %vm1773_vm12 }
 0x165   : > { %3340 = vpow2.f32 %v1519_v63  ;;  %v1189_v5 = vpop.f32.mrf.mxu2  ;;  %v2078_v1 = vmul.f32 %v1765_v43, %v4110_v32  ;;  %v1769_v22 = vsub.f32 1.0, %v1768_v37  ;;  %v4211_v9 = vadd.f32 %v3897_v6, %v1406_v12 }
 0x166   : > { %v1245_v36 = vadd.f32 %v1189_v5, %v1082_v16  ;;  %v1084_v62 = vadd.f32 %v1083_v27, %v3833_v4  ;;  %v1778_v4 = vand.u32 2147483648, %v4172_v28  ;;  %vm1787_vm14 = vweird.f32 %v4194_v39 }
 0x167   : > { %v1474_v60 = vsub.f32 0.0, %v4211_v9  ;;  %v1770_v8 = vmul.f32 %v4189_v26, %v1769_v22  ;;  %v2104_v32 = vpack.c.bf16 %v2078_v1, %v2077_v41  ;;  %v1776_v56 = vand.u32 2147483647, %v4172_v28 }
 0x168   : > { %v1794_v63 = vor.u32 1.1754944e-38, %v1793_v54  ;;  %vm1792_vm2 = vcmp.eq.f32.partialorder %v1791_v31, 8.507059e+37  ;;  %v1779_v29 = vor.u32 1.1754944e-38, %v1778_v4 }
 0x169   : > { %v1521_v21 = vmul.f32 1.442695, %v1474_v60  ;;  %v1771_v59 = vadd.f32 %v4189_v26, %v1770_v8  ;;  %vm1777_vm3 = vcmp.eq.f32.partialorder %v1776_v56, 8.507059e+37 }
 0x16a   : > { %v3339_v10 = vpop.eup %3338  ;;  %v1351_v23 = vpop.f32.mrf.mxu3 }
 0x16b   : > { %v3341_v34 = vpop.eup %3340  ;;  %v1783_v33 = vmul.f32 %v3339_v10, %v4194_v39  ;;  %v1407_v51 = vadd.f32 %v1351_v23, %v1245_v36  ;;  %vm1788_vm11 = vweird.f32 %v3339_v10  ;;  %v1775_v39 = vsel %vm4235_vm1, %v4189_v26, %v1771_v59 }
 0x16c   : > { %v4217_v25 = vadd.f32 1.0, %v3341_v34  ;;  %v1086_v30 = vpop.f32.mrf.mxu1  ;;  %vm1789_vm0 = vmor %vm1787_vm14, %vm1788_vm11  ;;  %v1780_v1 = vsel %vm1777_vm3, %v1779_v29, %v1775_v39 }
 0x16d   : > { %v1784_v13 = vsub.f32 1.0, %v1783_v33  ;;  %v4220_v47 = vadd.f32 %v3897_v6, %v1407_v51  ;;  %v1191_v20 = vpop.f32.mrf.mxu2  ;;  %3234 = vmatmul.msk.bf16.gmra.mxu0 %vm2135_vm13, %v2104_v32  ;;  %v1087_v12 = vadd.f32 %v1086_v30, %v3842_v40 }
 0x16e   : > { %3342 = vrcp.f32 %v4217_v25  ;;  %v1246_v17 = vadd.f32 %v1191_v20, %v1084_v62  ;;  %vm1802_vm7 = vweird.f32 %v4217_v25  ;;  %v1806_v3 = vand.u32 2147483647, %v4217_v25 }
 0x16f   : > { %v1785_v15 = vmul.f32 %v3339_v10, %v1784_v13  ;;  %3344 = vpow2.f32 %v1521_v21  ;;  %v1475_v2 = vsub.f32 0.0, %v4220_v47  ;;  %v4259_v21 = vld [vmem:[%s5418_s2] ss:$0 sm:$0xff] }
 0x170   : > { %vm1807_vm11 = vcmp.eq.f32.partialorder %v1806_v3, 8.507059e+37 }
 0x171   : > { %v1786_v24 = vadd.f32 %v3339_v10, %v1785_v15  ;;  %v1523_v42 = vmul.f32 1.442695, %v1475_v2  ;;  %v1808_v15 = vand.u32 2147483648, %v4217_v25 }
 0x172   : > { %v1353_v18 = vpop.f32.mrf.mxu3 }
 0x173   : > { %v1790_v44 = vsel %vm1789_vm0, %v3339_v10, %v1786_v24  ;;  %3346 = vpow2.f32 %v1523_v42  ;;  %v1408_v11 = vadd.f32 %v1353_v18, %v1246_v17 }
 0x174   : > { %v4239_v37 = vpop.eup %3342  ;;  %v1088_v27 = vpop.f32.mrf.mxu1  ;;  %v1795_v43 = vsel %vm1792_vm2, %v1794_v63, %v1790_v44 }
 0x175   : > { %v3345_v28 = vpop.eup %3344  ;;  %v4245_v16 = vadd.f32 %v3897_v6, %v1408_v11  ;;  %v1798_v5 = vmul.f32 %v4239_v37, %v4217_v25  ;;  %v1194_v36 = vpop.f32.mrf.mxu2  ;;  %v2080_v10 = vmul.f32 %v1795_v43, %v4161_v53  ;;  %v2079_v6 = vmul.f32 %v1780_v1, %v4129_v14 }
 0x176   : > { %v1570_v19 = vadd.f32 1.0, %v3345_v28  ;;  %v1247_v26 = vadd.f32 %v1194_v36, %v1087_v12  ;;  %v1089_v54 = vadd.f32 %v1088_v27, %v3853_v46  ;;  %vm1803_vm5 = vweird.f32 %v4239_v37 }
 0x177   : > { %v1476_v22 = vsub.f32 0.0, %v4245_v16  ;;  %v1799_v23 = vsub.f32 1.0, %v1798_v5  ;;  %v2105_v51 = vpack.c.bf16 %v2080_v10, %v2079_v6  ;;  %vm4280_vm8 = vmor %vm1802_vm7, %vm1803_vm5  ;;  %v1809_v43 = vor.u32 1.1754944e-38, %v1808_v15 }
 0x178   : > { %3348 = vrcp.f32 %v1570_v19  ;;  %v1823_v24 = vand.u32 2147483648, %v1570_v19  ;;  %v1821_v46 = vand.u32 2147483647, %v1570_v19  ;;  %vm1817_vm9 = vweird.f32 %v1570_v19 }
 0x179   : > { %v3347_v41 = vpop.eup %3346  ;;  %v1525_v60 = vmul.f32 1.442695, %v1476_v22  ;;  %v1800_v14 = vmul.f32 %v4239_v37, %v1799_v23 }
 0x17a   : > { %v4253_v34 = vadd.f32 1.0, %v3347_v41  ;;  %v1356_v40 = vpop.f32.mrf.mxu3  ;;  %v1824_v29 = vor.u32 1.1754944e-38, %v1823_v24  ;;  %vm1822_vm4 = vcmp.eq.f32.partialorder %v1821_v46, 8.507059e+37 }
 0x17b   : > { %3350 = vpow2.f32 %v1525_v60  ;;  %v1409_v33 = vadd.f32 %v1356_v40, %v1247_v26  ;;  %v1801_v4 = vadd.f32 %v4239_v37, %v1800_v14 }
 0x17c   : > { %3352 = vrcp.f32 %v4253_v34  ;;  %v1091_v8 = vpop.f32.mrf.mxu1  ;;  %vm1832_vm0 = vweird.f32 %v4253_v34 }
 0x17d   : > { %v4262_v53 = vadd.f32 %v4259_v21, %v1409_v33  ;;  %v1196_v30 = vpop.f32.mrf.mxu2  ;;  %3235 = vmatmul.msk.bf16.gmra.mxu0 %vm2135_vm13, %v2105_v51  ;;  %v1805_v28 = vsel %vm4280_vm8, %v4239_v37, %v1801_v4  ;;  %v1092_v22 = vadd.f32 %v1091_v8, %v3862_v49  ;;  %v1836_v4 = vand.u32 2147483647, %v4253_v34 }
 0x17e   : > { %v3349_v32 = vpop.eup %3348  ;;  %v1248_v59 = vadd.f32 %v1196_v30, %v1089_v54  ;;  %v1810_v26 = vsel %vm1807_vm11, %v1809_v43, %v1805_v28  ;;  %v4335_v28 = vld [vmem:[%s5420_s4] ss:$0 sm:$0xff] }
 0x17f   : > { %v1813_v13 = vmul.f32 %v3349_v32, %v1570_v19  ;;  %v1477_v62 = vsub.f32 0.0, %v4262_v53  ;;  %vm1818_vm6 = vweird.f32 %v3349_v32  ;;  %v2081_v51 = vmul.f32 %v1810_v26, %v4179_v57 }
 0x180   : > { %vm1819_vm10 = vmor %vm1817_vm9, %vm1818_vm6  ;;  %vm1837_vm5 = vcmp.eq.f32.partialorder %v1836_v4, 8.507059e+37 }
 0x181   : > { %v3351_v20 = vpop.eup %3350  ;;  %v1814_v2 = vsub.f32 1.0, %v1813_v13  ;;  %v1527_v17 = vmul.f32 1.442695, %v1477_v62 }
 0x182   : > { %v4269_v31 = vpop.eup %3352  ;;  %v4273_v42 = vadd.f32 1.0, %v3351_v20  ;;  %v1358_v56 = vpop.f32.mrf.mxu3 }
 0x183   : > { %v1815_v18 = vmul.f32 %v3349_v32, %v1814_v2  ;;  %3354 = vpow2.f32 %v1527_v17  ;;  %v1828_v44 = vmul.f32 %v4269_v31, %v4253_v34  ;;  %v1410_v27 = vadd.f32 %v1358_v56, %v1248_v59 }
 0x184   : > { %3356 = vrcp.f32 %v4273_v42  ;;  %v1093_v63 = vpop.f32.mrf.mxu1  ;;  %v1853_v54 = vand.u32 2147483648, %v4273_v42  ;;  %vm1833_vm14 = vweird.f32 %v4269_v31  ;;  %v1851_v57 = vand.u32 2147483647, %v4273_v42 }
 0x185   : > { %v1816_v39 = vadd.f32 %v3349_v32, %v1815_v18  ;;  %v1199_v25 = vpop.f32.mrf.mxu2  ;;  %v4288_v5 = vadd.f32 %v4259_v21, %v1410_v27  ;;  %v1829_v1 = vsub.f32 1.0, %v1828_v44  ;;  %v1094_v14 = vadd.f32 %v1093_v63, %v3870_v52  ;;  %vm4319_vm2 = vmor %vm1832_vm0, %vm1833_vm14 }
 0x186   : > { %v1249_v6 = vadd.f32 %v1199_v25, %v1092_v22  ;;  %v1838_v52 = vand.u32 2147483648, %v4253_v34  ;;  %vm1847_vm15 = vweird.f32 %v4273_v42  ;;  %v1854_v44 = vor.u32 1.1754944e-38, %v1853_v54 }
 0x187   : > { %v1820_v12 = vsel %vm1819_vm10, %v3349_v32, %v1816_v39  ;;  %v1478_v10 = vsub.f32 0.0, %v4288_v5  ;;  %v1830_v32 = vmul.f32 %v4269_v31, %v1829_v1  ;;  %vm1852_vm3 = vcmp.eq.f32.partialorder %v1851_v57, 8.507059e+37 }
 0x188   : > { %v1825_v36 = vsel %vm1822_vm4, %v1824_v29, %v1820_v12  ;;  %v1839_v29 = vor.u32 1.1754944e-38, %v1838_v52 }
 0x189   : > { %v3355_v19 = vpop.eup %3354  ;;  %v2082_v37 = vmul.f32 %v1825_v36, %v4211_v9  ;;  %v1529_v33 = vmul.f32 1.442695, %v1478_v10  ;;  %v1831_v15 = vadd.f32 %v4269_v31, %v1830_v32 }
 0x18a   : > { %v3357_v41 = vpop.eup %3356  ;;  %v4293_v60 = vadd.f32 1.0, %v3355_v19  ;;  %v1361_v23 = vpop.f32.mrf.mxu3 }
 0x18b   : > { %v1843_v40 = vmul.f32 %v3357_v41, %v4273_v42  ;;  %v1411_v30 = vadd.f32 %v1361_v23, %v1249_v6  ;;  %v2106_v9 = vpack.c.bf16 %v2082_v37, %v2081_v51  ;;  %vm1848_vm12 = vweird.f32 %v3357_v41 }
 0x18c   : > { %3358 = vrcp.f32 %v4293_v60  ;;  %v1096_v49 = vpop.f32.mrf.mxu1  ;;  %vm4314_vm1 = vmor %vm1847_vm15, %vm1848_vm12  ;;  %v1835_v11 = vsel %vm4319_vm2, %v4269_v31, %v1831_v15  ;;  %v1866_v51 = vand.u32 2147483647, %v4293_v60  ;;  %vm1862_vm7 = vweird.f32 %v4293_v60 }
 0x18d   : > { %v1844_v8 = vsub.f32 1.0, %v1843_v40  ;;  %3360 = vpow2.f32 %v1529_v33  ;;  %v1201_v13 = vpop.f32.mrf.mxu2  ;;  %v4305_v2 = vadd.f32 %v4259_v21, %v1411_v30  ;;  %3236 = vmatmul.msk.bf16.gmra.mxu0 %vm2135_vm13, %v2106_v9  ;;  %v1097_v31 = vadd.f32 %v1096_v49, %v3879_v58 }
 0x18e   : > { %v1250_v20 = vadd.f32 %v1201_v13, %v1094_v14  ;;  %v1840_v19 = vsel %vm1837_vm5, %v1839_v29, %v1835_v11  ;;  %vm4374_vm9 = vcmp.eq.f32.partialorder %v1866_v51, 8.507059e+37 }
 0x18f   : > { %v1845_v62 = vmul.f32 %v3357_v41, %v1844_v8  ;;  %v1479_v56 = vsub.f32 0.0, %v4305_v2  ;;  %v2083_v40 = vmul.f32 %v1840_v19, %v4220_v47 }
 0x191   : > { %v1846_v17 = vadd.f32 %v3357_v41, %v1845_v62  ;;  %v1531_v27 = vmul.f32 1.442695, %v1479_v56  ;;  %v1868_v62 = vand.u32 2147483648, %v4293_v60 }
 0x192   : > { %v4310_v59 = vpop.eup %3358  ;;  %v1363_v18 = vpop.f32.mrf.mxu3 }
 0x193   : > { %v3361_v46 = vpop.eup %3360  ;;  %v1850_v42 = vsel %vm4314_vm1, %v3357_v41, %v1846_v17  ;;  %v1858_v63 = vmul.f32 %v4310_v59, %v4293_v60  ;;  %v1412_v34 = vadd.f32 %v1363_v18, %v1250_v20  ;;  %vm1863_vm6 = vweird.f32 %v4310_v59 }
 0x194   : > { %v4330_v39 = vadd.f32 1.0, %v3361_v46  ;;  %v1855_v25 = vsel %vm1852_vm3, %v1854_v44, %v1850_v42  ;;  %v1098_v36 = vpop.f32.mrf.mxu1  ;;  %vm4363_vm8 = vmor %vm1862_vm7, %vm1863_vm6 }
 0x195   : > { %v1859_v43 = vsub.f32 1.0, %v1858_v63  ;;  %v4338_v12 = vadd.f32 %v4259_v21, %v1412_v34  ;;  %v1204_v22 = vpop.f32.mrf.mxu2  ;;  %v2084_v10 = vmul.f32 %v1855_v25, %v4245_v16  ;;  %v1099_v13 = vadd.f32 %v1098_v36, %v3885_v61 }
 0x196   : > { %3362 = vrcp.f32 %v4330_v39  ;;  %v2193_v1 = vpop.f32.mrf.mxu0  ;;  %v1251_v6 = vadd.f32 %v1204_v22, %v1097_v31  ;;  %v1881_v54 = vand.u32 2147483647, %v4330_v39  ;;  %v1883_v46 = vand.u32 2147483648, %v4330_v39 }
 0x197   : > { %3364 = vpow2.f32 %v1531_v27  ;;  %v1480_v26 = vsub.f32 0.0, %v4338_v12  ;;  %v1860_v41 = vmul.f32 %v4310_v59, %v1859_v43  ;;  %v4346_v37 = vadd.f32 %v4335_v28, %v2193_v1 }
 0x198   : > { %v2107_v8 = vpack.c.bf16 %v2084_v10, %v2083_v40  ;;  %v1869_v34 = vor.u32 1.1754944e-38, %v1868_v62  ;;  %vm1877_vm4 = vweird.f32 %v4330_v39  ;;  %vm4383_vm11 = vcmp.eq.f32.partialorder %v1881_v54, 8.507059e+37 }
 0x199   : > { %v1533_v23 = vmul.f32 1.442695, %v1480_v26  ;;  %v2273_v33 = vsub.f32 0.0, %v4346_v37  ;;  %v1861_v16 = vadd.f32 %v4310_v59, %v1860_v41  ;;  %v1884_v1 = vor.u32 1.1754944e-38, %v1883_v46 }
 0x19a   : > { %v1366_v58 = vpop.f32.mrf.mxu3 }
 0x19b   : > { %3366 = vpow2.f32 %v1533_v23  ;;  %v1413_v32 = vadd.f32 %v1366_v58, %v1251_v6  ;;  %v2305_v14 = vmul.f32 1.442695, %v2273_v33  ;;  %v1865_v60 = vsel %vm4363_vm8, %v4310_v59, %v1861_v16 }
 0x19c   : > { %v3363_v49 = vpop.eup %3362  ;;  %v1101_v56 = vpop.f32.mrf.mxu1  ;;  %v1870_v31 = vsel %vm4374_vm9, %v1869_v34, %v1865_v60 }
 0x19d   : > { %v3365_v30 = vpop.eup %3364  ;;  %v1873_v9 = vmul.f32 %v3363_v49, %v4330_v39  ;;  %v4356_v47 = vadd.f32 %v4259_v21, %v1413_v32  ;;  %3368 = vpow2.f32 %v2305_v14  ;;  %v1206_v57 = vpop.f32.mrf.mxu2  ;;  %3237 = vmatmul.msk.bf16.gmra.mxu0 %vm2135_vm13, %v2107_v8  ;;  %vm1878_vm10 = vweird.f32 %v3363_v49 }
 0x19e   : > { %v4361_v20 = vadd.f32 1.0, %v3365_v30  ;;  %v2195_v15 = vpop.f32.mrf.mxu0  ;;  %v1252_v61 = vadd.f32 %v1206_v57, %v1099_v13  ;;  %vm1879_vm12 = vmor %vm1877_vm4, %vm1878_vm10  ;;  %v2085_v33 = vmul.f32 %v1870_v31, %v4262_v53  ;;  %v1102_v32 = vadd.f32 %v1101_v56, %v3829_v35 }
 0x19f   : > { %v1874_v17 = vsub.f32 1.0, %v1873_v9  ;;  %v1481_v4 = vsub.f32 0.0, %v4356_v47  ;;  %v4369_v24 = vadd.f32 %v4335_v28, %v2195_v15 }
 0x1a0   : > { %3370 = vrcp.f32 %v4361_v20  ;;  %v1898_v22 = vand.u32 2147483648, %v4361_v20  ;;  %v1896_v40 = vand.u32 2147483647, %v4361_v20  ;;  %vm1892_vm14 = vweird.f32 %v4361_v20 }
 0x1a1   : > { %v3367_v3 = vpop.eup %3366  ;;  %v1875_v42 = vmul.f32 %v3363_v49, %v1874_v17  ;;  %v1535_v44 = vmul.f32 1.442695, %v1481_v4  ;;  %v2274_v63 = vsub.f32 0.0, %v4369_v24 }
 0x1a2   : > { %v4387_v11 = vadd.f32 1.0, %v3367_v3  ;;  %v1368_v27 = vpop.f32.mrf.mxu3  ;;  %v1899_v14 = vor.u32 1.1754944e-38, %v1898_v22  ;;  %vm4420_vm0 = vcmp.eq.f32.partialorder %v1896_v40, 8.507059e+37 }
 0x1a3   : > { %v1876_v29 = vadd.f32 %v3363_v49, %v1875_v42  ;;  %3372 = vpow2.f32 %v1535_v44  ;;  %v2307_v25 = vmul.f32 1.442695, %v2274_v63  ;;  %v1414_v43 = vadd.f32 %v1368_v27, %v1252_v61  ;;  %v3369_v36 = vpop.eup %3368 }
 0x1a4   : > { %3374 = vrcp.f32 %v4387_v11  ;;  %v4393_v19 = vadd.f32 1.0, %v3369_v36  ;;  %v1103_v9 = vpop.f32.mrf.mxu1  ;;  %v1911_v62 = vand.u32 2147483647, %v4387_v11  ;;  %v1913_v53 = vand.u32 2147483648, %v4387_v11 }
 0x1a5   : > { %v1880_v39 = vsel %vm1879_vm12, %v3363_v49, %v1876_v29  ;;  %3376 = vpow2.f32 %v2307_v25  ;;  %v4396_v26 = vadd.f32 %v4259_v21, %v1414_v43  ;;  %v1209_v49 = vpop.f32.mrf.mxu2  ;;  %vm1907_vm1 = vweird.f32 %v4387_v11 }
 0x1a6   : > { %v4398_v10 = vpop.eup %3370  ;;  %v1885_v41 = vsel %vm4383_vm11, %v1884_v1, %v1880_v39  ;;  %v2198_v6 = vpop.f32.mrf.mxu0  ;;  %3378 = vrcp.f32 %v4393_v19  ;;  %v2412_v17 = vand.u32 2147483648, %v4393_v19  ;;  %v1253_v56 = vadd.f32 %v1209_v49, %v1102_v32 }
 0x1a7   : > { %v1888_v23 = vmul.f32 %v4398_v10, %v4361_v20  ;;  %v2086_v58 = vmul.f32 %v1885_v41, %v4288_v5  ;;  %v1482_v51 = vsub.f32 0.0, %v4396_v26  ;;  %v4412_v30 = vadd.f32 %v4335_v28, %v2198_v6 }
 0x1a8   : > { %vm1893_vm15 = vweird.f32 %v4398_v10  ;;  %vm4434_vm2 = vcmp.eq.f32.partialorder %v1911_v62, 8.507059e+37  ;;  %v1914_v44 = vor.u32 1.1754944e-38, %v1913_v53  ;;  %v2410_v27 = vand.u32 2147483647, %v4393_v19 }
 0x1a9   : > { %v3373_v8 = vpop.eup %3372  ;;  %v1889_v16 = vsub.f32 1.0, %v1888_v23  ;;  %v1537_v54 = vmul.f32 1.442695, %v1482_v51  ;;  %v2108_v4 = vpack.c.bf16 %v2086_v58, %v2085_v33  ;;  %v2275_v61 = vsub.f32 0.0, %v4412_v30  ;;  %vm4446_vm5 = vmor %vm1892_vm14, %vm1893_vm15 }
 0x1aa   : > { %v3375_v13 = vpop.eup %3374  ;;  %v4416_v5 = vadd.f32 1.0, %v3373_v8  ;;  %v1371_v34 = vpop.f32.mrf.mxu3  ;;  %vm2406_vm6 = vweird.f32 %v4393_v19  ;;  %v2413_v36 = vor.u32 1.1754944e-38, %v2412_v17  ;;  %v1104_v31 = vadd.f32 %v1103_v9, %v3837_v38 }
 0x1ab   : > { %v3377_v15 = vpop.eup %3376  ;;  %v1890_v35 = vmul.f32 %v4398_v10, %v1889_v16  ;;  %v1903_v52 = vmul.f32 %v3375_v13, %v4387_v11  ;;  %vm1908_vm3 = vweird.f32 %v3375_v13  ;;  %v2309_v39 = vmul.f32 1.442695, %v2275_v61 }
 0x1ac   : > { %3380 = vrcp.f32 %v4416_v5  ;;  %v4428_v60 = vpop.eup %3378  ;;  %v4431_v3 = vadd.f32 1.0, %v3377_v15  ;;  %v1415_v41 = vadd.f32 %v1371_v34, %v1253_v56  ;;  %vm1909_vm7 = vmor %vm1907_vm1, %vm1908_vm3  ;;  %v1926_v23 = vand.u32 2147483647, %v4416_v5  ;;  %v1106_v32 = vpop.f32.mrf.mxu1 }
 0x1ad   : > { %v1891_v18 = vadd.f32 %v4398_v10, %v1890_v35  ;;  %v1904_v46 = vsub.f32 1.0, %v1903_v52  ;;  %3382 = vpow2.f32 %v1537_v54  ;;  %v2402_v63 = vmul.f32 %v4428_v60, %v4393_v19  ;;  %3238 = vmatmul.msk.bf16.gmra.mxu0 %vm2135_vm13, %v2108_v4  ;;  %v1211_v33 = vpop.f32.mrf.mxu2 }
 0x1ae   : > { %3384 = vrcp.f32 %v4431_v3  ;;  %v2200_v29 = vpop.f32.mrf.mxu0  ;;  %v1928_v40 = vand.u32 2147483648, %v4416_v5  ;;  %vm2407_vm8 = vweird.f32 %v4428_v60  ;;  %vm4468_vm9 = vcmp.eq.f32.partialorder %v2410_v27, 8.507059e+37 }
 0x1af   : > { %v1905_v59 = vmul.f32 %v3375_v13, %v1904_v46  ;;  %v2403_v43 = vsub.f32 1.0, %v2402_v63  ;;  %v1895_v1 = vsel %vm4446_vm5, %v4398_v10, %v1891_v18  ;;  %v4465_v38 = vadd.f32 %v4335_v28, %v2200_v29  ;;  %vm4501_vm11 = vmor %vm2406_vm6, %vm2407_vm8 }
 0x1b0   : > { %3386 = vpow2.f32 %v2309_v39  ;;  %v1900_v49 = vsel %vm4420_vm0, %v1899_v14, %v1895_v1  ;;  %v4484_v53 = vadd.f32 %v4259_v21, %v1415_v41  ;;  %v1254_v15 = vadd.f32 %v1211_v33, %v1104_v31 }
 0x1b1   : > { %v1906_v22 = vadd.f32 %v3375_v13, %v1905_v59  ;;  %v2404_v6 = vmul.f32 %v4428_v60, %v2403_v43  ;;  %v2276_v54 = vsub.f32 0.0, %v4465_v38  ;;  %vm1922_vm10 = vweird.f32 %v4416_v5 }
 0x1b2   : > { %v4456_v20 = vpop.eup %3380  ;;  %v1929_v35 = vor.u32 1.1754944e-38, %v1928_v40  ;;  %vm2421_vm4 = vweird.f32 %v4431_v3  ;;  %v2425_v52 = vand.u32 2147483647, %v4431_v3  ;;  %v2427_v17 = vand.u32 2147483648, %v4431_v3  ;;  %v1373_v42 = vpop.f32.mrf.mxu3 }
 0x1b3   : > { %v3383_v10 = vpop.eup %3382  ;;  %v1910_v58 = vsel %vm1909_vm7, %v3375_v13, %v1906_v22  ;;  %v1918_v11 = vmul.f32 %v4456_v20, %v4416_v5  ;;  %v2405_v16 = vadd.f32 %v4428_v60, %v2404_v6  ;;  %v2087_v4 = vmul.f32 %v1900_v49, %v4305_v2 }
 0x1b4   : > { %v1915_v8 = vsel %vm4434_vm2, %v1914_v44, %v1910_v58  ;;  %v4479_v9 = vadd.f32 1.0, %v3383_v10  ;;  %v4481_v13 = vpop.eup %3384  ;;  %vm1923_vm12 = vweird.f32 %v4456_v20  ;;  %vm4506_vm14 = vcmp.eq.f32.partialorder %v1926_v23, 8.507059e+37  ;;  %v1108_v33 = vpop.f32.mrf.mxu1 }
 0x1b5   : > { %v1919_v62 = vsub.f32 1.0, %v1918_v11  ;;  %v2417_v14 = vmul.f32 %v4481_v13, %v4431_v3  ;;  %v2088_v61 = vmul.f32 %v1915_v8, %v4338_v12  ;;  %v2409_v2 = vsel %vm4501_vm11, %v4428_v60, %v2405_v16  ;;  %vm4531_vm0 = vmor %vm1922_vm10, %vm1923_vm12  ;;  %v1214_v58 = vpop.f32.mrf.mxu2 }
 0x1b6   : > { %3388 = vrcp.f32 %v4479_v9  ;;  %v3387_v44 = vpop.eup %3386  ;;  %v1483_v12 = vsub.f32 0.0, %v4484_v53  ;;  %v2311_v19 = vmul.f32 1.442695, %v2276_v54  ;;  %v1416_v63 = vadd.f32 %v1373_v42, %v1254_v15 }
 0x1b7   : > { %v1920_v57 = vmul.f32 %v4456_v20, %v1919_v62  ;;  %v2418_v46 = vsub.f32 1.0, %v2417_v14  ;;  %vm2422_vm15 = vweird.f32 %v4481_v13  ;;  %v4517_v27 = vadd.f32 1.0, %v3387_v44 }
 0x1b8   : > { %v1941_v29 = vand.u32 2147483647, %v4479_v9  ;;  %v1539_v25 = vmul.f32 1.442695, %v1483_v12  ;;  %3390 = vpow2.f32 %v2311_v19  ;;  %v4521_v43 = vadd.f32 %v4259_v21, %v1416_v63  ;;  %vm4553_vm3 = vmor %vm2421_vm4, %vm2422_vm15 }
 0x1b9   : > { %v1921_v34 = vadd.f32 %v4456_v20, %v1920_v57  ;;  %v2419_v59 = vmul.f32 %v4481_v13, %v2418_v46  ;;  %v2109_v31 = vpack.c.bf16 %v2088_v61, %v2087_v4  ;;  %v2414_v1 = vsel %vm4468_vm9, %v2413_v36, %v2409_v2 }
 0x1ba   : > { %3392 = vrcp.f32 %v4517_v27  ;;  %vm4535_vm1 = vcmp.eq.f32.partialorder %v2425_v52, 8.507059e+37  ;;  %v2428_v6 = vor.u32 1.1754944e-38, %v2427_v17  ;;  %v1943_v36 = vand.u32 2147483648, %v4479_v9  ;;  %v2203_v40 = vpop.f32.mrf.mxu0 }
 0x1bb   : > { %v2420_v22 = vadd.f32 %v4481_v13, %v2419_v59  ;;  %v1925_v10 = vsel %vm4531_vm0, %v4456_v20, %v1921_v34  ;;  %vm1937_vm2 = vweird.f32 %v4479_v9  ;;  %3394 = vpow2.f32 %v1539_v25 }
 0x1bc   : > { %v3389_v60 = vpop.eup %3388  ;;  %v1484_v5 = vsub.f32 0.0, %v4521_v43  ;;  %v4547_v51 = vmul.f32 %v2414_v1, %v4346_v37  ;;  %vm4557_vm5 = vcmp.eq.f32.partialorder %v1941_v29, 8.507059e+37  ;;  %v2440_v8 = vand.u32 2147483647, %v4517_v27 }
 0x1bd   : > { %v1933_v23 = vmul.f32 %v3389_v60, %v4479_v9  ;;  %v2424_v37 = vsel %vm4553_vm3, %v4481_v13, %v2420_v22  ;;  %v1107_v62 = vadd.f32 %v1106_v32, %v3846_v7  ;;  %v4567_v3 = vadd.f32 %v4335_v28, %v2203_v40  ;;  %3239 = vmatmul.msk.bf16.gmra.mxu0 %vm2135_vm13, %v2109_v31  ;;  %v1376_v7 = vpop.f32.mrf.mxu3  ;;  %v1111_v31 = vpop.f32.mrf.mxu1 }
 0x1be   : > { %v1541_v16 = vmul.f32 1.442695, %v1484_v5  ;;  %v3391_v54 = vpop.eup %3390  ;;  %v1930_v15 = vsel %vm4506_vm14, %v1929_v35, %v1925_v10  ;;  %vm1938_vm6 = vweird.f32 %v3389_v60  ;;  %v1944_v57 = vor.u32 1.1754944e-38, %v1943_v36  ;;  %v1216_v39 = vpop.f32.mrf.mxu2 }
 0x1bf   : > { %v1934_v49 = vsub.f32 1.0, %v1933_v23  ;;  %v2442_v17 = vand.u32 2147483648, %v4517_v27  ;;  %v4573_v4 = vadd.f32 1.0, %v3391_v54  ;;  %v1255_v13 = vadd.f32 %v1214_v58, %v1107_v62  ;;  %vm1939_vm7 = vmor %vm1937_vm2, %vm1938_vm6 }
 0x1c0   : > { %v3393_v52 = vpop.eup %3392  ;;  %3396 = vpow2.f32 %v1541_v16  ;;  %v2429_v32 = vsel %vm4535_vm1, %v2428_v6, %v2424_v37  ;;  %v2277_v18 = vsub.f32 0.0, %v4567_v3  ;;  %v4580_v46 = vmul.f32 %v1930_v15, %v4356_v47 }
 0x1c1   : > { %v1935_v14 = vmul.f32 %v3389_v60, %v1934_v49  ;;  %v2432_v56 = vmul.f32 %v3393_v52, %v4517_v27  ;;  %v3395_v35 = vpop.eup %3394  ;;  %vm2436_vm8 = vweird.f32 %v4517_v27  ;;  %vm4585_vm9 = vcmp.eq.f32.partialorder %v2440_v8, 8.507059e+37 }
 0x1c2   : > { %3398 = vrcp.f32 %v4573_v4  ;;  %v4590_v12 = vadd.f32 1.0, %v3395_v35  ;;  %v2313_v19 = vmul.f32 1.442695, %v2277_v18  ;;  %v2205_v63 = vpop.f32.mrf.mxu0  ;;  %v2882_v47 = vmul.f32 %v2429_v32, %v4369_v24 }
 0x1c3   : > { %v1936_v61 = vadd.f32 %v3389_v60, %v1935_v14  ;;  %v2433_v2 = vsub.f32 1.0, %v2432_v56  ;;  %v2443_v34 = vor.u32 1.1754944e-38, %v2442_v17  ;;  %v1417_v59 = vadd.f32 %v1376_v7, %v1255_v13 }
 0x1c4   : > { %vm2437_vm10 = vweird.f32 %v3393_v52  ;;  %3400 = vrcp.f32 %v4590_v12  ;;  %v1109_v25 = vadd.f32 %v1108_v33, %v3857_v48  ;;  %v2457_v22 = vand.u32 2147483648, %v4573_v4 }
 0x1c5   : > { %v1940_v44 = vsel %vm1939_vm7, %v3389_v60, %v1936_v61  ;;  %v2434_v29 = vmul.f32 %v3393_v52, %v2433_v2  ;;  %3402 = vpow2.f32 %v2313_v19  ;;  %v4600_v24 = vadd.f32 %v4259_v21, %v1417_v59  ;;  %vm2438_vm4 = vmor %vm2436_vm8, %vm2437_vm10  ;;  %v1378_v20 = vpop.f32.mrf.mxu3 }
 0x1c6   : > { %v1945_v9 = vsel %vm4557_vm5, %v1944_v57, %v1940_v44  ;;  %v3397_v60 = vpop.eup %3396  ;;  %v2455_v6 = vand.u32 2147483647, %v4573_v4  ;;  %v4606_v36 = vadd.f32 %v4335_v28, %v2205_v63  ;;  %v2913_v40 = vmax.f32 %v4547_v51, %v2882_v47 }
 0x1c7   : > { %v2090_v1 = vmul.f32 %v1945_v9, %v4396_v26  ;;  %v2435_v41 = vadd.f32 %v3393_v52, %v2434_v29  ;;  %v4603_v23 = vadd.f32 1.0, %v3397_v60  ;;  %v2951_v26 = vadd.f32 %v2882_v47, %v4547_v51  ;;  %v1219_v47 = vpop.f32.mrf.mxu2 }
 0x1c8   : > { %v4608_v48 = vpop.eup %3398  ;;  %v1485_v33 = vsub.f32 0.0, %v4600_v24  ;;  %v4617_v10 = vadd.f32 %v1111_v31, %v3866_v50  ;;  %vm2451_vm11 = vweird.f32 %v4573_v4  ;;  %v2458_v27 = vor.u32 1.1754944e-38, %v2457_v22 }
 0x1c9   : > { %v2439_v5 = vsel %vm2438_vm4, %v3393_v52, %v2435_v41  ;;  %v2447_v58 = vmul.f32 %v4608_v48, %v4573_v4  ;;  %3404 = vrcp.f32 %v4603_v23  ;;  %v2110_v11 = vpack.c.bf16 %v2090_v1, %v4580_v46 }
 0x1ca   : > { %v2444_v51 = vsel %vm4585_vm9, %v2443_v34, %v2439_v5  ;;  %v1256_v49 = vadd.f32 %v1216_v39, %v1109_v25  ;;  %v3401_v8 = vpop.eup %3400  ;;  %vm4627_vm12 = vcmp.eq.f32.partialorder %v2455_v6, 8.507059e+37  ;;  %v1543_v62 = vmul.f32 1.442695, %v1485_v33  ;;  %v2208_v15 = vpop.f32.mrf.mxu0 }
 0x1cb   : > { %v2883_v50 = vmul.f32 %v2444_v51, %v4412_v30  ;;  %v2448_v37 = vsub.f32 1.0, %v2447_v58  ;;  %v2278_v54 = vsub.f32 0.0, %v4606_v36  ;;  %v3403_v14 = vpop.eup %3402  ;;  %v1948_v57 = vmul.f32 %v3401_v8, %v4590_v12 }
 0x1cc   : > { %vm1952_vm14 = vweird.f32 %v4590_v12  ;;  %v1956_v52 = vand.u32 2147483647, %v4590_v12  ;;  %vm2452_vm15 = vweird.f32 %v4608_v48  ;;  %v4641_v7 = vadd.f32 1.0, %v3403_v14 }
 0x1cd   : > { %v4636_v17 = vmax.f32 %v2883_v50, %v2913_v40  ;;  %v4638_v30 = vadd.f32 %v2951_v26, %v2883_v50  ;;  %v2449_v13 = vmul.f32 %v4608_v48, %v2448_v37  ;;  %v1949_v32 = vsub.f32 1.0, %v1948_v57  ;;  %3240 = vmatmul.msk.bf16.gmra.mxu0 %vm2135_vm13, %v2110_v11  ;;  %vm4656_vm2 = vmor %vm2451_vm11, %vm2452_vm15  ;;  %v1381_v26 = vpop.f32.mrf.mxu3  ;;  %v1113_v50 = vpop.f32.mrf.mxu1 }
 0x1ce   : > { %3406 = vpow2.f32 %v1543_v62  ;;  %v2315_v61 = vmul.f32 1.442695, %v2278_v54  ;;  %v1418_v56 = vadd.f32 %v1378_v20, %v1256_v49  ;;  %v1958_v35 = vand.u32 2147483648, %v4590_v12 }
 0x1cf   : > { %v3405_v18 = vpop.eup %3404  ;;  %v2450_v46 = vadd.f32 %v4608_v48, %v2449_v13  ;;  %v1971_v42 = vand.u32 2147483647, %v4603_v23  ;;  %3408 = vrcp.f32 %v4641_v7  ;;  %v1950_v44 = vmul.f32 %v3401_v8, %v1949_v32 }
 0x1d0   : > { %vm1953_vm0 = vweird.f32 %v3401_v8  ;;  %vm4648_vm1 = vcmp.eq.f32.partialorder %v1956_v52, 8.507059e+37  ;;  %v1963_v63 = vmul.f32 %v3405_v18, %v4603_v23  ;;  %v1973_v34 = vand.u32 2147483648, %v4603_v23 }
 0x1d1   : > { %v2454_v9 = vsel %vm4656_vm2, %v4608_v48, %v2450_v46  ;;  %3410 = vpow2.f32 %v2315_v61  ;;  %v4666_v59 = vadd.f32 %v4259_v21, %v1418_v56  ;;  %v1951_v29 = vadd.f32 %v3401_v8, %v1950_v44  ;;  %vm4672_vm3 = vmor %vm1952_vm14, %vm1953_vm0  ;;  %v1221_v56 = vpop.f32.mrf.mxu2 }
 0x1d2   : > { %v1964_v25 = vsub.f32 1.0, %v1963_v63  ;;  %v2470_v4 = vand.u32 2147483647, %v4641_v7  ;;  %v2472_v31 = vand.u32 2147483648, %v4641_v7  ;;  %v1959_v1 = vor.u32 1.1754944e-38, %v1958_v35  ;;  %v2210_v39 = vpop.f32.mrf.mxu0 }
 0x1d3   : > { %vm1967_vm5 = vweird.f32 %v4603_v23  ;;  %vm1968_vm6 = vweird.f32 %v3405_v18  ;;  %vm4677_vm7 = vcmp.eq.f32.partialorder %v1971_v42, 8.507059e+37  ;;  %v1955_v6 = vsel %vm4672_vm3, %v3401_v8, %v1951_v29 }
 0x1d4   : > { %v3407_v41 = vpop.eup %3406  ;;  %v2459_v12 = vsel %vm4627_vm12, %v2458_v27, %v2454_v9  ;;  %v1965_v48 = vmul.f32 %v3405_v18, %v1964_v25  ;;  %v1486_v40 = vsub.f32 0.0, %v4666_v59  ;;  %v1974_v5 = vor.u32 1.1754944e-38, %v1973_v34  ;;  %vm1969_vm10 = vmor %vm1967_vm5, %vm1968_vm6 }
 0x1d5   : > { %v3409_v33 = vpop.eup %3408  ;;  %vm2466_vm8 = vweird.f32 %v4641_v7  ;;  %v4687_v58 = vadd.f32 1.0, %v3407_v41  ;;  %v4690_v11 = vadd.f32 %v4335_v28, %v2208_v15  ;;  %v1960_v51 = vsel %vm4648_vm1, %v1959_v1, %v1955_v6  ;;  %v1383_v34 = vpop.f32.mrf.mxu3 }
 0x1d6   : > { %v1966_v49 = vadd.f32 %v3405_v18, %v1965_v48  ;;  %v2462_v20 = vmul.f32 %v3409_v33, %v4641_v7  ;;  %vm4695_vm9 = vcmp.eq.f32.partialorder %v2470_v4, 8.507059e+37  ;;  %v2473_v8 = vor.u32 1.1754944e-38, %v2472_v31 }
 0x1d7   : > { %v3411_v37 = vpop.eup %3410  ;;  %v2884_v16 = vmul.f32 %v2459_v12, %v4465_v38  ;;  %3412 = vrcp.f32 %v4687_v58  ;;  %v1257_v62 = vadd.f32 %v1219_v47, %v4617_v10  ;;  %v4706_v54 = vadd.f32 %v4335_v28, %v2210_v39 }
 0x1d8   : > { %v1970_v15 = vsel %vm1969_vm10, %v3405_v18, %v1966_v49  ;;  %v2463_v14 = vsub.f32 1.0, %v2462_v20  ;;  %v4708_v57 = vadd.f32 1.0, %v3411_v37  ;;  %v1545_v52 = vmul.f32 1.442695, %v1486_v40 }
 0x1d9   : > { %v2091_v13 = vmul.f32 %v1960_v51, %v4484_v53  ;;  %v1975_v38 = vsel %vm4677_vm7, %v1974_v5, %v1970_v15  ;;  %v2279_v23 = vsub.f32 0.0, %v4690_v11  ;;  %v1114_v32 = vadd.f32 %v1113_v50, %v3874_v55 }
 0x1da   : > { %v2092_v61 = vmul.f32 %v1975_v38, %v4521_v43  ;;  %v2464_v10 = vmul.f32 %v3409_v33, %v2463_v14  ;;  %vm2467_vm4 = vweird.f32 %v3409_v33  ;;  %3414 = vrcp.f32 %v4708_v57  ;;  %v2213_v46 = vpop.f32.mrf.mxu0 }
 0x1db   : > { %v2915_v18 = vmax.f32 %v2884_v16, %v4636_v17  ;;  %v2953_v35 = vadd.f32 %v4638_v30, %v2884_v16  ;;  %3416 = vpow2.f32 %v1545_v52  ;;  %v2317_v53 = vmul.f32 1.442695, %v2279_v23  ;;  %vm2468_vm11 = vmor %vm2466_vm8, %vm2467_vm4  ;;  %v1116_v16 = vpop.f32.mrf.mxu1 }
 0x1dc   : > { %v2111_v42 = vpack.c.bf16 %v2092_v61, %v2091_v13  ;;  %v2465_v44 = vadd.f32 %v3409_v33, %v2464_v10  ;;  %v1419_v2 = vadd.f32 %v1381_v26, %v1257_v62  ;;  %v2280_v19 = vsub.f32 0.0, %v4706_v54 }
 0x1dd   : > { %v4720_v55 = vpop.eup %3412  ;;  %vm1982_vm12 = vweird.f32 %v4687_v58  ;;  %v1986_v43 = vand.u32 2147483647, %v4687_v58  ;;  %3418 = vpow2.f32 %v2317_v53  ;;  %v1258_v17 = vadd.f32 %v1221_v56, %v1114_v32 }
 0x1de   : > { %v2469_v30 = vsel %vm2468_vm11, %v3409_v33, %v2465_v44  ;;  %v1978_v63 = vmul.f32 %v4720_v55, %v4687_v58  ;;  %v1988_v47 = vand.u32 2147483648, %v4687_v58  ;;  %v4730_v9 = vadd.f32 %v4259_v21, %v1419_v2  ;;  %3241 = vmatmul.msk.bf16.gmra.mxu0 %vm2135_vm13, %v2111_v42 }
 0x1df   : > { %v2474_v7 = vsel %vm4695_vm9, %v2473_v8, %v2469_v30  ;;  %v2485_v29 = vand.u32 2147483647, %v4708_v57  ;;  %v2319_v25 = vmul.f32 1.442695, %v2280_v19  ;;  %v1420_v4 = vadd.f32 %v1383_v34, %v1258_v17 }
 0x1e0   : > { %v3415_v31 = vpop.eup %3414  ;;  %v2885_v60 = vmul.f32 %v2474_v7, %v4567_v3  ;;  %v1979_v1 = vsub.f32 1.0, %v1978_v63  ;;  %v1487_v22 = vsub.f32 0.0, %v4730_v9  ;;  %v4739_v39 = vadd.f32 %v4335_v28, %v2213_v46 }
 0x1e1   : > { %v3417_v41 = vpop.eup %3416  ;;  %vm1983_vm14 = vweird.f32 %v4720_v55  ;;  %v2477_v6 = vmul.f32 %v3415_v31, %v4708_v57  ;;  %3420 = vpow2.f32 %v2319_v25  ;;  %v4744_v12 = vadd.f32 %v4259_v21, %v1420_v4 }
 0x1e2   : > { %v4746_v48 = vmax.f32 %v2885_v60, %v2915_v18  ;;  %v4748_v40 = vadd.f32 %v2953_v35, %v2885_v60  ;;  %v1980_v3 = vmul.f32 %v4720_v55, %v1979_v1  ;;  %v4751_v26 = vadd.f32 1.0, %v3417_v41  ;;  %v4755_v20 = vpop.f32.mrf.mxu0  ;;  %vm4770_vm1 = vmor %vm1982_vm12, %vm1983_vm14 }
 0x1e3   : > { %v3419_v33 = vpop.eup %3418  ;;  %v2478_v28 = vsub.f32 1.0, %v2477_v6  ;;  %v1547_v5 = vmul.f32 1.442695, %v1487_v22  ;;  %v1488_v51 = vsub.f32 0.0, %v4744_v12  ;;  %v2281_v49 = vsub.f32 0.0, %v4739_v39 }
 0x1e4   : > { %v1981_v21 = vadd.f32 %v4720_v55, %v1980_v3  ;;  %vm4758_vm15 = vcmp.eq.f32.partialorder %v1986_v43, 8.507059e+37  ;;  %v2487_v8 = vand.u32 2147483648, %v4708_v57  ;;  %3422 = vrcp.f32 %v4751_v26 }
 0x1e5   : > { %v2479_v50 = vmul.f32 %v3415_v31, %v2478_v28  ;;  %vm2482_vm0 = vweird.f32 %v3415_v31  ;;  %v4764_v37 = vadd.f32 1.0, %v3419_v33  ;;  %3424 = vpow2.f32 %v1547_v5 }
 0x1e6   : > { %v1989_v15 = vor.u32 1.1754944e-38, %v1988_v47  ;;  %vm2481_vm2 = vweird.f32 %v4708_v57  ;;  %v1549_v14 = vmul.f32 1.442695, %v1488_v51  ;;  %v2321_v52 = vmul.f32 1.442695, %v2281_v49  ;;  %v1224_v57 = vpop.f32.mrf.mxu2 }
 0x1e7   : > { %v3421_v13 = vpop.eup %3420  ;;  %v1985_v38 = vsel %vm4770_vm1, %v4720_v55, %v1981_v21  ;;  %v2480_v23 = vadd.f32 %v3415_v31, %v2479_v50  ;;  %vm2486_vm3 = vcmp.eq.f32.partialorder %v2485_v29, 8.507059e+37  ;;  %3426 = vrcp.f32 %v4764_v37  ;;  %vm2483_vm5 = vmor %vm2481_vm2, %vm2482_vm0 }
 0x1e8   : > { %v2488_v58 = vor.u32 1.1754944e-38, %v2487_v8  ;;  %v2001_v32 = vand.u32 2147483647, %v4751_v26  ;;  %v2003_v61 = vand.u32 2147483648, %v4751_v26  ;;  %v1117_v10 = vadd.f32 %v1116_v16, %v3883_v45 }
 0x1e9   : > { %v2484_v56 = vsel %vm2483_vm5, %v3415_v31, %v2480_v23  ;;  %v2502_v18 = vand.u32 2147483648, %v4764_v37  ;;  %v4783_v35 = vadd.f32 1.0, %v3421_v13  ;;  %3428 = vpow2.f32 %v1549_v14  ;;  %v1386_v31 = vpop.f32.mrf.mxu3 }
 0x1ea   : > { %v3423_v53 = vpop.eup %3422  ;;  %v1990_v46 = vsel %vm4758_vm15, %v1989_v15, %v1985_v38  ;;  %v2489_v42 = vsel %vm2486_vm3, %v2488_v58, %v2484_v56  ;;  %v2500_v44 = vand.u32 2147483647, %v4764_v37  ;;  %3430 = vpow2.f32 %v2321_v52  ;;  %v4791_v55 = vpop.f32.mrf.mxu0  ;;  %v4838_v15 = vld [vmem:[%s5418_s2] ss:$0 sm:$0xff] }
 0x1eb   : > { %v3425_v2 = vpop.eup %3424  ;;  %v1993_v19 = vmul.f32 %v3423_v53, %v4751_v26  ;;  %vm1997_vm6 = vweird.f32 %v4751_v26  ;;  %3432 = vrcp.f32 %v4783_v35  ;;  %v1259_v45 = vadd.f32 %v1224_v57, %v1117_v10 }
 0x1ec   : > { %v4794_v43 = vmul.f32 %v2489_v42, %v4606_v36  ;;  %vm4796_vm7 = vcmp.eq.f32.partialorder %v2001_v32, 8.507059e+37  ;;  %v2004_v30 = vor.u32 1.1754944e-38, %v2003_v61  ;;  %v4800_v63 = vadd.f32 1.0, %v3425_v2 }
 0x1ed   : > { %v3427_v47 = vpop.eup %3426  ;;  %v4803_v34 = vmul.f32 %v1990_v46, %v4600_v24  ;;  %v1994_v7 = vsub.f32 1.0, %v1993_v19  ;;  %vm2496_vm8 = vweird.f32 %v4764_v37  ;;  %v2503_v29 = vor.u32 1.1754944e-38, %v2502_v18 }
 0x1ee   : > { %vm1998_vm9 = vweird.f32 %v3423_v53  ;;  %v2492_v25 = vmul.f32 %v3427_v47, %v4764_v37  ;;  %vm4807_vm10 = vcmp.eq.f32.partialorder %v2500_v44, 8.507059e+37  ;;  %3434 = vrcp.f32 %v4800_v63 }
 0x1ef   : > { %v2515_v4 = vand.u32 2147483647, %v4783_v35  ;;  %v3429_v60 = vpop.eup %3428  ;;  %v1995_v1 = vmul.f32 %v3423_v53, %v1994_v7  ;;  %v2018_v24 = vand.u32 2147483648, %v4800_v63  ;;  %v2517_v22 = vand.u32 2147483648, %v4783_v35  ;;  %vm1999_vm12 = vmor %vm1997_vm6, %vm1998_vm9 }
 0x1f0   : > { %v1421_v41 = vadd.f32 %v1386_v31, %v1259_v45  ;;  %v3431_v6 = vpop.eup %3430  ;;  %v2917_v3 = vmax.f32 %v4794_v43, %v4746_v48  ;;  %v2955_v33 = vadd.f32 %v4748_v40, %v4794_v43  ;;  %v2493_v28 = vsub.f32 1.0, %v2492_v25 }
 0x1f1   : > { %vm2511_vm4 = vweird.f32 %v4783_v35  ;;  %v4820_v5 = vadd.f32 1.0, %v3429_v60  ;;  %v3433_v51 = vpop.eup %3432  ;;  %v1996_v49 = vadd.f32 %v3423_v53, %v1995_v1  ;;  %vm2497_vm11 = vweird.f32 %v3427_v47  ;;  %v1118_v60 = vpop.f32.mrf.mxu1 }
 0x1f2   : > { %v2016_v21 = vand.u32 2147483647, %v4800_v63  ;;  %v4823_v27 = vadd.f32 1.0, %v3431_v6  ;;  %v2494_v48 = vmul.f32 %v3427_v47, %v2493_v28  ;;  %v2507_v8 = vmul.f32 %v3433_v51, %v4783_v35  ;;  %v4843_v14 = vpop.f32.mrf.mxu0  ;;  %vm2498_vm0 = vmor %vm2496_vm8, %vm2497_vm11  ;;  %v4892_v28 = vld [vmem:[%s5420_s4] ss:$0 sm:$0xff] }
 0x1f3   : > { %vm4829_vm14 = vcmp.eq.f32.partialorder %v2515_v4, 8.507059e+37  ;;  %3436 = vrcp.f32 %v4820_v5  ;;  %v2000_v50 = vsel %vm1999_vm12, %v3423_v53, %v1996_v49  ;;  %vm2012_vm15 = vweird.f32 %v4800_v63  ;;  %v1226_v49 = vpop.f32.mrf.mxu2 }
 0x1f4   : > { %v2019_v16 = vor.u32 1.1754944e-38, %v2018_v24  ;;  %v2518_v62 = vor.u32 1.1754944e-38, %v2517_v22  ;;  %v4841_v26 = vadd.f32 %v4838_v15, %v1421_v41  ;;  %v3435_v52 = vpop.eup %3434  ;;  %v2005_v13 = vsel %vm4796_vm7, %v2004_v30, %v2000_v50 }
 0x1f5   : > { %v2495_v38 = vadd.f32 %v3427_v47, %v2494_v48  ;;  %v2508_v23 = vsub.f32 1.0, %v2507_v8  ;;  %3438 = vrcp.f32 %v4823_v27  ;;  %v2094_v58 = vmul.f32 %v2005_v13, %v4666_v59 }
 0x1f6   : > { %v2008_v32 = vmul.f32 %v3435_v52, %v4800_v63  ;;  %vm4853_vm1 = vcmp.eq.f32.partialorder %v2016_v21, 8.507059e+37  ;;  %v2031_v10 = vand.u32 2147483647, %v4820_v5  ;;  %v2033_v57 = vand.u32 2147483648, %v4820_v5 }
 0x1f7   : > { %v2499_v56 = vsel %vm2498_vm0, %v3427_v47, %v2495_v38  ;;  %vm2013_vm2 = vweird.f32 %v3435_v52  ;;  %v2509_v18 = vmul.f32 %v3433_v51, %v2508_v23  ;;  %vm2512_vm3 = vweird.f32 %v3433_v51 }
 0x1f8   : > { %v2112_v59 = vpack.c.bf16 %v2094_v58, %v4803_v34  ;;  %v2504_v37 = vsel %vm4807_vm10, %v2503_v29, %v2499_v56  ;;  %v2009_v53 = vsub.f32 1.0, %v2008_v32  ;;  %vm2027_vm5 = vweird.f32 %v4820_v5  ;;  %vm2513_vm6 = vmor %vm2511_vm4, %vm2512_vm3  ;;  %v1388_v58 = vpop.f32.mrf.mxu3 }
 0x1f9   : > { %v2530_v46 = vand.u32 2147483647, %v4823_v27  ;;  %v3437_v42 = vpop.eup %3436  ;;  %v2887_v44 = vmul.f32 %v2504_v37, %v4690_v11  ;;  %v2510_v2 = vadd.f32 %v3433_v51, %v2509_v18  ;;  %v2532_v19 = vand.u32 2147483648, %v4823_v27  ;;  %vm2014_vm4 = vmor %vm2012_vm15, %vm2013_vm2 }
 0x1fa   : > { %v1489_v45 = vsub.f32 0.0, %v4841_v26  ;;  %v2010_v43 = vmul.f32 %v3435_v52, %v2009_v53  ;;  %v2023_v17 = vmul.f32 %v3437_v42, %v4820_v5  ;;  %vm4870_vm7 = vcmp.eq.f32.partialorder %v2031_v10, 8.507059e+37  ;;  %3242 = vmatmul.msk.bf16.gmra.mxu0 %vm2135_vm13, %v2112_v59  ;;  %v2223_v1 = vpop.f32.mrf.mxu0 }
 0x1fb   : > { %v2034_v47 = vor.u32 1.1754944e-38, %v2033_v57  ;;  %vm2526_vm8 = vweird.f32 %v4823_v27  ;;  %v3439_v11 = vpop.eup %3438  ;;  %v4876_v34 = vmax.f32 %v2887_v44, %v2917_v3  ;;  %v2956_v7 = vadd.f32 %v2955_v33, %v2887_v44 }
 0x1fc   : > { %v2514_v29 = vsel %vm2513_vm6, %v3433_v51, %v2510_v2  ;;  %vm2028_vm9 = vweird.f32 %v3437_v42  ;;  %v2011_v25 = vadd.f32 %v3435_v52, %v2010_v43  ;;  %v2024_v36 = vsub.f32 1.0, %v2023_v17 }
 0x1fd   : > { %v2519_v35 = vsel %vm4829_vm14, %v2518_v62, %v2514_v29  ;;  %v2522_v4 = vmul.f32 %v3439_v11, %v4823_v27  ;;  %vm4881_vm10 = vcmp.eq.f32.partialorder %v2530_v46, 8.507059e+37  ;;  %vm2527_vm11 = vweird.f32 %v3439_v11  ;;  %vm2029_vm12 = vmor %vm2027_vm5, %vm2028_vm9 }
 0x1fe   : > { %v2888_v24 = vmul.f32 %v2519_v35, %v4706_v54  ;;  %v2533_v22 = vor.u32 1.1754944e-38, %v2532_v19  ;;  %v1551_v41 = vmul.f32 1.442695, %v1489_v45  ;;  %v2015_v6 = vsel %vm2014_vm4, %v3435_v52, %v2011_v25  ;;  %vm2528_vm14 = vmor %vm2526_vm8, %vm2527_vm11 }
 0x1ff   : > { %v2025_v3 = vmul.f32 %v3437_v42, %v2024_v36  ;;  %v2523_v33 = vsub.f32 1.0, %v2522_v4  ;;  %v4896_v51 = vadd.f32 %v4892_v28, %v4755_v20  ;;  %v2020_v63 = vsel %vm4853_vm1, %v2019_v16, %v2015_v6 }
 0x200   : > { %v2919_v54 = vmax.f32 %v2888_v24, %v4876_v34  ;;  %3440 = vpow2.f32 %v1551_v41  ;;  %v1119_v21 = vadd.f32 %v1118_v60, %v3889_v0  ;;  %v2957_v48 = vadd.f32 %v2956_v7, %v2888_v24 }
 0x201   : > { %v2026_v8 = vadd.f32 %v3437_v42, %v2025_v3  ;;  %v2524_v40 = vmul.f32 %v3439_v11, %v2523_v33  ;;  %v2282_v50 = vsub.f32 0.0, %v4896_v51  ;;  %v4908_v62 = vadd.f32 %v4892_v28, %v4791_v55 }
 0x202   : > { %v1260_v20 = vadd.f32 %v1226_v49, %v1119_v21  ;;  %v4912_v16 = vadd.f32 %v4892_v28, %v4843_v14  ;;  %v4915_v0 = vadd.f32 %v4892_v28, %v2223_v1  ;;  %v2095_v52 = vmul.f32 %v2020_v63, %v4730_v9  ;;  %v2225_v57 = vpop.f32.mrf.mxu0 }
 0x203   : > { %v2030_v13 = vsel %vm2029_vm12, %v3437_v42, %v2026_v8  ;;  %v2525_v38 = vadd.f32 %v3439_v11, %v2524_v40  ;;  %v2323_v23 = vmul.f32 1.442695, %v2282_v50  ;;  %v2283_v14 = vsub.f32 0.0, %v4908_v62 }
 0x204   : > { %v2035_v5 = vsel %vm4870_vm7, %v2034_v47, %v2030_v13  ;;  %v1422_v55 = vadd.f32 %v1388_v58, %v1260_v20  ;;  %v2284_v32 = vsub.f32 0.0, %v4912_v16  ;;  %v2285_v9 = vsub.f32 0.0, %v4915_v0 }
 0x205   : > { %v2096_v61 = vmul.f32 %v2035_v5, %v4744_v12  ;;  %v2529_v10 = vsel %vm2528_vm14, %v3439_v11, %v2525_v38  ;;  %3442 = vpow2.f32 %v2323_v23  ;;  %v2325_v27 = vmul.f32 1.442695, %v2283_v14 }
 0x206   : > { %v3441_v56 = vpop.eup %3440  ;;  %v2534_v18 = vsel %vm4881_vm10, %v2533_v22, %v2529_v10  ;;  %v4930_v59 = vadd.f32 %v4838_v15, %v1422_v55  ;;  %v2327_v37 = vmul.f32 1.442695, %v2284_v32  ;;  %v2329_v44 = vmul.f32 1.442695, %v2285_v9 }
 0x207   : > { %v2113_v53 = vpack.c.bf16 %v2096_v61, %v2095_v52  ;;  %v2889_v46 = vmul.f32 %v2534_v18, %v4739_v39  ;;  %v1585_v42 = vadd.f32 1.0, %v3441_v56  ;;  %3444 = vpow2.f32 %v2325_v27 }
 0x208   : > { %v1490_v12 = vsub.f32 0.0, %v4930_v59  ;;  %v4935_v2 = vadd.f32 %v4892_v28, %v2225_v57 }
 0x209   : > { %v4937_v19 = vmax.f32 %v2889_v46, %v2919_v54  ;;  %v4939_v45 = vadd.f32 %v2957_v48, %v2889_v46  ;;  %3446 = vrcp.f32 %v1585_v42  ;;  %v2046_v17 = vand.u32 2147483647, %v1585_v42 }
 0x20a   : > { %v1553_v15 = vmul.f32 1.442695, %v1490_v12  ;;  %3448 = vpow2.f32 %v2327_v37  ;;  %3243 = vmatmul.msk.bf16.gmra.mxu0 %vm2135_vm13, %v2113_v53  ;;  %v2286_v39 = vsub.f32 0.0, %v4935_v2  ;;  %v2048_v47 = vand.u32 2147483648, %v1585_v42  ;;  %v2228_v11 = vpop.f32.mrf.mxu0 }
 0x20b   : > { %v3443_v43 = vpop.eup %3442  ;;  %3450 = vpow2.f32 %v2329_v44  ;;  %vm2042_vm15 = vweird.f32 %v1585_v42  ;;  %vm4948_vm0 = vcmp.eq.f32.partialorder %v2046_v17, 8.507059e+37  ;;  %v4958_v3 = vadd.f32 %v4892_v28, %v2228_v11 }
 0x20c   : > { %v4943_v30 = vadd.f32 1.0, %v3443_v43  ;;  %3452 = vpow2.f32 %v1553_v15  ;;  %v2331_v7 = vmul.f32 1.442695, %v2286_v39  ;;  %v2049_v60 = vor.u32 1.1754944e-38, %v2048_v47 }
 0x20d   : > { %v3445_v34 = vpop.eup %3444  ;;  %v2287_v38 = vsub.f32 0.0, %v4958_v3 }
 0x20e   : > { %3454 = vrcp.f32 %v4943_v30  ;;  %v4946_v25 = vadd.f32 1.0, %v3445_v34  ;;  %v2545_v1 = vand.u32 2147483647, %v4943_v30  ;;  %v2547_v24 = vand.u32 2147483648, %v4943_v30 }
 0x20f   : > { %v3447_v29 = vpop.eup %3446  ;;  %vm2541_vm2 = vweird.f32 %v4943_v30 }
 0x210   : > { %v3449_v35 = vpop.eup %3448  ;;  %v2038_v36 = vmul.f32 %v3447_v29, %v1585_v42  ;;  %3456 = vrcp.f32 %v4946_v25  ;;  %vm2043_vm1 = vweird.f32 %v3447_v29  ;;  %v2560_v21 = vand.u32 2147483647, %v4946_v25 }
 0x211   : > { %v3451_v31 = vpop.eup %3450  ;;  %v4955_v6 = vadd.f32 1.0, %v3449_v35  ;;  %3458 = vpow2.f32 %v2331_v7  ;;  %v2562_v48 = vand.u32 2147483648, %v4946_v25  ;;  %vm4969_vm3 = vcmp.eq.f32.partialorder %v2545_v1, 8.507059e+37  ;;  %vm2044_vm6 = vmor %vm2042_vm15, %vm2043_vm1 }
 0x212   : > { %v3453_v22 = vpop.eup %3452  ;;  %v2039_v41 = vsub.f32 1.0, %v2038_v36  ;;  %v4963_v49 = vadd.f32 1.0, %v3451_v31  ;;  %v2548_v50 = vor.u32 1.1754944e-38, %v2547_v24  ;;  %v4974_v20 = vpop.f32.mrf.mxu0  ;;  %vm2556_vm5 = vweird.f32 %v4946_v25 }
 0x213   : > { %v4961_v33 = vadd.f32 1.0, %v3453_v22  ;;  %3460 = vrcp.f32 %v4955_v6  ;;  %v2575_v5 = vand.u32 2147483647, %v4955_v6  ;;  %v2577_v55 = vand.u32 2147483648, %v4955_v6 }
 0x214   : > { %v3455_v63 = vpop.eup %3454  ;;  %v2040_v54 = vmul.f32 %v3447_v29, %v2039_v41  ;;  %vm4986_vm7 = vcmp.eq.f32.partialorder %v2560_v21, 8.507059e+37  ;;  %v2563_v57 = vor.u32 1.1754944e-38, %v2562_v48  ;;  %vm2571_vm9 = vweird.f32 %v4955_v6 }
 0x215   : > { %v2537_v8 = vmul.f32 %v3455_v63, %v4943_v30  ;;  %3462 = vrcp.f32 %v4961_v33  ;;  %v2063_v13 = vand.u32 2147483648, %v4961_v33  ;;  %v2061_v61 = vand.u32 2147483647, %v4961_v33 }
 0x216   : > { %v2041_v52 = vadd.f32 %v3447_v29, %v2040_v54  ;;  %v3457_v23 = vpop.eup %3456  ;;  %3464 = vrcp.f32 %v4963_v49  ;;  %vm2542_vm8 = vweird.f32 %v3455_v63  ;;  %vm2057_vm10 = vweird.f32 %v4961_v33 }
 0x217   : > { %v2538_v58 = vsub.f32 1.0, %v2537_v8  ;;  %v3459_v14 = vpop.eup %3458  ;;  %v2552_v10 = vmul.f32 %v3457_v23, %v4946_v25  ;;  %v2064_v37 = vor.u32 1.1754944e-38, %v2063_v13  ;;  %vm2557_vm4 = vweird.f32 %v3457_v23  ;;  %vm2543_vm12 = vmor %vm2541_vm2, %vm2542_vm8 }
 0x218   : > { %v2045_v32 = vsel %vm2044_vm6, %v3447_v29, %v2041_v52  ;;  %vm4995_vm11 = vcmp.eq.f32.partialorder %v2575_v5, 8.507059e+37  ;;  %v2578_v15 = vor.u32 1.1754944e-38, %v2577_v55  ;;  %v4999_v43 = vadd.f32 1.0, %v3459_v14  ;;  %vm2558_vm1 = vmor %vm2556_vm5, %vm2557_vm4 }
 0x219   : > { %v2050_v56 = vsel %vm4948_vm0, %v2049_v60, %v2045_v32  ;;  %v2539_v18 = vmul.f32 %v3455_v63, %v2538_v58  ;;  %v3461_v27 = vpop.eup %3460  ;;  %v2553_v53 = vsub.f32 1.0, %v2552_v10  ;;  %vm5007_vm14 = vcmp.eq.f32.partialorder %v2061_v61, 8.507059e+37 }
 0x21a   : > { %v2567_v44 = vmul.f32 %v3461_v27, %v4955_v6  ;;  %v5002_v39 = vmul.f32 %v2050_v56, %v4841_v26  ;;  %v2590_v34 = vand.u32 2147483647, %v4963_v49  ;;  %vm2586_vm15 = vweird.f32 %v4963_v49  ;;  %v2233_v30 = vpop.f32.mrf.mxu0 }
 0x21b   : > { %v3463_v46 = vpop.eup %3462  ;;  %v2540_v42 = vadd.f32 %v3455_v63, %v2539_v18  ;;  %v2554_v11 = vmul.f32 %v3457_v23, %v2553_v53  ;;  %v2592_v26 = vand.u32 2147483648, %v4963_v49  ;;  %3466 = vrcp.f32 %v4999_v43 }
 0x21c   : > { %v2053_v17 = vmul.f32 %v3463_v46, %v4961_v33  ;;  %v3465_v7 = vpop.eup %3464  ;;  %v2568_v35 = vsub.f32 1.0, %v2567_v44  ;;  %vm2058_vm0 = vweird.f32 %v3463_v46  ;;  %vm2572_vm2 = vweird.f32 %v3461_v27 }
 0x21d   : > { %v2544_v29 = vsel %vm2543_vm12, %v3455_v63, %v2540_v42  ;;  %v2555_v31 = vadd.f32 %v3457_v23, %v2554_v11  ;;  %v2582_v60 = vmul.f32 %v3465_v7, %v4963_v49  ;;  %vm5022_vm6 = vcmp.eq.f32.partialorder %v2590_v34, 8.507059e+37  ;;  %vm2059_vm5 = vmor %vm2057_vm10, %vm2058_vm0 }
 0x21e   : > { %v2549_v36 = vsel %vm4969_vm3, %v2548_v50, %v2544_v29  ;;  %v2054_v4 = vsub.f32 1.0, %v2053_v17  ;;  %v2569_v24 = vmul.f32 %v3461_v27, %v2568_v35  ;;  %vm2573_vm3 = vmor %vm2571_vm9, %vm2572_vm2  ;;  %v2593_v52 = vor.u32 1.1754944e-38, %v2592_v26 }
 0x21f   : > { %v2890_v1 = vmul.f32 %v2549_v36, %v4896_v51  ;;  %v2559_v41 = vsel %vm2558_vm1, %v3457_v23, %v2555_v31  ;;  %v2583_v63 = vsub.f32 1.0, %v2582_v60  ;;  %vm2587_vm8 = vweird.f32 %v3465_v7 }
 0x220   : > { %v2055_v22 = vmul.f32 %v3463_v46, %v2054_v4  ;;  %v2564_v51 = vsel %vm4986_vm7, %v2563_v57, %v2559_v41  ;;  %v2570_v8 = vadd.f32 %v3461_v27, %v2569_v24  ;;  %v5040_v23 = vadd.f32 %v4892_v28, %v4974_v20  ;;  %vm2588_vm7 = vmor %vm2586_vm15, %vm2587_vm8 }
 0x221   : > { %v2921_v21 = vmax.f32 %v2890_v1, %v4937_v19  ;;  %v2959_v48 = vadd.f32 %v4939_v45, %v2890_v1  ;;  %v2891_v25 = vmul.f32 %v2564_v51, %v4908_v62  ;;  %v2584_v50 = vmul.f32 %v3465_v7, %v2583_v63  ;;  %v3467_v13 = vpop.eup %3466 }
 0x222   : > { %v2056_v40 = vadd.f32 %v3463_v46, %v2055_v22  ;;  %v2574_v19 = vsel %vm2573_vm3, %v3461_v27, %v2570_v8  ;;  %v2333_v45 = vmul.f32 1.442695, %v2287_v38  ;;  %v2597_v32 = vmul.f32 %v3467_v13, %v4999_v43  ;;  %v2235_v61 = vpop.f32.mrf.mxu0 }
 0x223   : > { %v2922_v58 = vmax.f32 %v2891_v25, %v2921_v21  ;;  %v2960_v6 = vadd.f32 %v2959_v48, %v2891_v25  ;;  %v2579_v5 = vsel %vm4995_vm11, %v2578_v15, %v2574_v19  ;;  %v2585_v14 = vadd.f32 %v3465_v7, %v2584_v50 }
 0x224   : > { %v2060_v62 = vsel %vm2059_vm5, %v3463_v46, %v2056_v40  ;;  %v2892_v33 = vmul.f32 %v2579_v5, %v4912_v16  ;;  %v2605_v20 = vand.u32 2147483647, %v4999_v43  ;;  %v2607_v10 = vand.u32 2147483648, %v4999_v43 }
 0x225   : > { %v2065_v55 = vsel %vm5007_vm14, %v2064_v37, %v2060_v62  ;;  %3468 = vpow2.f32 %v2333_v45  ;;  %v2589_v56 = vsel %vm2588_vm7, %v3465_v7, %v2585_v14  ;;  %v2598_v18 = vsub.f32 1.0, %v2597_v32 }
 0x226   : > { %v2098_v38 = vmul.f32 %v2065_v55, %v4930_v59  ;;  %v2923_v9 = vmax.f32 %v2892_v33, %v2922_v58  ;;  %v2961_v57 = vadd.f32 %v2960_v6, %v2892_v33  ;;  %v2594_v27 = vsel %vm5022_vm6, %v2593_v52, %v2589_v56 }
 0x227   : > { %v2288_v37 = vsub.f32 0.0, %v5040_v23  ;;  %v5058_v59 = vadd.f32 %v4892_v28, %v2233_v30  ;;  %v2893_v49 = vmul.f32 %v2594_v27, %v4915_v0  ;;  %v2599_v53 = vmul.f32 %v3467_v13, %v2598_v18 }
 0x228   : > { %v2114_v16 = vpack.c.bf16 %v2098_v38, %v5002_v39  ;;  %vm2602_vm9 = vweird.f32 %v3467_v13  ;;  %v5062_v46 = vadd.f32 %v4892_v28, %v2235_v61  ;;  %vm2601_vm10 = vweird.f32 %v4999_v43 }
 0x229   : > { %v2335_v42 = vmul.f32 1.442695, %v2288_v37  ;;  %v2289_v44 = vsub.f32 0.0, %v5058_v59  ;;  %v5067_v12 = vmax.f32 %v2893_v49, %v2923_v9  ;;  %v2962_v15 = vadd.f32 %v2961_v57, %v2893_v49  ;;  %vm2603_vm4 = vmor %vm2601_vm10, %vm2602_vm9 }
 0x22a   : > { %3244 = vmatmul.msk.bf16.gmra.mxu0 %vm2135_vm13, %v2114_v16  ;;  %v2600_v39 = vadd.f32 %v3467_v13, %v2599_v53  ;;  %v2290_v17 = vsub.f32 0.0, %v5062_v46  ;;  %v2608_v0 = vor.u32 1.1754944e-38, %v2607_v10  ;;  %vm2606_vm11 = vcmp.eq.f32.partialorder %v2605_v20, 8.507059e+37  ;;  %v2238_v29 = vpop.f32.mrf.mxu0 }
 0x22b   : > { %v3469_v47 = vpop.eup %3468  ;;  %3470 = vpow2.f32 %v2335_v42  ;;  %v2337_v11 = vmul.f32 1.442695, %v2289_v44  ;;  %v5071_v26 = vadd.f32 %v4892_v28, %v2238_v29 }
 0x22c   : > { %v2604_v34 = vsel %vm2603_vm4, %v3467_v13, %v2600_v39  ;;  %v2383_v7 = vadd.f32 1.0, %v3469_v47  ;;  %v2339_v43 = vmul.f32 1.442695, %v2290_v17 }
 0x22d   : > { %v2609_v35 = vsel %vm2606_vm11, %v2608_v0, %v2604_v34  ;;  %3472 = vpow2.f32 %v2337_v11  ;;  %v2291_v36 = vsub.f32 0.0, %v5071_v26 }
 0x22e   : > { %v5074_v30 = vmul.f32 %v2609_v35, %v4935_v2  ;;  %3474 = vrcp.f32 %v2383_v7  ;;  %v2620_v51 = vand.u32 2147483647, %v2383_v7  ;;  %v2622_v8 = vand.u32 2147483648, %v2383_v7 }
 0x22f   : > { %3476 = vpow2.f32 %v2339_v43  ;;  %v2341_v1 = vmul.f32 1.442695, %v2291_v36  ;;  %vm2616_vm13 = vweird.f32 %v2383_v7 }
 0x230   : > { %v2925_v4 = vmax.f32 %v5074_v30, %v5067_v12  ;;  %v2963_v31 = vadd.f32 %v2962_v15, %v5074_v30  ;;  %vm5090_vm14 = vcmp.eq.f32.partialorder %v2620_v51, 8.507059e+37  ;;  %v2623_v6 = vor.u32 1.1754944e-38, %v2622_v8 }
 0x231   : > { %v3471_v60 = vpop.eup %3470  ;;  %3478 = vpow2.f32 %v2341_v1 }
 0x232   : > { %v2384_v24 = vadd.f32 1.0, %v3471_v60  ;;  %v2240_v63 = vpop.f32.mrf.mxu0 }
 0x233   : > { %v3473_v22 = vpop.eup %3472  ;;  %v5083_v48 = vadd.f32 %v4892_v28, %v2240_v63 }
 0x234   : > { %v3475_v41 = vpop.eup %3474  ;;  %3480 = vrcp.f32 %v2384_v24  ;;  %v5080_v21 = vadd.f32 1.0, %v3473_v22  ;;  %v2635_v50 = vand.u32 2147483647, %v2384_v24  ;;  %v2637_v52 = vand.u32 2147483648, %v2384_v24 }
 0x235   : > { %v3477_v54 = vpop.eup %3476  ;;  %v2612_v2 = vmul.f32 %v3475_v41, %v2383_v7  ;;  %vm2617_vm12 = vweird.f32 %v3475_v41  ;;  %v2292_v45 = vsub.f32 0.0, %v5083_v48  ;;  %vm2631_vm15 = vweird.f32 %v2384_v24 }
 0x236   : > { %v5085_v40 = vadd.f32 1.0, %v3477_v54  ;;  %3482 = vrcp.f32 %v5080_v21  ;;  %v2650_v5 = vand.u32 2147483647, %v5080_v21  ;;  %vm5097_vm0 = vcmp.eq.f32.partialorder %v2635_v50, 8.507059e+37  ;;  %vm2618_vm1 = vmor %vm2616_vm13, %vm2617_vm12 }
 0x237   : > { %v2613_v25 = vsub.f32 1.0, %v2612_v2  ;;  %v3479_v13 = vpop.eup %3478  ;;  %v2638_v61 = vor.u32 1.1754944e-38, %v2637_v52  ;;  %vm2646_vm2 = vweird.f32 %v5080_v21  ;;  %v2652_v38 = vand.u32 2147483648, %v5080_v21 }
 0x238   : > { %3484 = vrcp.f32 %v5085_v40  ;;  %v5095_v55 = vadd.f32 1.0, %v3479_v13  ;;  %vm2661_vm6 = vweird.f32 %v5085_v40  ;;  %v2343_v56 = vmul.f32 1.442695, %v2292_v45 }
 0x239   : > { %v2614_v19 = vmul.f32 %v3475_v41, %v2613_v25  ;;  %vm5111_vm3 = vcmp.eq.f32.partialorder %v2650_v5, 8.507059e+37  ;;  %v2665_v53 = vand.u32 2147483647, %v5085_v40  ;;  %v2667_v39 = vand.u32 2147483648, %v5085_v40 }
 0x23a   : > { %v3481_v62 = vpop.eup %3480  ;;  %3486 = vrcp.f32 %v5095_v55  ;;  %v2243_v20 = vpop.f32.mrf.mxu0  ;;  %v2680_v51 = vand.u32 2147483647, %v5095_v55  ;;  %v2682_v8 = vand.u32 2147483648, %v5095_v55  ;;  %vm2676_vm12 = vweird.f32 %v5095_v55 }
 0x23b   : > { %v2615_v33 = vadd.f32 %v3475_v41, %v2614_v19  ;;  %v2627_v14 = vmul.f32 %v3481_v62, %v2384_v24  ;;  %v5106_v18 = vadd.f32 %v4892_v28, %v2243_v20  ;;  %vm2632_vm5 = vweird.f32 %v3481_v62 }
 0x23c   : > { %v3483_v10 = vpop.eup %3482  ;;  %3488 = vpow2.f32 %v2343_v56  ;;  %vm2633_vm8 = vmor %vm2631_vm15, %vm2632_vm5  ;;  %vm5124_vm10 = vcmp.eq.f32.partialorder %v2665_v53, 8.507059e+37  ;;  %v2668_v22 = vor.u32 1.1754944e-38, %v2667_v39  ;;  %vm2681_vm15 = vcmp.eq.f32.partialorder %v2680_v51, 8.507059e+37 }
 0x23d   : > { %v2619_v9 = vsel %vm2618_vm1, %v3475_v41, %v2615_v33  ;;  %v2628_v57 = vsub.f32 1.0, %v2627_v14  ;;  %v2642_v37 = vmul.f32 %v3483_v10, %v5080_v21  ;;  %v2293_v17 = vsub.f32 0.0, %v5106_v18 }
 0x23e   : > { %v3485_v16 = vpop.eup %3484  ;;  %v2624_v27 = vsel %vm5090_vm14, %v2623_v6, %v2619_v9  ;;  %vm2647_vm7 = vweird.f32 %v3483_v10  ;;  %v2683_v33 = vor.u32 1.1754944e-38, %v2682_v8 }
 0x23f   : > { %v2895_v42 = vmul.f32 %v2624_v27, %v4958_v3  ;;  %v2629_v44 = vmul.f32 %v3481_v62, %v2628_v57  ;;  %v2657_v12 = vmul.f32 %v3485_v16, %v5085_v40  ;;  %v2643_v15 = vsub.f32 1.0, %v2642_v37  ;;  %vm2648_vm4 = vmor %vm2646_vm2, %vm2647_vm7 }
 0x240   : > { %v3487_v7 = vpop.eup %3486  ;;  %v2653_v3 = vor.u32 1.1754944e-38, %v2652_v38  ;;  %v2345_v29 = vmul.f32 1.442695, %v2293_v17  ;;  %vm2662_vm9 = vweird.f32 %v3485_v16 }
 0x241   : > { %v2926_v47 = vmax.f32 %v2895_v42, %v2925_v4  ;;  %v2964_v0 = vadd.f32 %v2963_v31, %v2895_v42  ;;  %v2630_v11 = vadd.f32 %v3481_v62, %v2629_v44  ;;  %v2658_v34 = vsub.f32 1.0, %v2657_v12  ;;  %vm2663_vm11 = vmor %vm2661_vm6, %vm2662_vm9 }
 0x242   : > { %v2644_v43 = vmul.f32 %v3483_v10, %v2643_v15  ;;  %v2672_v36 = vmul.f32 %v3487_v7, %v5095_v55  ;;  %3490 = vpow2.f32 %v2345_v29  ;;  %v5131_v63 = vpop.f32.mrf.mxu0  ;;  %v3489_v54 = vpop.eup %3488  ;;  %vm2677_vm13 = vweird.f32 %v3487_v7 }
 0x243   : > { %v2634_v35 = vsel %vm2633_vm8, %v3481_v62, %v2630_v11  ;;  %v2659_v30 = vmul.f32 %v3485_v16, %v2658_v34  ;;  %v2388_v45 = vadd.f32 1.0, %v3489_v54  ;;  %vm2678_vm14 = vmor %vm2676_vm12, %vm2677_vm13 }
 0x244   : > { %v2639_v60 = vsel %vm5097_vm0, %v2638_v61, %v2634_v35  ;;  %v2645_v1 = vadd.f32 %v3483_v10, %v2644_v43  ;;  %v2673_v41 = vsub.f32 1.0, %v2672_v36 }
 0x245   : > { %v2896_v31 = vmul.f32 %v2639_v60, %v5040_v23  ;;  %v2660_v24 = vadd.f32 %v3485_v16, %v2659_v30  ;;  %3492 = vrcp.f32 %v2388_v45  ;;  %v2697_v27 = vand.u32 2147483648, %v2388_v45 }
 0x246   : > { %v2649_v2 = vsel %vm2648_vm4, %v3483_v10, %v2645_v1  ;;  %v2674_v19 = vmul.f32 %v3487_v7, %v2673_v41  ;;  %v2695_v53 = vand.u32 2147483647, %v2388_v45  ;;  %vm2691_vm1 = vweird.f32 %v2388_v45 }
 0x247   : > { %v2927_v25 = vmax.f32 %v2896_v31, %v2926_v47  ;;  %v2965_v23 = vadd.f32 %v2964_v0, %v2896_v31  ;;  %v2654_v21 = vsel %vm5111_vm3, %v2653_v3, %v2649_v2  ;;  %v2664_v50 = vsel %vm2663_vm11, %v3485_v16, %v2660_v24 }
 0x248   : > { %v2897_v52 = vmul.f32 %v2654_v21, %v5058_v59  ;;  %v2669_v13 = vsel %vm5124_vm10, %v2668_v22, %v2664_v50  ;;  %v3491_v62 = vpop.eup %3490  ;;  %v2675_v5 = vadd.f32 %v3487_v7, %v2674_v19  ;;  %v2698_v15 = vor.u32 1.1754944e-38, %v2697_v27 }
 0x249   : > { %v2898_v40 = vmul.f32 %v2669_v13, %v5062_v46  ;;  %v2389_v14 = vadd.f32 1.0, %v3491_v62  ;;  %vm2696_vm3 = vcmp.eq.f32.partialorder %v2695_v53, 8.507059e+37  ;;  %v5154_v31 = vadd.f32 %v4892_v28, %v5131_v63 }
 0x24a   : > { %v2928_v58 = vmax.f32 %v2897_v52, %v2927_v25  ;;  %v2966_v6 = vadd.f32 %v2965_v23, %v2897_v52  ;;  %v2679_v61 = vsel %vm2678_vm14, %v3487_v7, %v2675_v5  ;;  %v2248_v46 = vpop.f32.mrf.mxu0 }
 0x24b   : > { %v2684_v38 = vsel %vm2681_vm15, %v2683_v33, %v2679_v61  ;;  %3494 = vrcp.f32 %v2389_v14  ;;  %v3493_v10 = vpop.eup %3492  ;;  %v2712_v12 = vand.u32 2147483648, %v2389_v14  ;;  %vm2706_vm5 = vweird.f32 %v2389_v14 }
 0x24c   : > { %v2929_v32 = vmax.f32 %v2898_v40, %v2928_v58  ;;  %v2967_v59 = vadd.f32 %v2966_v6, %v2898_v40  ;;  %v2899_v20 = vmul.f32 %v2684_v38, %v5071_v26  ;;  %v2687_v57 = vmul.f32 %v3493_v10, %v2388_v45 }
 0x24d   : > { %vm2692_vm0 = vweird.f32 %v3493_v10  ;;  %v2710_v26 = vand.u32 2147483647, %v2389_v14  ;;  %v2713_v7 = vor.u32 1.1754944e-38, %v2712_v12  ;;  %v2294_v24 = vsub.f32 0.0, %v5154_v31 }
 0x24e   : > { %v2930_v55 = vmax.f32 %v2899_v20, %v2929_v32  ;;  %v2968_v9 = vadd.f32 %v2967_v59, %v2899_v20  ;;  %v2688_v16 = vsub.f32 1.0, %v2687_v57  ;;  %vm2693_vm2 = vmor %vm2691_vm1, %vm2692_vm0 }
 0x24f   : > { %vm2711_vm7 = vcmp.eq.f32.partialorder %v2710_v26, 8.507059e+37  ;;  %v2347_v54 = vmul.f32 1.442695, %v2294_v24 }
 0x250   : > { %v2689_v49 = vmul.f32 %v3493_v10, %v2688_v16 }
 0x251   : > { %v3495_v56 = vpop.eup %3494  ;;  %3496 = vpow2.f32 %v2347_v54 }
 0x252   : > { %v2702_v37 = vmul.f32 %v3495_v56, %v2389_v14  ;;  %v2690_v44 = vadd.f32 %v3493_v10, %v2689_v49  ;;  %vm2707_vm6 = vweird.f32 %v3495_v56  ;;  %v2250_v47 = vpop.f32.mrf.mxu0 }
 0x253   : > { %vm2708_vm8 = vmor %vm2706_vm5, %vm2707_vm6 }
 0x254   : > { %v2703_v42 = vsub.f32 1.0, %v2702_v37  ;;  %v2694_v17 = vsel %vm2693_vm2, %v3493_v10, %v2690_v44 }
 0x255   : > { %v2699_v0 = vsel %vm2696_vm3, %v2698_v15, %v2694_v17 }
 0x256   : > { %v2704_v39 = vmul.f32 %v3495_v56, %v2703_v42  ;;  %v2900_v34 = vmul.f32 %v2699_v0, %v5083_v48  ;;  %v5157_v48 = vadd.f32 %v4892_v28, %v2248_v46 }
 0x257   : > { %v3497_v23 = vpop.eup %3496 }
 0x258   : > { %v2705_v11 = vadd.f32 %v3495_v56, %v2704_v39  ;;  %v2931_v3 = vmax.f32 %v2900_v34, %v2930_v55  ;;  %v2969_v29 = vadd.f32 %v2968_v9, %v2900_v34  ;;  %v2295_v22 = vsub.f32 0.0, %v5157_v48 }
 0x259   : > { %v5172_v13 = vadd.f32 1.0, %v3497_v23 }
 0x25a   : > { %v2709_v43 = vsel %vm2708_vm8, %v3495_v56, %v2705_v11  ;;  %v2349_v2 = vmul.f32 1.442695, %v2295_v22 }
 0x25b   : > { %v2714_v35 = vsel %vm2711_vm7, %v2713_v7, %v2709_v43  ;;  %v2253_v1 = vpop.f32.mrf.mxu0  ;;  %vm2721_vm10 = vweird.f32 %v5172_v13 }
 0x25c   : > { %v2901_v30 = vmul.f32 %v2714_v35, %v5106_v18  ;;  %v5162_v18 = vadd.f32 %v4892_v28, %v2250_v47  ;;  %3498 = vpow2.f32 %v2349_v2  ;;  %v5166_v63 = vadd.f32 %v4892_v28, %v2253_v1 }
 0x25d   : > { %v2727_v35 = vand.u32 2147483648, %v5172_v13  ;;  %v2725_v1 = vand.u32 2147483647, %v5172_v13 }
 0x25e   : > { %v5148_v36 = vmax.f32 %v2901_v30, %v2931_v3  ;;  %v5150_v60 = vadd.f32 %v2969_v29, %v2901_v30  ;;  %v2296_v51 = vsub.f32 0.0, %v5162_v18  ;;  %v2297_v21 = vsub.f32 0.0, %v5166_v63 }
 0x25f   : > { %v2728_v23 = vor.u32 1.1754944e-38, %v2727_v35  ;;  %vm2726_vm12 = vcmp.eq.f32.partialorder %v2725_v1, 8.507059e+37 }
 0x260   : > { %v2351_v25 = vmul.f32 1.442695, %v2296_v51  ;;  %v2353_v45 = vmul.f32 1.442695, %v2297_v21 }
 0x262   : > { %3500 = vpow2.f32 %v2351_v25  ;;  %v3499_v52 = vpop.eup %3498 }
 0x263   : > { %v2255_v4 = vpop.f32.mrf.mxu0  ;;  %v5178_v58 = vadd.f32 1.0, %v3499_v52  ;;  %3502 = vrcp.f32 %v5172_v13 }
 0x264   : > { %v5170_v50 = vadd.f32 %v4892_v28, %v2255_v4  ;;  %3504 = vpow2.f32 %v2353_v45 }
 0x265   : > { %3506 = vrcp.f32 %v5178_v58  ;;  %vm2736_vm13 = vweird.f32 %v5178_v58 }
 0x266   : > { %v2298_v40 = vsub.f32 0.0, %v5170_v50 }
 0x268   : > { %v3501_v6 = vpop.eup %3500  ;;  %v2355_v33 = vmul.f32 1.442695, %v2298_v40 }
 0x269   : > { %v5186_v32 = vadd.f32 1.0, %v3501_v6  ;;  %v3503_v38 = vpop.eup %3502 }
 0x26a   : > { %3508 = vpow2.f32 %v2355_v33  ;;  %v3505_v10 = vpop.eup %3504  ;;  %v2717_v56 = vmul.f32 %v3503_v38, %v5172_v13  ;;  %vm2722_vm9 = vweird.f32 %v3503_v38  ;;  %v2740_v13 = vand.u32 2147483647, %v5178_v58 }
 0x26b   : > { %3510 = vrcp.f32 %v5186_v32  ;;  %v5197_v57 = vpop.eup %3506  ;;  %v5200_v27 = vadd.f32 1.0, %v3505_v10  ;;  %vm5224_vm4 = vmor %vm2721_vm10, %vm2722_vm9  ;;  %vm2751_vm1 = vweird.f32 %v5186_v32 }
 0x26c   : > { %v2732_v49 = vmul.f32 %v5197_v57, %v5178_v58  ;;  %v2718_v44 = vsub.f32 1.0, %v2717_v56  ;;  %vm2737_vm11 = vweird.f32 %v5197_v57  ;;  %vm2741_vm0 = vcmp.eq.f32.partialorder %v2740_v13, 8.507059e+37 }
 0x26d   : > { %vm5241_vm14 = vmor %vm2736_vm13, %vm2737_vm11  ;;  %v2755_v56 = vand.u32 2147483647, %v5186_v32  ;;  %vm2766_vm5 = vweird.f32 %v5200_v27 }
 0x26e   : > { %v2733_v26 = vsub.f32 1.0, %v2732_v49  ;;  %v2719_v47 = vmul.f32 %v3503_v38, %v2718_v44 }
 0x26f   : > { %vm2756_vm6 = vcmp.eq.f32.partialorder %v2755_v56, 8.507059e+37 }
 0x270   : > { %v3509_v37 = vpop.eup %3508  ;;  %v2734_v7 = vmul.f32 %v5197_v57, %v2733_v26  ;;  %v2720_v3 = vadd.f32 %v3503_v38, %v2719_v47  ;;  %v2772_v47 = vand.u32 2147483648, %v5200_v27 }
 0x271   : > { %v5205_v12 = vpop.eup %3510  ;;  %v5208_v39 = vadd.f32 1.0, %v3509_v37 }
 0x272   : > { %v2747_v0 = vmul.f32 %v5205_v12, %v5186_v32  ;;  %v2735_v22 = vadd.f32 %v5197_v57, %v2734_v7  ;;  %v2724_v2 = vsel %vm5224_vm4, %v3503_v38, %v2720_v3  ;;  %vm2752_vm15 = vweird.f32 %v5205_v12 }
 0x273   : > { %v2729_v40 = vsel %vm2726_vm12, %v2728_v23, %v2724_v2  ;;  %vm5271_vm2 = vmor %vm2751_vm1, %vm2752_vm15  ;;  %vm2781_vm9 = vweird.f32 %v5208_v39 }
 0x274   : > { %v2748_v30 = vsub.f32 1.0, %v2747_v0 }
 0x276   : > { %v2749_v21 = vmul.f32 %v5205_v12, %v2748_v30 }
 0x277   : > { %v2258_v41 = vpop.f32.mrf.mxu0 }
 0x278   : > { %v5175_v19 = vadd.f32 %v4892_v28, %v2258_v41  ;;  %v2742_v41 = vand.u32 2147483648, %v5178_v58  ;;  %v2750_v58 = vadd.f32 %v5205_v12, %v2749_v21 }
 0x27a   : > { %v2299_v5 = vsub.f32 0.0, %v5175_v19  ;;  %v2743_v6 = vor.u32 1.1754944e-38, %v2742_v41  ;;  %v2773_v41 = vor.u32 1.1754944e-38, %v2772_v47 }
 0x27c   : > { %v2357_v61 = vmul.f32 1.442695, %v2299_v5 }
 0x27e   : > { %3512 = vpow2.f32 %v2357_v61 }
 0x27f   : > { %v2260_v8 = vpop.f32.mrf.mxu0 }
 0x280   : > { %v5183_v14 = vadd.f32 %v4892_v28, %v2260_v8 }
 0x282   : > { %v2300_v20 = vsub.f32 0.0, %v5183_v14 }
 0x284   : > { %v2359_v16 = vmul.f32 1.442695, %v2300_v20  ;;  %v3513_v15 = vpop.eup %3512  ;;  %v2757_v20 = vand.u32 2147483648, %v5186_v32 }
 0x285   : > { %v5212_v11 = vadd.f32 1.0, %v3513_v15 }
 0x286   : > { %3514 = vpow2.f32 %v2359_v16  ;;  %v2758_v44 = vor.u32 1.1754944e-38, %v2757_v20 }
 0x287   : > { %v2263_v62 = vpop.f32.mrf.mxu0  ;;  %3516 = vrcp.f32 %v5200_v27  ;;  %vm2796_vm13 = vweird.f32 %v5212_v11 }
 0x288   : > { %v5189_v59 = vadd.f32 %v4892_v28, %v2263_v62  ;;  %v2739_v62 = vsel %vm5241_vm14, %v5197_v57, %v2735_v22 }
 0x289   : > { %v2744_v57 = vsel %vm2741_vm0, %v2743_v6, %v2739_v62  ;;  %v2785_v6 = vand.u32 2147483647, %v5208_v39 }
 0x28a   : > { %v2301_v55 = vsub.f32 0.0, %v5189_v59  ;;  %v2903_v26 = vmul.f32 %v2744_v57, %v5157_v48 }
 0x28b   : > { %vm2786_vm14 = vcmp.eq.f32.partialorder %v2785_v6, 8.507059e+37 }
 0x28c   : > { %v2361_v53 = vmul.f32 1.442695, %v2301_v55  ;;  %v3515_v34 = vpop.eup %3514  ;;  %v2902_v55 = vmul.f32 %v2729_v40, %v5154_v31  ;;  %v2754_v31 = vsel %vm5271_vm2, %v5205_v12, %v2750_v58  ;;  %v2802_v58 = vand.u32 2147483648, %v5212_v11 }
 0x28d   : > { %v5216_v43 = vpop.eup %3516  ;;  %v5222_v4 = vadd.f32 1.0, %v3515_v34  ;;  %v2759_v3 = vsel %vm2756_vm6, %v2758_v44, %v2754_v31 }
 0x28e   : > { %3518 = vpow2.f32 %v2361_v53  ;;  %v2762_v51 = vmul.f32 %v5216_v43, %v5200_v27  ;;  %v2933_v34 = vmax.f32 %v2902_v55, %v5148_v36  ;;  %vm2767_vm3 = vweird.f32 %v5216_v43 }
 0x28f   : > { %v2265_v46 = vpop.f32.mrf.mxu0  ;;  %3520 = vrcp.f32 %v5208_v39  ;;  %v2971_v35 = vadd.f32 %v5150_v60, %v2902_v55  ;;  %v2904_v60 = vmul.f32 %v2759_v3, %v5162_v18  ;;  %vm5306_vm7 = vmor %vm2766_vm5, %vm2767_vm3  ;;  %v2787_v18 = vand.u32 2147483648, %v5208_v39 }
 0x290   : > { %v5195_v9 = vadd.f32 %v4892_v28, %v2265_v46  ;;  %v2763_v5 = vsub.f32 1.0, %v2762_v51  ;;  %v2934_v24 = vmax.f32 %v2903_v26, %v2933_v34  ;;  %v2803_v31 = vor.u32 1.1754944e-38, %v2802_v58 }
 0x291   : > { %v2972_v51 = vadd.f32 %v2971_v35, %v2903_v26  ;;  %v2788_v57 = vor.u32 1.1754944e-38, %v2787_v18  ;;  %vm2811_vm1 = vweird.f32 %v5222_v4  ;;  %v2817_v26 = vand.u32 2147483648, %v5222_v4 }
 0x292   : > { %v2302_v42 = vsub.f32 0.0, %v5195_v9  ;;  %v2764_v53 = vmul.f32 %v5216_v43, %v2763_v5  ;;  %v2935_v55 = vmax.f32 %v2904_v60, %v2934_v24 }
 0x293   : > { %v2818_v24 = vor.u32 1.1754944e-38, %v2817_v26 }
 0x294   : > { %v2363_v17 = vmul.f32 1.442695, %v2302_v42  ;;  %v3519_v29 = vpop.eup %3518  ;;  %v2765_v12 = vadd.f32 %v5216_v43, %v2764_v53  ;;  %v2973_v53 = vadd.f32 %v2972_v51, %v2904_v60 }
 0x295   : > { %v5231_v54 = vpop.eup %3520  ;;  %v5237_v8 = vadd.f32 1.0, %v3519_v29 }
 0x296   : > { %3522 = vpow2.f32 %v2363_v17  ;;  %v2777_v33 = vmul.f32 %v5231_v54, %v5208_v39  ;;  %v2770_v17 = vand.u32 2147483647, %v5200_v27  ;;  %v2769_v23 = vsel %vm5306_vm7, %v5216_v43, %v2765_v12 }
 0x297   : > { %3524 = vrcp.f32 %v5212_v11  ;;  %vm2782_vm10 = vweird.f32 %v5231_v54  ;;  %v2830_v3 = vand.u32 2147483647, %v5237_v8  ;;  %v2832_v12 = vand.u32 2147483648, %v5237_v8 }
 0x298   : > { %3526 = vrcp.f32 %v5222_v4  ;;  %v2778_v42 = vsub.f32 1.0, %v2777_v33  ;;  %vm5300_vm8 = vcmp.eq.f32.partialorder %v2770_v17, 8.507059e+37  ;;  %vm5327_vm11 = vmor %vm2781_vm9, %vm2782_vm10  ;;  %vm2826_vm3 = vweird.f32 %v5237_v8 }
 0x299   : > { %3528 = vrcp.f32 %v5237_v8  ;;  %v2774_v33 = vsel %vm5300_vm8, %v2773_v41, %v2769_v23  ;;  %vm2831_vm9 = vcmp.eq.f32.partialorder %v2830_v3, 8.507059e+37  ;;  %v2833_v41 = vor.u32 1.1754944e-38, %v2832_v12 }
 0x29a   : > { %v2779_v29 = vmul.f32 %v5231_v54, %v2778_v42  ;;  %v2905_v42 = vmul.f32 %v2774_v33, %v5166_v63 }
 0x29c   : > { %v3523_v25 = vpop.eup %3522  ;;  %v2780_v21 = vadd.f32 %v5231_v54, %v2779_v29  ;;  %v2936_v34 = vmax.f32 %v2905_v42, %v2935_v55  ;;  %v2974_v27 = vadd.f32 %v2973_v53, %v2905_v42 }
 0x29d   : > { %v5247_v45 = vpop.eup %3524  ;;  %v5255_v61 = vadd.f32 1.0, %v3523_v25 }
 0x29e   : > { %v2792_v10 = vmul.f32 %v5247_v45, %v5212_v11  ;;  %v5269_v37 = vpop.eup %3526  ;;  %vm2797_vm4 = vweird.f32 %v5247_v45  ;;  %v2784_v39 = vsel %vm5327_vm11, %v5231_v54, %v2780_v21 }
 0x29f   : > { %3530 = vrcp.f32 %v5255_v61  ;;  %v5280_v32 = vpop.eup %3528  ;;  %v2807_v7 = vmul.f32 %v5269_v37, %v5222_v4  ;;  %vm5339_vm12 = vmor %vm2796_vm13, %vm2797_vm4  ;;  %vm2812_vm15 = vweird.f32 %v5269_v37  ;;  %vm2841_vm10 = vweird.f32 %v5255_v61 }
 0x2a0   : > { %v2793_v0 = vsub.f32 1.0, %v2792_v10  ;;  %v2822_v36 = vmul.f32 %v5280_v32, %v5237_v8  ;;  %v2800_v10 = vand.u32 2147483647, %v5212_v11  ;;  %v2789_v11 = vsel %vm2786_vm14, %v2788_v57, %v2784_v39  ;;  %vm5356_vm6 = vmor %vm2811_vm1, %vm2812_vm15 }
 0x2a1   : > { %v2808_v25 = vsub.f32 1.0, %v2807_v7  ;;  %vm2827_vm2 = vweird.f32 %v5280_v32  ;;  %v2845_v51 = vand.u32 2147483647, %v5255_v61 }
 0x2a2   : > { %v2794_v2 = vmul.f32 %v5247_v45, %v2793_v0  ;;  %v2823_v13 = vsub.f32 1.0, %v2822_v36  ;;  %vm2801_vm0 = vcmp.eq.f32.partialorder %v2800_v10, 8.507059e+37  ;;  %vm5373_vm8 = vmor %vm2826_vm3, %vm2827_vm2 }
 0x2a3   : > { %v2809_v20 = vmul.f32 %v5269_v37, %v2808_v25  ;;  %vm2846_vm14 = vcmp.eq.f32.partialorder %v2845_v51, 8.507059e+37 }
 0x2a4   : > { %v2795_v5 = vadd.f32 %v5247_v45, %v2794_v2  ;;  %v2847_v2 = vand.u32 2147483648, %v5255_v61 }
 0x2a5   : > { %v5298_v1 = vpop.eup %3530  ;;  %v2810_v44 = vadd.f32 %v5269_v37, %v2809_v20 }
 0x2a6   : > { %v2837_v40 = vmul.f32 %v5298_v1, %v5255_v61  ;;  %v2799_v54 = vsel %vm5339_vm12, %v5247_v45, %v2795_v5  ;;  %vm2842_vm7 = vweird.f32 %v5298_v1 }
 0x2a7   : > { %v2268_v38 = vpop.f32.mrf.mxu0  ;;  %v2804_v63 = vsel %vm2801_vm0, %v2803_v31, %v2799_v54  ;;  %vm5386_vm11 = vmor %vm2841_vm10, %vm2842_vm7 }
 0x2a8   : > { %v5261_v46 = vadd.f32 %v4892_v28, %v2268_v38  ;;  %v2838_v49 = vsub.f32 1.0, %v2837_v40  ;;  %v2907_v36 = vmul.f32 %v2804_v63, %v5175_v19 }
 0x2aa   : > { %v2303_v16 = vsub.f32 0.0, %v5261_v46  ;;  %v2839_v45 = vmul.f32 %v5298_v1, %v2838_v49 }
 0x2ac   : > { %v2365_v15 = vmul.f32 1.442695, %v2303_v16  ;;  %v2824_v16 = vmul.f32 %v5280_v32, %v2823_v13  ;;  %v2840_v8 = vadd.f32 %v5298_v1, %v2839_v45 }
 0x2ae   : > { %3532 = vpow2.f32 %v2365_v15  ;;  %v2815_v15 = vand.u32 2147483647, %v5222_v4  ;;  %v2825_v47 = vadd.f32 %v5280_v32, %v2824_v16  ;;  %v2906_v4 = vmul.f32 %v2789_v11, %v5170_v50 }
 0x2af   : > { %v2270_v48 = vpop.f32.mrf.mxu0  ;;  %v2844_v21 = vsel %vm5386_vm11, %v5298_v1, %v2840_v8 }
 0x2b0   : > { %v5296_v30 = vadd.f32 %v4892_v28, %v2270_v48  ;;  %v2814_v48 = vsel %vm5356_vm6, %v5269_v37, %v2810_v44  ;;  %vm2816_vm5 = vcmp.eq.f32.partialorder %v2815_v15, 8.507059e+37  ;;  %v2829_v50 = vsel %vm5373_vm8, %v5280_v32, %v2825_v47 }
 0x2b1   : > { %v2819_v19 = vsel %vm2816_vm5, %v2818_v24, %v2814_v48  ;;  %v2937_v25 = vmax.f32 %v2906_v4, %v2936_v34  ;;  %v2975_v13 = vadd.f32 %v2974_v27, %v2906_v4 }
 0x2b2   : > { %v2304_v28 = vsub.f32 0.0, %v5296_v30  ;;  %v2908_v40 = vmul.f32 %v2819_v19, %v5183_v14 }
 0x2b3   : > { %v2938_v6 = vmax.f32 %v2907_v36, %v2937_v25  ;;  %v2976_v38 = vadd.f32 %v2975_v13, %v2907_v36 }
 0x2b4   : > { %v3533_v52 = vpop.eup %3532  ;;  %v2367_v62 = vmul.f32 1.442695, %v2304_v28  ;;  %v2834_v28 = vsel %vm2831_vm9, %v2833_v41, %v2829_v50 }
 0x2b5   : > { %v5323_v43 = vadd.f32 1.0, %v3533_v52  ;;  %v2909_v58 = vmul.f32 %v2834_v28, %v5189_v59  ;;  %v2941_v10 = vmax.f32 %v2908_v40, %v2938_v6 }
 0x2b6   : > { %3534 = vpow2.f32 %v2367_v62  ;;  %v2848_v62 = vor.u32 1.1754944e-38, %v2847_v2 }
 0x2b7   : > { %3536 = vrcp.f32 %v5323_v43  ;;  %v2862_v23 = vand.u32 2147483648, %v5323_v43  ;;  %vm2856_vm13 = vweird.f32 %v5323_v43  ;;  %v2860_v61 = vand.u32 2147483647, %v5323_v43 }
 0x2b8   : > { %v2849_v1 = vsel %vm2846_vm14, %v2848_v62, %v2844_v21  ;;  %v2939_v49 = vmax.f32 %v2909_v58, %v2941_v10 }
 0x2b9   : > { %v2863_v20 = vor.u32 1.1754944e-38, %v2862_v23  ;;  %vm2861_vm15 = vcmp.eq.f32.partialorder %v2860_v61, 8.507059e+37  ;;  %v2910_v14 = vmul.f32 %v2849_v1, %v5195_v9 }
 0x2bb   : > { %v2940_v11 = vmax.f32 %v2910_v14, %v2939_v49 }
 0x2bc   : > { %v3535_v17 = vpop.eup %3534 }
 0x2bd   : > { %v3537_v0 = vpop.eup %3536  ;;  %v5362_v29 = vadd.f32 1.0, %v3535_v17 }
 0x2be   : > { %v2852_v35 = vmul.f32 %v3537_v0, %v5323_v43  ;;  %vm2857_vm4 = vweird.f32 %v3537_v0  ;;  %v2977_v43 = vadd.f32 %v2976_v38, %v2908_v40 }
 0x2bf   : > { %3538 = vrcp.f32 %v5362_v29  ;;  %vm2858_vm12 = vmor %vm2856_vm13, %vm2857_vm4  ;;  %v2877_v57 = vand.u32 2147483648, %v5362_v29  ;;  %v2875_v16 = vand.u32 2147483647, %v5362_v29  ;;  %vm2871_vm1 = vweird.f32 %v5362_v29 }
 0x2c0   : > { %v2853_v37 = vsub.f32 1.0, %v2852_v35  ;;  %v2978_v53 = vadd.f32 %v2977_v43, %v2909_v58 }
 0x2c1   : > { %v2878_v54 = vor.u32 1.1754944e-38, %v2877_v57  ;;  %vm2876_vm6 = vcmp.eq.f32.partialorder %v2875_v16, 8.507059e+37 }
 0x2c2   : > { %v2854_v60 = vmul.f32 %v3537_v0, %v2853_v37  ;;  %v2979_v31 = vadd.f32 %v2978_v53, %v2910_v14 }
 0x2c4   : > { %v2855_v52 = vadd.f32 %v3537_v0, %v2854_v60 }
 0x2c5   : > { %v3539_v18 = vpop.eup %3538 }
 0x2c6   : > { %v2859_v5 = vsel %vm2858_vm12, %v3537_v0, %v2855_v52  ;;  %v2867_v33 = vmul.f32 %v3539_v18, %v5362_v29  ;;  %vm2872_vm0 = vweird.f32 %v3539_v18 }
 0x2c7   : > { %v2864_v55 = vsel %vm2861_vm15, %v2863_v20, %v2859_v5  ;;  %vm2873_vm2 = vmor %vm2871_vm1, %vm2872_vm0 }
 0x2c8   : > { %v2868_v39 = vsub.f32 1.0, %v2867_v33  ;;  %v2911_v42 = vmul.f32 %v2864_v55, %v5261_v46 }
 0x2ca   : > { %v2869_v56 = vmul.f32 %v3539_v18, %v2868_v39  ;;  %v2942_v9 = vmax.f32 %v2911_v42, %v2940_v11  ;;  %v2980_v26 = vadd.f32 %v2979_v31, %v2911_v42 }
 0x2cc   : > { %v2870_v59 = vadd.f32 %v3539_v18, %v2869_v56 }
 0x2ce   : > { %v2874_v44 = vsel %vm2873_vm2, %v3539_v18, %v2870_v59 }
 0x2cf   : > { %v2879_v15 = vsel %vm2876_vm6, %v2878_v54, %v2874_v44 }
 0x2d0   : > { %v2912_v17 = vmul.f32 %v2879_v15, %v5296_v30 }
 0x2d2   : > { %v2943_v63 = vmax.f32 %v2912_v17, %v2942_v9  ;;  %v2981_v47 = vadd.f32 %v2980_v26, %v2912_v17 }
 0x2d4   : > { %v2944_v45 = vrot.slane %v2943_v63, 4  ;;  %v2982_v46 = vrot.slane %v2981_v47, 4 }
 0x2d6   : > { %v2945_v0 = vmax.f32 %v2943_v63, %v2944_v45  ;;  %v2983_v34 = vadd.f32 %v2982_v46, %v2981_v47 }
 0x2d8   : > { %v2946_v7 = vrot.slane %v2945_v0, 2  ;;  %v2984_v3 = vrot.slane %v2983_v34, 2 }
 0x2da   : > { %v2947_v12 = vmax.f32 %v2945_v0, %v2946_v7  ;;  %v2985_v29 = vadd.f32 %v2984_v3, %v2983_v34 }
 0x2dc   : > { %v2948_v4 = vrot.slane %v2947_v12, 1  ;;  %v2986_v48 = vrot.slane %v2985_v29, 1 }
 0x2de   : > { %v2949_v30 = vmax.f32 %v2947_v12, %v2948_v4  ;;  %v2987_v35 = vadd.f32 %v2986_v48, %v2985_v29 }
 0x2e0   : > { %2950 = vst [vmem:[%s253_s13] sm:$0x1] %v2949_v30 }
 0x2e1   : > { %2988 = vst [vmem:[%s256_s16] sm:$0x1] %v2987_v35 }
 0x2e2 PF: > { %s17_s21 = sadd.s32 1, %s3549_s21  }
 0x2e3   : > { %p14_p4 = scmp.ge.s32.totalorder %s17_s21, 8  }
 0x2e5   :  { %16 = sbr.rel (!%p14_p4) target bundleno = 1 (0x1), region = 85 }

// kernel: effnet_forward.3
= control target key start
LH: loop header
LB: loop body
LE: loop exit
PB: predicated region body
PF: predicated region fallthrough
CT: control target
= control target key end

     0   :  { %vm41_vm0 = vcmask 1042432   ;;  %vm146_vm1 = vcmask 1041409   ;;  %s3137_s0 = inlined_call_operand.vmem [shape: f32[2,3,128], index: 0, kind: input, shape index: {}]   ;;  %s3138_s1 = inlined_call_operand.vmem [shape: f32[2,3,128], index: 1, kind: input, shape index: {}]   ;;  %s3139_s2 = inlined_call_operand.vmem [shape: bf16[128,512], index: 2, kind: input, shape index: {}]   ;;  %s3140_s3 = inlined_call_operand.vmem [shape: bf16[128,512], index: 3, kind: input, shape index: {}]   ;;  %s3141_s4 = inlined_call_operand.vmem [shape: f32[1,512], index: 4, kind: input, shape index: {}]   ;;  %s3142_s5 = inlined_call_operand.vmem [shape: f32[1,512], index: 5, kind: input, shape index: {}]   ;;  %s3143_s6 = inlined_call_operand.vmem [shape: f32[1,512], index: 6, kind: input, shape index: {}]   ;;  %s3144_s7 = inlined_call_operand.vmem [shape: f32[512,32], index: 7, kind: input, shape index: {}]   ;;  %s3145_s8 = inlined_call_operand.vmem [shape: f32[32,512], index: 8, kind: input, shape index: {}]   ;;  %s3146_s9 = inlined_call_operand.vmem [shape: bf16[512,128], index: 9, kind: input, shape index: {}]   ;;  %s3147_s10 = inlined_call_operand.vmem [shape: f32[1,128], index: 10, kind: input, shape index: {}]   ;;  %s3148_s11 = inlined_call_operand.hbm [shape: f32[2,128], index: 11, kind: output, shape index: {}]  }
   0x1   :  { %v1575_v0 = vld [vmem:[%s3140_s3 + $0xe0] sm:$0xf]  ;;  %v1915_v1 = vld [vmem:[%s3140_s3 + $0xec] sm:$0xf0]  ;;  %v1913_v2 = vld [vmem:[%s3140_s3 + $0xe4] sm:$0xf] }
   0x2   :  { %v1576_v3 = vor.u32 %v1915_v1, %v1575_v0  ;;  %v1577_v4 = vld [vmem:[%s3140_s3 + $0xf0] sm:$0xf0]  ;;  %v1583_v5 = vld [vmem:[%s3140_s3 + $0xe8] sm:$0xf]  ;;  %v1916_v6 = vld [vmem:[%s3140_s3 + $0xf4] sm:$0xf0] }
   0x3   :  { %v1580_v7 = vor.u32 %v1913_v2, %v1577_v4  ;;  %v1584_v8 = vor.u32 %v1916_v6, %v1583_v5  ;;  %v1914_v9 = vld [vmem:[%s3140_s3 + $0xec] sm:$0xf]  ;;  %v1585_v10 = vld [vmem:[%s3140_s3 + $0xf8] sm:$0xf0]  ;;  %v1559_v11 = vld [vmem:[%s3140_s3 + $0xc0] sm:$0xf] }
   0x4   :  { %310 = vmatpush.bf16.msra.mxu0 %v1576_v3  ;;  %v1588_v12 = vor.u32 %v1914_v9, %v1585_v10  ;;  %v1911_v13 = vld [vmem:[%s3140_s3 + $0xcc] sm:$0xf0]  ;;  %v1909_v14 = vld [vmem:[%s3140_s3 + $0xc4] sm:$0xf]  ;;  %v1561_v15 = vld [vmem:[%s3140_s3 + $0xd0] sm:$0xf0] }
   0x5   :  { %323 = vmatpush.bf16.msra.mxu1 %v1580_v7  ;;  %336 = vmatpush.bf16.msra.mxu2 %v1584_v8  ;;  %v1560_v16 = vor.u32 %v1911_v13, %v1559_v11  ;;  %v1564_v17 = vor.u32 %v1909_v14, %v1561_v15  ;;  %v1567_v18 = vld [vmem:[%s3140_s3 + $0xc8] sm:$0xf]  ;;  %v1912_v19 = vld [vmem:[%s3140_s3 + $0xd4] sm:$0xf0]  ;;  %v1910_v20 = vld [vmem:[%s3140_s3 + $0xcc] sm:$0xf] }
   0x6   :  { %349 = vmatpush.bf16.msra.mxu3 %v1588_v12  ;;  %v1568_v21 = vor.u32 %v1912_v19, %v1567_v18  ;;  %v1569_v22 = vld [vmem:[%s3140_s3 + $0xd8] sm:$0xf0]  ;;  %v1543_v23 = vld [vmem:[%s3140_s3 + $0xa0] sm:$0xf]  ;;  %v1907_v24 = vld [vmem:[%s3140_s3 + $0xac] sm:$0xf0] }
   0x7   :  { %v1572_v25 = vor.u32 %v1910_v20, %v1569_v22  ;;  %v1905_v26 = vld [vmem:[%s3140_s3 + $0xa4] sm:$0xf]  ;;  %v1545_v27 = vld [vmem:[%s3140_s3 + $0xb0] sm:$0xf0]  ;;  %v1551_v28 = vld [vmem:[%s3140_s3 + $0xa8] sm:$0xf]  ;;  %v1544_v29 = vor.u32 %v1907_v24, %v1543_v23 }
   0x8   :  { %311 = vmatpush.bf16.msra.mxu0 %v1560_v16  ;;  %v1908_v30 = vld [vmem:[%s3140_s3 + $0xb4] sm:$0xf0]  ;;  %v1906_v31 = vld [vmem:[%s3140_s3 + $0xac] sm:$0xf]  ;;  %v1553_v32 = vld [vmem:[%s3140_s3 + $0xb8] sm:$0xf0]  ;;  %v1548_v33 = vor.u32 %v1905_v26, %v1545_v27 }
   0x9   :  { %324 = vmatpush.bf16.msra.mxu1 %v1564_v17  ;;  %337 = vmatpush.bf16.msra.mxu2 %v1568_v21  ;;  %v1552_v34 = vor.u32 %v1908_v30, %v1551_v28  ;;  %v1527_v35 = vld [vmem:[%s3140_s3 + $0x80] sm:$0xf]  ;;  %v1903_v36 = vld [vmem:[%s3140_s3 + $0x8c] sm:$0xf0]  ;;  %v1901_v37 = vld [vmem:[%s3140_s3 + $0x84] sm:$0xf]  ;;  %v1556_v38 = vor.u32 %v1906_v31, %v1553_v32 }
   0xa   :  { %350 = vmatpush.bf16.msra.mxu3 %v1572_v25  ;;  %v1529_v39 = vld [vmem:[%s3140_s3 + $0x90] sm:$0xf0]  ;;  %v1535_v40 = vld [vmem:[%s3140_s3 + $0x88] sm:$0xf]  ;;  %v1904_v41 = vld [vmem:[%s3140_s3 + $0x94] sm:$0xf0]  ;;  %v1528_v44 = vor.u32 %v1903_v36, %v1527_v35 }
   0xb   :  { %v1902_v42 = vld [vmem:[%s3140_s3 + $0x8c] sm:$0xf]  ;;  %v1537_v43 = vld [vmem:[%s3140_s3 + $0x98] sm:$0xf0]  ;;  %v1532_v45 = vor.u32 %v1901_v37, %v1529_v39  ;;  %v1536_v46 = vor.u32 %v1904_v41, %v1535_v40  ;;  %v1511_v47 = vld [vmem:[%s3140_s3 + $0x60] sm:$0xf] }
   0xc   :  { %312 = vmatpush.bf16.msra.mxu0 %v1544_v29  ;;  %v1899_v48 = vld [vmem:[%s3140_s3 + $0x6c] sm:$0xf0]  ;;  %v1897_v49 = vld [vmem:[%s3140_s3 + $0x64] sm:$0xf]  ;;  %v1540_v50 = vor.u32 %v1902_v42, %v1537_v43  ;;  %v1513_v51 = vld [vmem:[%s3140_s3 + $0x70] sm:$0xf0] }
   0xd   :  { %325 = vmatpush.bf16.msra.mxu1 %v1548_v33  ;;  %338 = vmatpush.bf16.msra.mxu2 %v1552_v34  ;;  %v1519_v52 = vld [vmem:[%s3140_s3 + $0x68] sm:$0xf]  ;;  %v1900_v53 = vld [vmem:[%s3140_s3 + $0x74] sm:$0xf0]  ;;  %v1898_v54 = vld [vmem:[%s3140_s3 + $0x6c] sm:$0xf]  ;;  %v1512_v56 = vor.u32 %v1899_v48, %v1511_v47  ;;  %v1516_v57 = vor.u32 %v1897_v49, %v1513_v51 }
   0xe   :  { %351 = vmatpush.bf16.msra.mxu3 %v1556_v38  ;;  %v1521_v55 = vld [vmem:[%s3140_s3 + $0x78] sm:$0xf0]  ;;  %v1520_v58 = vor.u32 %v1900_v53, %v1519_v52  ;;  %v1495_v59 = vld [vmem:[%s3140_s3 + $0x40] sm:$0xf]  ;;  %v1895_v60 = vld [vmem:[%s3140_s3 + $0x4c] sm:$0xf0] }
   0xf   :  { %v1893_v61 = vld [vmem:[%s3140_s3 + $0x44] sm:$0xf]  ;;  %v1524_v62 = vor.u32 %v1898_v54, %v1521_v55  ;;  %v1497_v63 = vld [vmem:[%s3140_s3 + $0x50] sm:$0xf0]  ;;  %v1503_v0 = vld [vmem:[%s3140_s3 + $0x48] sm:$0xf]  ;;  %v1496_v4 = vor.u32 %v1895_v60, %v1495_v59 }
  0x10   :  { %313 = vmatpush.bf16.msra.mxu0 %v1528_v44  ;;  %v1896_v1 = vld [vmem:[%s3140_s3 + $0x54] sm:$0xf0]  ;;  %v1894_v2 = vld [vmem:[%s3140_s3 + $0x4c] sm:$0xf]  ;;  %v1505_v3 = vld [vmem:[%s3140_s3 + $0x58] sm:$0xf0]  ;;  %v1500_v6 = vor.u32 %v1893_v61, %v1497_v63 }
  0x11   :  { %326 = vmatpush.bf16.msra.mxu1 %v1532_v45  ;;  %339 = vmatpush.bf16.msra.mxu2 %v1536_v46  ;;  %v1479_v5 = vld [vmem:[%s3140_s3 + $0x20] sm:$0xf]  ;;  %v1504_v7 = vor.u32 %v1896_v1, %v1503_v0  ;;  %v1891_v8 = vld [vmem:[%s3140_s3 + $0x2c] sm:$0xf0]  ;;  %v1889_v9 = vld [vmem:[%s3140_s3 + $0x24] sm:$0xf]  ;;  %v1508_v11 = vor.u32 %v1894_v2, %v1505_v3 }
  0x12   :  { %352 = vmatpush.bf16.msra.mxu3 %v1540_v50  ;;  %v1481_v10 = vld [vmem:[%s3140_s3 + $0x30] sm:$0xf0]  ;;  %v1487_v12 = vld [vmem:[%s3140_s3 + $0x28] sm:$0xf]  ;;  %v1892_v13 = vld [vmem:[%s3140_s3 + $0x34] sm:$0xf0]  ;;  %v1480_v18 = vor.u32 %v1891_v8, %v1479_v5 }
  0x13   :  { %v1890_v14 = vld [vmem:[%s3140_s3 + $0x2c] sm:$0xf]  ;;  %v1489_v15 = vld [vmem:[%s3140_s3 + $0x38] sm:$0xf0]  ;;  %v1463_v16 = vld [vmem:[%s3140_s3] sm:$0xf]  ;;  %v1484_v22 = vor.u32 %v1889_v9, %v1481_v10  ;;  %v1488_v23 = vor.u32 %v1892_v13, %v1487_v12 }
  0x14   :  { %314 = vmatpush.bf16.msra.mxu0 %v1512_v56  ;;  %v1887_v17 = vld [vmem:[%s3140_s3 + $0xc] sm:$0xf0]  ;;  %v1885_v19 = vld [vmem:[%s3140_s3 + $0x4] sm:$0xf]  ;;  %v1465_v20 = vld [vmem:[%s3140_s3 + $0x10] sm:$0xf0]  ;;  %v1492_v27 = vor.u32 %v1890_v14, %v1489_v15 }
  0x15   :  { %327 = vmatpush.bf16.msra.mxu1 %v1516_v57  ;;  %340 = vmatpush.bf16.msra.mxu2 %v1520_v58  ;;  %v1471_v21 = vld [vmem:[%s3140_s3 + $0x8] sm:$0xf]  ;;  %v1888_v24 = vld [vmem:[%s3140_s3 + $0x14] sm:$0xf0]  ;;  %v1886_v25 = vld [vmem:[%s3140_s3 + $0xc] sm:$0xf]  ;;  %v1464_v33 = vor.u32 %v1887_v17, %v1463_v16  ;;  %v1468_v37 = vor.u32 %v1885_v19, %v1465_v20 }
  0x16   :  { %353 = vmatpush.bf16.msra.mxu3 %v1524_v62  ;;  %v1473_v26 = vld [vmem:[%s3140_s3 + $0x18] sm:$0xf0]  ;;  %v1703_v28 = vld [vmem:[%s3139_s2 + $0xe0] sm:$0xf]  ;;  %v1883_v29 = vld [vmem:[%s3139_s2 + $0xec] sm:$0xf0]  ;;  %v1472_v38 = vor.u32 %v1888_v24, %v1471_v21 }
  0x17   :  { %v1881_v30 = vld [vmem:[%s3139_s2 + $0xe4] sm:$0xf]  ;;  %v1705_v31 = vld [vmem:[%s3139_s2 + $0xf0] sm:$0xf0]  ;;  %v1711_v32 = vld [vmem:[%s3139_s2 + $0xe8] sm:$0xf]  ;;  %v1476_v43 = vor.u32 %v1886_v25, %v1473_v26  ;;  %v1704_v44 = vor.u32 %v1883_v29, %v1703_v28 }
  0x18   :  { %315 = vmatpush.bf16.msra.mxu0 %v1496_v4  ;;  %v1884_v34 = vld [vmem:[%s3139_s2 + $0xf4] sm:$0xf0]  ;;  %v58_v35 = vld [vmem:[%s3138_s1] sm:$0x7]  ;;  %v59_v36 = vld [vmem:[%s3138_s1 + $0x4] sm:$0x7]  ;;  %v1708_v47 = vor.u32 %v1881_v30, %v1705_v31 }
  0x19   :  { %328 = vmatpush.bf16.msra.mxu1 %v1500_v6  ;;  %341 = vmatpush.bf16.msra.mxu2 %v1504_v7  ;;  %v1882_v39 = vld [vmem:[%s3139_s2 + $0xec] sm:$0xf]  ;;  %v1713_v40 = vld [vmem:[%s3139_s2 + $0xf8] sm:$0xf0]  ;;  %v60_v41 = vsel %vm41_vm0, %v58_v35, 0.0  ;;  %v67_v42 = vsel %vm41_vm0, %v59_v36, 0.0  ;;  %v1712_v48 = vor.u32 %v1884_v34, %v1711_v32 }
  0x1a   :  { %354 = vmatpush.bf16.msra.mxu3 %v1508_v11  ;;  %v61_v45 = vrot.slane %v60_v41, 4  ;;  %v68_v46 = vrot.slane %v67_v42, 4  ;;  %v1687_v49 = vld [vmem:[%s3139_s2 + $0xc0] sm:$0xf]  ;;  %v1879_v50 = vld [vmem:[%s3139_s2 + $0xcc] sm:$0xf0]  ;;  %v1716_v52 = vor.u32 %v1882_v39, %v1713_v40 }
  0x1b   :  { %v1877_v51 = vld [vmem:[%s3139_s2 + $0xc4] sm:$0xf]  ;;  %v1689_v53 = vld [vmem:[%s3139_s2 + $0xd0] sm:$0xf0]  ;;  %v1695_v54 = vld [vmem:[%s3139_s2 + $0xc8] sm:$0xf]  ;;  %v1688_v60 = vor.u32 %v1879_v50, %v1687_v49 }
  0x1c   :  { %316 = vmatpush.bf16.msra.mxu0 %v1480_v18  ;;  %v1880_v55 = vld [vmem:[%s3139_s2 + $0xd4] sm:$0xf0]  ;;  %v62_v56 = vadd.f32 %v61_v45, %v60_v41  ;;  %v69_v57 = vadd.f32 %v68_v46, %v67_v42  ;;  %v1878_v58 = vld [vmem:[%s3139_s2 + $0xcc] sm:$0xf]  ;;  %v1697_v59 = vld [vmem:[%s3139_s2 + $0xd8] sm:$0xf0]  ;;  %v1692_v63 = vor.u32 %v1877_v51, %v1689_v53 }
  0x1d   :  { %329 = vmatpush.bf16.msra.mxu1 %v1484_v22  ;;  %342 = vmatpush.bf16.msra.mxu2 %v1488_v23  ;;  %v1696_v0 = vor.u32 %v1880_v55, %v1695_v54  ;;  %v1671_v1 = vld [vmem:[%s3139_s2 + $0xa0] sm:$0xf]  ;;  %v1875_v2 = vld [vmem:[%s3139_s2 + $0xac] sm:$0xf0]  ;;  %v1873_v3 = vld [vmem:[%s3139_s2 + $0xa4] sm:$0xf]  ;;  %v1700_v4 = vor.u32 %v1878_v58, %v1697_v59 }
  0x1e   :  { %355 = vmatpush.bf16.msra.mxu3 %v1492_v27  ;;  %v63_v61 = vrot.slane %v62_v56, 2  ;;  %v70_v62 = vrot.slane %v69_v57, 2  ;;  %v1673_v7 = vld [vmem:[%s3139_s2 + $0xb0] sm:$0xf0]  ;;  %v1679_v8 = vld [vmem:[%s3139_s2 + $0xa8] sm:$0xf]  ;;  %v1672_v14 = vor.u32 %v1875_v2, %v1671_v1 }
  0x1f   :  { %v1876_v9 = vld [vmem:[%s3139_s2 + $0xb4] sm:$0xf0]  ;;  %v1874_v10 = vld [vmem:[%s3139_s2 + $0xac] sm:$0xf]  ;;  %v1681_v11 = vld [vmem:[%s3139_s2 + $0xb8] sm:$0xf0]  ;;  %v1676_v15 = vor.u32 %v1873_v3, %v1673_v7 }
  0x20   :  { %317 = vmatpush.bf16.msra.mxu0 %v1464_v33  ;;  %v64_v5 = vadd.f32 %v63_v61, %v62_v56  ;;  %v71_v6 = vadd.f32 %v70_v62, %v69_v57  ;;  %v1680_v16 = vor.u32 %v1876_v9, %v1679_v8  ;;  %v1655_v17 = vld [vmem:[%s3139_s2 + $0x80] sm:$0xf]  ;;  %v1871_v18 = vld [vmem:[%s3139_s2 + $0x8c] sm:$0xf0]  ;;  %v1869_v19 = vld [vmem:[%s3139_s2 + $0x84] sm:$0xf]  ;;  %v1684_v22 = vor.u32 %v1874_v10, %v1681_v11 }
  0x21   :  { %330 = vmatpush.bf16.msra.mxu1 %v1468_v37  ;;  %343 = vmatpush.bf16.msra.mxu2 %v1472_v38  ;;  %v1657_v23 = vld [vmem:[%s3139_s2 + $0x90] sm:$0xf0]  ;;  %v1663_v24 = vld [vmem:[%s3139_s2 + $0x88] sm:$0xf]  ;;  %v1872_v25 = vld [vmem:[%s3139_s2 + $0x94] sm:$0xf0]  ;;  %v1656_v30 = vor.u32 %v1871_v18, %v1655_v17 }
  0x22   :  { %356 = vmatpush.bf16.msra.mxu3 %v1476_v43  ;;  %v65_v12 = vrot.slane %v64_v5, 1  ;;  %v72_v13 = vrot.slane %v71_v6, 1  ;;  %v1870_v26 = vld [vmem:[%s3139_s2 + $0x8c] sm:$0xf]  ;;  %v1665_v27 = vld [vmem:[%s3139_s2 + $0x98] sm:$0xf0]  ;;  %v1660_v31 = vor.u32 %v1869_v19, %v1657_v23  ;;  %v1664_v32 = vor.u32 %v1872_v25, %v1663_v24 }
  0x23   :  { %v1639_v33 = vld [vmem:[%s3139_s2 + $0x60] sm:$0xf]  ;;  %v1867_v34 = vld [vmem:[%s3139_s2 + $0x6c] sm:$0xf0]  ;;  %v1668_v37 = vor.u32 %v1870_v26, %v1665_v27  ;;  %v1865_v38 = vld [vmem:[%s3139_s2 + $0x64] sm:$0xf] }
  0x24   :  { %529 = vmatpush.bf16.msrb.mxu0 %v1704_v44  ;;  %v66_v20 = vadd.f32 %v65_v12, %v64_v5  ;;  %v73_v21 = vadd.f32 %v72_v13, %v71_v6  ;;  %v1641_v39 = vld [vmem:[%s3139_s2 + $0x70] sm:$0xf0]  ;;  %v1647_v40 = vld [vmem:[%s3139_s2 + $0x68] sm:$0xf]  ;;  %v1868_v41 = vld [vmem:[%s3139_s2 + $0x74] sm:$0xf0]  ;;  %v1640_v46 = vor.u32 %v1867_v34, %v1639_v33 }
  0x25   :  { %542 = vmatpush.bf16.msrb.mxu1 %v1708_v47  ;;  %555 = vmatpush.bf16.msrb.mxu2 %v1712_v48  ;;  %v1866_v42 = vld [vmem:[%s3139_s2 + $0x6c] sm:$0xf]  ;;  %v1649_v43 = vld [vmem:[%s3139_s2 + $0x78] sm:$0xf0]  ;;  %v1623_v47 = vld [vmem:[%s3139_s2 + $0x40] sm:$0xf] }
  0x26   :  { %568 = vmatpush.bf16.msrb.mxu3 %v1716_v52  ;;  %v74_v28 = vmul.f32 0.0013020834, %v66_v20  ;;  %v75_v29 = vmul.f32 0.0013020834, %v73_v21  ;;  %v1863_v48 = vld [vmem:[%s3139_s2 + $0x4c] sm:$0xf0] }
  0x27   :  { %v39_v49 = vld [vmem:[%s3137_s0] sm:$0x7]  ;;  %v40_v50 = vld [vmem:[%s3137_s0 + $0x4] sm:$0x7] }
  0x28   :  { %530 = vmatpush.bf16.msrb.mxu0 %v1688_v60  ;;  %v76_v35 = vpack.c.bf16 %v74_v28, %v74_v28  ;;  %v77_v36 = vpack.c.bf16 %v75_v29, %v75_v29  ;;  %v42_v51 = vsel %vm41_vm0, %v39_v49, -inf  ;;  %v49_v54 = vsel %vm41_vm0, %v40_v50, -inf }
  0x29   :  { %543 = vmatpush.bf16.msrb.mxu1 %v1692_v63  ;;  %556 = vmatpush.bf16.msrb.mxu2 %v1696_v0  ;;  %v43_v53 = vrot.slane %v42_v51, 4 }
  0x2a   :  { %569 = vmatpush.bf16.msrb.mxu3 %v1700_v4  ;;  %v144_v44 = vunpack.c.l.b16 %v76_v35  ;;  %v145_v45 = vunpack.c.l.b16 %v77_v36 }
  0x2c   :  { %531 = vmatpush.bf16.msrb.mxu0 %v1672_v14  ;;  %v147_v52 = vsel %vm146_vm1, %v145_v45, %v144_v44 }
  0x2d   :  { %544 = vmatpush.bf16.msrb.mxu1 %v1676_v15  ;;  %557 = vmatpush.bf16.msrb.mxu2 %v1680_v16 }
  0x2e   :  { %570 = vmatpush.bf16.msrb.mxu3 %v1684_v22 }
  0x30   :  { %532 = vmatpush.bf16.msrb.mxu0 %v1656_v30 }
  0x31   :  { %545 = vmatpush.bf16.msrb.mxu1 %v1660_v31  ;;  %558 = vmatpush.bf16.msrb.mxu2 %v1664_v32 }
  0x32   :  { %571 = vmatpush.bf16.msrb.mxu3 %v1668_v37 }
  0x33   :  { %16 = vsyncpa [#allocation3], 0  ;;  %v148_v55 = vpack.c.b16 %v147_v52, %v147_v52  ;;  %v1644_v56 = vor.u32 %v1865_v38, %v1641_v39  ;;  %v1648_v57 = vor.u32 %v1868_v41, %v1647_v40  ;;  %v1861_v58 = vld [vmem:[%s3139_s2 + $0x44] sm:$0xf]  ;;  %v1625_v59 = vld [vmem:[%s3139_s2 + $0x50] sm:$0xf0]  ;;  %v1652_v61 = vor.u32 %v1866_v42, %v1649_v43 }
  0x34   :  { %v50_v60 = vrot.slane %v49_v54, 4  ;;  %533 = vmatpush.bf16.msrb.mxu0 %v1640_v46  ;;  %v1624_v62 = vor.u32 %v1863_v48, %v1623_v47  ;;  %v1631_v63 = vld [vmem:[%s3139_s2 + $0x48] sm:$0xf]  ;;  %v1864_v0 = vld [vmem:[%s3139_s2 + $0x54] sm:$0xf0]  ;;  %v44_v2 = vmax.f32 %v42_v51, %v43_v53  ;;  %v1628_v8 = vor.u32 %v1861_v58, %v1625_v59  ;;  %v2479_v48 = vld [vmem:[%s3144_s7 + $0x70] sm:$0xff] }
  0x35   :  { %v1862_v1 = vld [vmem:[%s3139_s2 + $0x4c] sm:$0xf]  ;;  %344 = vmatmul.bf16.vlgmr.msra.gmra.mxu2 %v148_v55  ;;  %357 = vmatmul.bf16.vlgmr.msra.gmra.mxu3 %v148_v55  ;;  %v1633_v3 = vld [vmem:[%s3139_s2 + $0x58] sm:$0xf0]  ;;  %v1607_v4 = vld [vmem:[%s3139_s2 + $0x20] sm:$0xf]  ;;  %v1632_v9 = vor.u32 %v1864_v0, %v1631_v63 }
  0x36   :  { %v1859_v5 = vld [vmem:[%s3139_s2 + $0x2c] sm:$0xf0]  ;;  %v51_v6 = vmax.f32 %v49_v54, %v50_v60  ;;  %318 = vmatmul.bf16.vlgmr.msra.gmra.mxu0 %v148_v55  ;;  %331 = vmatmul.bf16.vlgmr.msra.gmra.mxu1 %v148_v55  ;;  %v45_v7 = vrot.slane %v44_v2, 2  ;;  %v1857_v10 = vld [vmem:[%s3139_s2 + $0x24] sm:$0xf]  ;;  %v1636_v13 = vor.u32 %v1862_v1, %v1633_v3  ;;  %v2469_v46 = vld [vmem:[%s3144_s7 + $0x78] sm:$0xff] }
  0x37   :  { %546 = vmatpush.bf16.msrb.mxu1 %v1644_v56  ;;  %559 = vmatpush.bf16.msrb.mxu2 %v1648_v57  ;;  %v1609_v11 = vld [vmem:[%s3139_s2 + $0x30] sm:$0xf0]  ;;  %v1608_v14 = vor.u32 %v1859_v5, %v1607_v4  ;;  %v1615_v15 = vld [vmem:[%s3139_s2 + $0x28] sm:$0xf]  ;;  %v1860_v16 = vld [vmem:[%s3139_s2 + $0x34] sm:$0xf0] }
  0x38   :  { %v52_v12 = vrot.slane %v51_v6, 2  ;;  %572 = vmatpush.bf16.msrb.mxu3 %v1652_v61  ;;  %534 = vmatpush.bf16.msrb.mxu0 %v1624_v62  ;;  %v1858_v17 = vld [vmem:[%s3139_s2 + $0x2c] sm:$0xf]  ;;  %v46_v18 = vmax.f32 %v44_v2, %v45_v7  ;;  %v1617_v19 = vld [vmem:[%s3139_s2 + $0x38] sm:$0xf0]  ;;  %v1612_v24 = vor.u32 %v1857_v10, %v1609_v11  ;;  %v1616_v25 = vor.u32 %v1860_v16, %v1615_v15  ;;  %v2486_v49 = vld [vmem:[%s3144_s7 + $0xf0] sm:$0xff] }
  0x39   :  { %v1591_v20 = vld [vmem:[%s3139_s2] sm:$0xf]  ;;  %v1855_v21 = vld [vmem:[%s3139_s2 + $0xc] sm:$0xf0]  ;;  %v1853_v26 = vld [vmem:[%s3139_s2 + $0x4] sm:$0xf]  ;;  %v1620_v28 = vor.u32 %v1858_v17, %v1617_v19 }
  0x3a   :  { %v53_v22 = vmax.f32 %v51_v6, %v52_v12  ;;  %v47_v23 = vrot.slane %v46_v18, 1  ;;  %v1592_v29 = vor.u32 %v1855_v21, %v1591_v20  ;;  %v1593_v30 = vld [vmem:[%s3139_s2 + $0x10] sm:$0xf0]  ;;  %v1599_v31 = vld [vmem:[%s3139_s2 + $0x8] sm:$0xf]  ;;  %v2474_v47 = vld [vmem:[%s3144_s7 + $0xf8] sm:$0xff] }
  0x3b   :  { %547 = vmatpush.bf16.msrb.mxu1 %v1628_v8  ;;  %560 = vmatpush.bf16.msrb.mxu2 %v1632_v9  ;;  %v1856_v32 = vld [vmem:[%s3139_s2 + $0x14] sm:$0xf0]  ;;  %v1854_v34 = vld [vmem:[%s3139_s2 + $0xc] sm:$0xf]  ;;  %v1601_v35 = vld [vmem:[%s3139_s2 + $0x18] sm:$0xf0]  ;;  %v1596_v38 = vor.u32 %v1853_v26, %v1593_v30 }
  0x3c   :  { %v54_v27 = vrot.slane %v53_v22, 1  ;;  %573 = vmatpush.bf16.msrb.mxu3 %v1636_v13  ;;  %535 = vmatpush.bf16.msrb.mxu0 %v1608_v14  ;;  %v48_v33 = vmax.f32 %v46_v18, %v47_v23  ;;  %v1600_v39 = vor.u32 %v1856_v32, %v1599_v31  ;;  %v1604_v41 = vor.u32 %v1854_v34, %v1601_v35  ;;  %v2493_v50 = vld [vmem:[%s3144_s7 + $0x68] sm:$0xff]  ;;  %v2503_v52 = vld [vmem:[%s3144_s7 + $0x60] sm:$0xff]  ;;  %v2515_v54 = vld [vmem:[%s3144_s7 + $0x178] sm:$0xff] }
  0x3d   :  { %v2498_v51 = vld [vmem:[%s3144_s7 + $0xe8] sm:$0xff]  ;;  %v2510_v53 = vld [vmem:[%s3144_s7 + $0xe0] sm:$0xff]  ;;  %v2520_v55 = vld [vmem:[%s3144_s7 + $0x1f8] sm:$0xff]  ;;  %vm923_vm8 = vcmask 261120  }
  0x3e   :  { %v55_v36 = vmax.f32 %v53_v22, %v54_v27  ;;  %v56_v37 = vpack.c.bf16 %v48_v33, %v48_v33  ;;  %v2527_v56 = vld [vmem:[%s3144_s7 + $0x58] sm:$0xff]  ;;  %v2537_v58 = vld [vmem:[%s3144_s7 + $0x170] sm:$0xff]  ;;  %v2561_v62 = vld [vmem:[%s3144_s7 + $0x168] sm:$0xff] }
  0x3f   :  { %548 = vmatpush.bf16.msrb.mxu1 %v1612_v24  ;;  %561 = vmatpush.bf16.msrb.mxu2 %v1616_v25  ;;  %v2532_v57 = vld [vmem:[%s3144_s7 + $0xd8] sm:$0xff]  ;;  %v2544_v59 = vld [vmem:[%s3144_s7 + $0x1f0] sm:$0xff]  ;;  %v2566_v63 = vld [vmem:[%s3144_s7 + $0x1e8] sm:$0xff] }
  0x40   :  { %v57_v40 = vpack.c.bf16 %v55_v36, %v55_v36  ;;  %574 = vmatpush.bf16.msrb.mxu3 %v1620_v28  ;;  %536 = vmatpush.bf16.msrb.mxu0 %v1592_v29  ;;  %v364_v42 = vunpack.c.l.b16 %v56_v37  ;;  %v2549_v60 = vld [vmem:[%s3144_s7 + $0x50] sm:$0xff]  ;;  %v2573_v0 = vld [vmem:[%s3144_s7 + $0x160] sm:$0xff]  ;;  %v2585_v2 = vld [vmem:[%s3144_s7 + $0x48] sm:$0xff] }
  0x41   :  { %v2556_v61 = vld [vmem:[%s3144_s7 + $0xd0] sm:$0xff]  ;;  %v2578_v1 = vld [vmem:[%s3144_s7 + $0x1e0] sm:$0xff]  ;;  %v2590_v3 = vld [vmem:[%s3144_s7 + $0xc8] sm:$0xff] }
  0x42   :  { %v365_v43 = vunpack.c.l.b16 %v57_v40  ;;  %v2601_v4 = vld [vmem:[%s3144_s7 + $0x40] sm:$0xff]  ;;  %v2611_v6 = vld [vmem:[%s3144_s7 + $0x158] sm:$0xff]  ;;  %v2635_v10 = vld [vmem:[%s3144_s7 + $0x150] sm:$0xff] }
  0x43   :  { %549 = vmatpush.bf16.msrb.mxu1 %v1596_v38  ;;  %562 = vmatpush.bf16.msrb.mxu2 %v1600_v39  ;;  %v2606_v5 = vld [vmem:[%s3144_s7 + $0xc0] sm:$0xff]  ;;  %v2618_v7 = vld [vmem:[%s3144_s7 + $0x1d8] sm:$0xff]  ;;  %v2642_v11 = vld [vmem:[%s3144_s7 + $0x1d0] sm:$0xff] }
  0x44   :  { %v366_v44 = vsel %vm146_vm1, %v365_v43, %v364_v42  ;;  %575 = vmatpush.bf16.msrb.mxu3 %v1604_v41  ;;  %743 = vmatpush.msra.mxu0 %v2469_v46  ;;  %v2625_v8 = vld [vmem:[%s3144_s7 + $0x38] sm:$0xff]  ;;  %v2649_v12 = vld [vmem:[%s3144_s7 + $0x30] sm:$0xff]  ;;  %v2659_v14 = vld [vmem:[%s3144_s7 + $0x148] sm:$0xff] }
  0x45   :  { %v367_v45 = vpack.c.b16 %v366_v44, %v366_v44  ;;  %v2630_v9 = vld [vmem:[%s3144_s7 + $0xb8] sm:$0xff]  ;;  %v2654_v13 = vld [vmem:[%s3144_s7 + $0xb0] sm:$0xff]  ;;  %v2666_v15 = vld [vmem:[%s3144_s7 + $0x1c8] sm:$0xff] }
  0x46   :  { %744 = vmatpush.msra.mxu0 %v2479_v48  ;;  %v2673_v16 = vld [vmem:[%s3144_s7 + $0x28] sm:$0xff]  ;;  %v2683_v18 = vld [vmem:[%s3144_s7 + $0x140] sm:$0xff]  ;;  %v2707_v22 = vld [vmem:[%s3144_s7 + $0x138] sm:$0xff] }
  0x47   :  { %537 = vmatmul.bf16.vlgmr.msrb.gmra.mxu0 %v367_v45  ;;  %550 = vmatmul.bf16.vlgmr.msrb.gmra.mxu1 %v367_v45  ;;  %v2678_v17 = vld [vmem:[%s3144_s7 + $0xa8] sm:$0xff]  ;;  %v2690_v19 = vld [vmem:[%s3144_s7 + $0x1c0] sm:$0xff]  ;;  %v2718_v25 = vld [vmem:[%s3144_s7 + $0x1b8] sm:$0xff] }
  0x48   :  { %563 = vmatmul.bf16.vlgmr.msrb.gmra.mxu2 %v367_v45  ;;  %576 = vmatmul.bf16.vlgmr.msrb.gmra.mxu3 %v367_v45  ;;  %v2697_v20 = vld [vmem:[%s3144_s7 + $0x20] sm:$0xff]  ;;  %v2725_v26 = vld [vmem:[%s3144_s7 + $0x18] sm:$0xff]  ;;  %v2735_v28 = vld [vmem:[%s3144_s7 + $0x130] sm:$0xff] }
  0x49   :  { %763 = vmatpush.msra.mxu1 %v2474_v47  ;;  %745 = vmatpush.msra.mxu0 %v2493_v50  ;;  %v2702_v21 = vld [vmem:[%s3144_s7 + $0xa0] sm:$0xff]  ;;  %v2730_v27 = vld [vmem:[%s3144_s7 + $0x98] sm:$0xff]  ;;  %v2742_v29 = vld [vmem:[%s3144_s7 + $0x1b0] sm:$0xff] }
  0x4a   :  { %783 = vmatpush.msra.mxu2 %v2515_v54  ;;  %803 = vmatpush.msra.mxu3 %v2520_v55  ;;  %v2749_v30 = vld [vmem:[%s3144_s7 + $0x10] sm:$0xff]  ;;  %v2759_v32 = vld [vmem:[%s3144_s7 + $0x128] sm:$0xff]  ;;  %v2787_v38 = vld [vmem:[%s3144_s7 + $0x120] sm:$0xff] }
  0x4b   :  { %764 = vmatpush.msra.mxu1 %v2486_v49  ;;  %746 = vmatpush.msra.mxu0 %v2503_v52  ;;  %v2754_v31 = vld [vmem:[%s3144_s7 + $0x90] sm:$0xff]  ;;  %v2766_v33 = vld [vmem:[%s3144_s7 + $0x1a8] sm:$0xff]  ;;  %v2794_v39 = vld [vmem:[%s3144_s7 + $0x1a0] sm:$0xff] }
  0x4c   :  { %784 = vmatpush.msra.mxu2 %v2537_v58  ;;  %804 = vmatpush.msra.mxu3 %v2544_v59  ;;  %v2777_v36 = vld [vmem:[%s3144_s7 + $0x8] sm:$0xff]  ;;  %3156 = vst [vmem:[#allocation5_spill] sm:$0xff] %v2794_v39  ;;  %v2801_v40 = vld [vmem:[%s3144_s7] sm:$0xff]  ;;  %v2811_v42 = vld [vmem:[%s3144_s7 + $0x118] sm:$0xff] }
  0x4d   :  { %765 = vmatpush.msra.mxu1 %v2498_v51  ;;  %747 = vmatpush.msra.mxu0 %v2527_v56  ;;  %v2782_v37 = vld [vmem:[%s3144_s7 + $0x88] sm:$0xff]  ;;  %v2806_v41 = vld [vmem:[%s3144_s7 + $0x80] sm:$0xff]  ;;  %3157 = vst [vmem:[#allocation6_spill] sm:$0xff] %v2811_v42  ;;  %v2818_v45 = vld [vmem:[%s3144_s7 + $0x198] sm:$0xff] }
  0x4e   :  { %785 = vmatpush.msra.mxu2 %v2561_v62  ;;  %805 = vmatpush.msra.mxu3 %v2566_v63  ;;  %3158 = vst [vmem:[#allocation7_spill] sm:$0xff] %v2818_v45 }
  0x4f   :  { %766 = vmatpush.msra.mxu1 %v2510_v53  ;;  %748 = vmatpush.msra.mxu0 %v2549_v60 }
  0x50   :  { %786 = vmatpush.msra.mxu2 %v2573_v0  ;;  %806 = vmatpush.msra.mxu3 %v2578_v1 }
  0x51   :  { %767 = vmatpush.msra.mxu1 %v2532_v57  ;;  %749 = vmatpush.msra.mxu0 %v2585_v2 }
  0x52   :  { %787 = vmatpush.msra.mxu2 %v2611_v6  ;;  %807 = vmatpush.msra.mxu3 %v2618_v7 }
  0x53   :  { %768 = vmatpush.msra.mxu1 %v2556_v61  ;;  %750 = vmatpush.msra.mxu0 %v2601_v4 }
  0x54   :  { %788 = vmatpush.msra.mxu2 %v2635_v10  ;;  %808 = vmatpush.msra.mxu3 %v2642_v11 }
  0x55   :  { %769 = vmatpush.msra.mxu1 %v2590_v3  ;;  %751 = vmatpush.msra.mxu0 %v2625_v8 }
  0x56   :  { %789 = vmatpush.msra.mxu2 %v2659_v14  ;;  %809 = vmatpush.msra.mxu3 %v2666_v15 }
  0x57   :  { %770 = vmatpush.msra.mxu1 %v2606_v5  ;;  %752 = vmatpush.msra.mxu0 %v2649_v12 }
  0x58   :  { %790 = vmatpush.msra.mxu2 %v2683_v18  ;;  %810 = vmatpush.msra.mxu3 %v2690_v19 }
  0x59   :  { %771 = vmatpush.msra.mxu1 %v2630_v9  ;;  %753 = vmatpush.msra.mxu0 %v2673_v16 }
  0x5a   :  { %791 = vmatpush.msra.mxu2 %v2707_v22  ;;  %811 = vmatpush.msra.mxu3 %v2718_v25 }
  0x5b   :  { %772 = vmatpush.msra.mxu1 %v2654_v13  ;;  %754 = vmatpush.msra.mxu0 %v2697_v20 }
  0x5c   :  { %792 = vmatpush.msra.mxu2 %v2735_v28  ;;  %812 = vmatpush.msra.mxu3 %v2742_v29 }
  0x5d   :  { %773 = vmatpush.msra.mxu1 %v2678_v17  ;;  %755 = vmatpush.msra.mxu0 %v2725_v26 }
  0x5e   :  { %793 = vmatpush.msra.mxu2 %v2759_v32  ;;  %813 = vmatpush.msra.mxu3 %v2766_v33 }
  0x5f   :  { %774 = vmatpush.msra.mxu1 %v2702_v21  ;;  %756 = vmatpush.msra.mxu0 %v2749_v30 }
  0x60   :  { %794 = vmatpush.msra.mxu2 %v2787_v38  ;;  %814 = vmatpush.msra.mxu3 %v2794_v39  ;;  %v2825_v39 = vld [vmem:[%s3144_s7 + $0x110] sm:$0xff] }
  0x61   :  { %775 = vmatpush.msra.mxu1 %v2730_v27  ;;  %757 = vmatpush.msra.mxu0 %v2777_v36  ;;  %3159 = vst [vmem:[#allocation8_spill] sm:$0xff] %v2825_v39 }
  0x62   :  { %795 = vmatpush.msra.mxu2 %v2811_v42  ;;  %815 = vmatpush.msra.mxu3 %v2818_v45  ;;  %v2844_v45 = vld [vmem:[%s3144_s7 + $0x188] sm:$0xff]  ;;  %v2861_v42 = vld [vmem:[%s3144_s7 + $0x180] sm:$0xff] }
  0x63   :  { %776 = vmatpush.msra.mxu1 %v2754_v31  ;;  %758 = vmatpush.msra.mxu0 %v2801_v40  ;;  %3162 = vst [vmem:[#allocation11_spill] sm:$0xff] %v2844_v45 }
  0x64   :  { %796 = vmatpush.msra.mxu2 %v2825_v39  ;;  %v2856_v39 = vld [vmem:[%s3144_s7 + $0x100] sm:$0xff] }
  0x65   :  { %777 = vmatpush.msra.mxu1 %v2782_v37  ;;  %828 = vmatpush.msrb.mxu0 %v2469_v46  ;;  %v581_v46 = vld [vmem:[%s3141_s4] sm:$0xf]  ;;  %s1452_s4 = sshll.u32 %s3148_s11, 4  ;;  %s1453_s4 = int_to_ptr.hbm [resolvable:$true] %s1452_s4 }
  0x67   :  { %778 = vmatpush.msra.mxu1 %v2806_v41  ;;  %829 = vmatpush.msrb.mxu0 %v2479_v48  ;;  %v583_v48 = vperm.slane %v581_v46, 0 }
  0x69   :  { %848 = vmatpush.msrb.mxu1 %v2474_v47  ;;  %830 = vmatpush.msrb.mxu0 %v2493_v50 }
  0x6b   :  { %849 = vmatpush.msrb.mxu1 %v2486_v49  ;;  %v584_v49 = vperm.slane %v581_v46, 1  ;;  %831 = vmatpush.msrb.mxu0 %v2503_v52 }
  0x6d   :  { %850 = vmatpush.msrb.mxu1 %v2498_v51  ;;  %832 = vmatpush.msrb.mxu0 %v2527_v56 }
  0x6f   :  { %851 = vmatpush.msrb.mxu1 %v2510_v53  ;;  %833 = vmatpush.msrb.mxu0 %v2549_v60 }
  0x71   :  { %852 = vmatpush.msrb.mxu1 %v2532_v57  ;;  %834 = vmatpush.msrb.mxu0 %v2585_v2 }
  0x73   :  { %853 = vmatpush.msrb.mxu1 %v2556_v61  ;;  %835 = vmatpush.msrb.mxu0 %v2601_v4 }
  0x75   :  { %854 = vmatpush.msrb.mxu1 %v2590_v3  ;;  %836 = vmatpush.msrb.mxu0 %v2625_v8 }
  0x77   :  { %855 = vmatpush.msrb.mxu1 %v2606_v5  ;;  %837 = vmatpush.msrb.mxu0 %v2649_v12 }
  0x79   :  { %856 = vmatpush.msrb.mxu1 %v2630_v9  ;;  %838 = vmatpush.msrb.mxu0 %v2673_v16 }
  0x7b   :  { %857 = vmatpush.msrb.mxu1 %v2654_v13  ;;  %839 = vmatpush.msrb.mxu0 %v2697_v20 }
  0x7d   :  { %858 = vmatpush.msrb.mxu1 %v2678_v17  ;;  %840 = vmatpush.msrb.mxu0 %v2725_v26  ;;  %v3164_v26 = vld [vmem:[#allocation6_spill] sm:$0xff] }
  0x7f   :  { %859 = vmatpush.msrb.mxu1 %v2702_v21  ;;  %841 = vmatpush.msrb.mxu0 %v2749_v30 }
  0x81   :  { %860 = vmatpush.msrb.mxu1 %v2730_v27  ;;  %842 = vmatpush.msrb.mxu0 %v2777_v36  ;;  %v3165_v27 = vld [vmem:[#allocation7_spill] sm:$0xff]  ;;  %v3166_v36 = vld [vmem:[#allocation8_spill] sm:$0xff] }
  0x83   :  { %861 = vmatpush.msrb.mxu1 %v2754_v31  ;;  %843 = vmatpush.msrb.mxu0 %v2801_v40 }
  0x85   :  { %862 = vmatpush.msrb.mxu1 %v2782_v37 }
  0x87   :  { %863 = vmatpush.msrb.mxu1 %v2806_v41 }
  0xb3   :  { %v2709_v23 = vpop.f32.mrf.mxu0  ;;  %v2711_v24 = vpop.f32.mrf.mxu1 }
  0xb8   :  { %v2768_v34 = vpop.f32.mrf.mxu2  ;;  %v2770_v35 = vpop.f32.mrf.mxu3 }
  0xbb   :  { %v321_v43 = vpop.f32.mrf.mxu0  ;;  %v334_v44 = vpop.f32.mrf.mxu1 }
  0xbc   :  { %v2830_v43 = vld [vmem:[%s3144_s7 + $0x190] sm:$0xff]  ;;  %v2839_v44 = vld [vmem:[%s3144_s7 + $0x108] sm:$0xff] }
  0xbd   :  { %3160 = vst [vmem:[#allocation9_spill] sm:$0xff] %v2830_v43  ;;  %816 = vmatpush.msra.mxu3 %v2830_v43  ;;  %797 = vmatpush.msra.mxu2 %v2839_v44 }
  0xbe   :  { %3161 = vst [vmem:[#allocation10_spill] sm:$0xff] %v2839_v44 }
  0xbf   :  { %817 = vmatpush.msra.mxu3 %v2844_v45  ;;  %798 = vmatpush.msra.mxu2 %v2856_v39 }
  0xc0   :  { %v347_v47 = vpop.f32.mrf.mxu2  ;;  %v360_v43 = vpop.f32.mrf.mxu3 }
  0xc1   :  { %818 = vmatpush.msra.mxu3 %v2861_v42  ;;  %868 = vmatpush.msrb.mxu2 %v2515_v54  ;;  %v585_v54 = vperm.slane %v581_v46, 2 }
  0xc3   :  { %888 = vmatpush.msrb.mxu3 %v2520_v55  ;;  %869 = vmatpush.msrb.mxu2 %v2537_v58  ;;  %v586_v55 = vperm.slane %v581_v46, 3  ;;  %v3169_v46 = vld [vmem:[#allocation11_spill] sm:$0xff] }
  0xc4   :  { %v538_v43 = vpop.f32.mrf.mxu0  ;;  %v551_v47 = vpop.f32.mrf.mxu1  ;;  %v3167_v37 = vld [vmem:[#allocation9_spill] sm:$0xff] }
  0xc5   :  { %v539_v45 = vadd.f32 %v538_v43, %v2709_v23  ;;  %v552_v44 = vadd.f32 %v551_v47, %v2711_v24  ;;  %889 = vmatpush.msrb.mxu3 %v2544_v59  ;;  %870 = vmatpush.msrb.mxu2 %v2561_v62 }
  0xc7   :  { %v2875_v50 = vadd.f32 %v583_v48, %v539_v45  ;;  %v2877_v51 = vadd.f32 %v584_v49, %v552_v44  ;;  %890 = vmatpush.msrb.mxu3 %v2566_v63  ;;  %871 = vmatpush.msrb.mxu2 %v2573_v0  ;;  %v3168_v44 = vld [vmem:[#allocation10_spill] sm:$0xff] }
  0xc9   :  { %v599_v52 = vand.u32 2147483647, %v2875_v50  ;;  %v600_v53 = vand.u32 2147483647, %v2877_v51  ;;  %891 = vmatpush.msrb.mxu3 %v2578_v1  ;;  %872 = vmatpush.msrb.mxu2 %v2611_v6  ;;  %v596_v45 = vmax.f32 %v2877_v51, 0.0 }
  0xcb   :  { %v603_v56 = vsub.f32 0.0, %v599_v52  ;;  %v604_v57 = vsub.f32 0.0, %v600_v53  ;;  %v564_v58 = vpop.f32.mrf.mxu2  ;;  %v577_v59 = vpop.f32.mrf.mxu3  ;;  %892 = vmatpush.msrb.mxu3 %v2618_v7  ;;  %873 = vmatpush.msrb.mxu2 %v2635_v10 }
  0xcc   :  { %v565_v60 = vadd.f32 %v564_v58, %v2768_v34  ;;  %v578_v61 = vadd.f32 %v577_v59, %v2770_v35  ;;  %v540_v62 = vpop.f32.mrf.mxu0  ;;  %v553_v63 = vpop.f32.mrf.mxu1 }
  0xcd   :  { %v607_v2 = vmul.f32 1.442695, %v603_v56  ;;  %v609_v3 = vmul.f32 1.442695, %v604_v57  ;;  %893 = vmatpush.msrb.mxu3 %v2642_v11  ;;  %874 = vmatpush.msrb.mxu2 %v2659_v14 }
  0xce   :  { %v2897_v23 = vadd.f32 %v585_v54, %v565_v60  ;;  %v2899_v0 = vadd.f32 %v586_v55, %v578_v61 }
  0xcf   :  { %1951 = vpow2.f32 %v607_v2  ;;  %894 = vmatpush.msrb.mxu3 %v2666_v15  ;;  %875 = vmatpush.msrb.mxu2 %v2683_v18  ;;  %v3163_v18 = vld [vmem:[#allocation5_spill] sm:$0xff] }
  0xd0   :  { %1953 = vpow2.f32 %v609_v3  ;;  %v601_v1 = vand.u32 2147483647, %v2897_v23  ;;  %v602_v4 = vand.u32 2147483647, %v2899_v0  ;;  %v597_v59 = vmax.f32 %v2897_v23, 0.0 }
  0xd1   :  { %895 = vmatpush.msrb.mxu3 %v2690_v19  ;;  %876 = vmatpush.msrb.mxu2 %v2707_v22  ;;  %v598_v63 = vmax.f32 %v2899_v0, 0.0 }
  0xd2   :  { %v605_v5 = vsub.f32 0.0, %v601_v1  ;;  %v606_v6 = vsub.f32 0.0, %v602_v4 }
  0xd3   :  { %v566_v7 = vpop.f32.mrf.mxu2  ;;  %v579_v8 = vpop.f32.mrf.mxu3  ;;  %896 = vmatpush.msrb.mxu3 %v2718_v25  ;;  %877 = vmatpush.msrb.mxu2 %v2735_v28 }
  0xd4   :  { %v611_v9 = vmul.f32 1.442695, %v605_v5  ;;  %v613_v11 = vmul.f32 1.442695, %v606_v6 }
  0xd5   :  { %v1952_v10 = vpop.eup %1951  ;;  %897 = vmatpush.msrb.mxu3 %v2742_v29  ;;  %878 = vmatpush.msrb.mxu2 %v2759_v32  ;;  %v595_v29 = vmax.f32 %v2875_v50, 0.0 }
  0xd6   :  { %v1954_v12 = vpop.eup %1953  ;;  %v615_v13 = vadd.f32 1.0, %v1952_v10  ;;  %1955 = vpow2.f32 %v611_v9  ;;  %v618_v14 = vmul.f32 -0.5, %v1952_v10  ;;  %v621_v20 = vand.u32 2147483647, %v1952_v10 }
  0xd7   :  { %v624_v15 = vadd.f32 1.0, %v1954_v12  ;;  %1957 = vpow2.f32 %v613_v11  ;;  %v627_v16 = vmul.f32 -0.5, %v1954_v12  ;;  %898 = vmatpush.msrb.mxu3 %v2766_v33  ;;  %879 = vmatpush.msrb.mxu2 %v2787_v38  ;;  %v630_v24 = vand.u32 2147483647, %v1954_v12 }
  0xd8   :  { %1959 = vlog2.f32 %v615_v13  ;;  %v619_v17 = vadd.f32 1.0, %v618_v14  ;;  %vm622_vm2 = vcmp.lt.f32.partialorder %v621_v20, 0.0004427343  ;;  %v737_v20 = vld [vmem:[%s3145_s8 + $0x50] sm:$0xff] }
  0xd9   :  { %1961 = vlog2.f32 %v624_v15  ;;  %899 = vmatpush.msrb.mxu3 %v3163_v18  ;;  %v628_v21 = vadd.f32 1.0, %v627_v16  ;;  %880 = vmatpush.msrb.mxu2 %v3164_v26  ;;  %vm631_vm3 = vcmp.lt.f32.partialorder %v630_v24, 0.0004427343  ;;  %v741_v16 = vld [vmem:[%s3145_s8 + $0x70] sm:$0xff]  ;;  %v739_v18 = vld [vmem:[%s3145_s8 + $0x60] sm:$0xff]  ;;  %v736_v26 = vld [vmem:[%s3145_s8 + $0x48] sm:$0xff] }
  0xda   :  { %v620_v34 = vmul.f32 %v1952_v10, %v619_v17  ;;  %v742_v17 = vld [vmem:[%s3145_s8 + $0x78] sm:$0xff] }
  0xdb   :  { %900 = vmatpush.msrb.mxu3 %v3165_v27  ;;  %881 = vmatpush.msrb.mxu2 %v3166_v36  ;;  %v629_v40 = vmul.f32 %v1954_v12, %v628_v21  ;;  %v738_v21 = vld [vmem:[%s3145_s8 + $0x58] sm:$0xff]  ;;  %v733_v27 = vld [vmem:[%s3145_s8 + $0x30] sm:$0xff]  ;;  %v728_v36 = vld [vmem:[%s3145_s8 + $0x8] sm:$0xff] }
  0xdc   :  { %v1956_v19 = vpop.eup %1955 }
  0xdd   :  { %v1958_v22 = vpop.eup %1957  ;;  %v633_v25 = vadd.f32 1.0, %v1956_v19  ;;  %v636_v30 = vmul.f32 -0.5, %v1956_v19  ;;  %901 = vmatpush.msrb.mxu3 %v3167_v37  ;;  %882 = vmatpush.msrb.mxu2 %v3168_v44  ;;  %v639_v52 = vand.u32 2147483647, %v1956_v19 }
  0xde   :  { %v1960_v28 = vpop.eup %1959  ;;  %v642_v31 = vadd.f32 1.0, %v1958_v22  ;;  %v645_v35 = vmul.f32 -0.5, %v1958_v22  ;;  %v648_v54 = vand.u32 2147483647, %v1958_v22 }
  0xdf   :  { %v1962_v32 = vpop.eup %1961  ;;  %v617_v33 = vmul.f32 0.6931472, %v1960_v28  ;;  %1963 = vlog2.f32 %v633_v25  ;;  %902 = vmatpush.msrb.mxu3 %v3169_v46  ;;  %v637_v43 = vadd.f32 1.0, %v636_v30  ;;  %883 = vmatpush.msrb.mxu2 %v2856_v39  ;;  %vm640_vm4 = vcmp.lt.f32.partialorder %v639_v52, 0.0004427343  ;;  %v735_v25 = vld [vmem:[%s3145_s8 + $0x40] sm:$0xff] }
  0xe0   :  { %v626_v38 = vmul.f32 0.6931472, %v1962_v32  ;;  %1965 = vlog2.f32 %v642_v31  ;;  %v646_v53 = vadd.f32 1.0, %v645_v35  ;;  %vm649_vm5 = vcmp.lt.f32.partialorder %v648_v54, 0.0004427343  ;;  %v731_v30 = vld [vmem:[%s3145_s8 + $0x20] sm:$0xff] }
  0xe1   :  { %v623_v41 = vsel %vm622_vm2, %v620_v34, %v617_v33  ;;  %903 = vmatpush.msrb.mxu3 %v2861_v42  ;;  %v638_v58 = vmul.f32 %v1956_v19, %v637_v43  ;;  %v740_v19 = vld [vmem:[%s3145_s8 + $0x68] sm:$0xff]  ;;  %v729_v32 = vld [vmem:[%s3145_s8 + $0x10] sm:$0xff]  ;;  %v730_v33 = vld [vmem:[%s3145_s8 + $0x18] sm:$0xff] }
  0xe2   :  { %v651_v48 = vadd.f32 %v623_v41, %v595_v29  ;;  %v632_v49 = vsel %vm631_vm3, %v629_v40, %v626_v38  ;;  %v647_v61 = vmul.f32 %v1958_v22, %v646_v53  ;;  %v734_v29 = vld [vmem:[%s3145_s8 + $0x38] sm:$0xff]  ;;  %v732_v31 = vld [vmem:[%s3145_s8 + $0x28] sm:$0xff]  ;;  %v727_v35 = vld [vmem:[%s3145_s8] sm:$0xff] }
  0xe3   :  { %v652_v47 = vadd.f32 %v632_v49, %v596_v45 }
  0xe4   :  { %1967 = vtanh.f32 %v651_v48 }
  0xe5   :  { %v1964_v55 = vpop.eup %1963  ;;  %1969 = vtanh.f32 %v652_v47 }
  0xe6   :  { %v1966_v56 = vpop.eup %1965  ;;  %v635_v57 = vmul.f32 0.6931472, %v1964_v55 }
  0xe7   :  { %v644_v60 = vmul.f32 0.6931472, %v1966_v56 }
  0xe8   :  { %v641_v62 = vsel %vm640_vm4, %v638_v58, %v635_v57  ;;  %v1924_v57 = vld [vmem:[%s3146_s9 + $0x38] sm:$0xff] }
  0xe9   :  { %v653_v2 = vadd.f32 %v641_v62, %v597_v59  ;;  %v650_v39 = vsel %vm649_vm5, %v647_v61, %v644_v60  ;;  %v1932_v58 = vld [vmem:[%s3146_s9 + $0x78] sm:$0xff]  ;;  %v1923_v62 = vld [vmem:[%s3146_s9 + $0x30] sm:$0xff] }
  0xea   :  { %v1968_v3 = vpop.eup %1967  ;;  %v654_v42 = vadd.f32 %v650_v39, %v598_v63  ;;  %v1940_v60 = vld [vmem:[%s3146_s9 + $0xb8] sm:$0xff]  ;;  %v1931_v63 = vld [vmem:[%s3146_s9 + $0x70] sm:$0xff] }
  0xeb   :  { %v1970_v1 = vpop.eup %1969  ;;  %v2946_v4 = vmul.f32 %v1968_v3, %v2875_v50  ;;  %1971 = vtanh.f32 %v653_v2  ;;  %v1948_v61 = vld [vmem:[%s3146_s9 + $0xf8] sm:$0xff]  ;;  %v1939_v2 = vld [vmem:[%s3146_s9 + $0xb0] sm:$0xff] }
  0xec   :  { %v2949_v5 = vmul.f32 %v1970_v1, %v2877_v51  ;;  %1973 = vtanh.f32 %v654_v42  ;;  %v1947_v39 = vld [vmem:[%s3146_s9 + $0xf0] sm:$0xff]  ;;  %v1922_v1 = vld [vmem:[%s3146_s9 + $0x28] sm:$0xff] }
  0xed   :  { %759 = vmatmul.f32.vlgmr.msra.gmra.mxu0 %v2946_v4  ;;  %v824_v50 = vmul.f32 %v2946_v4, %v2946_v4 }
  0xee   :  { %779 = vmatmul.f32.vlgmr.msra.gmra.mxu1 %v2949_v5  ;;  %v825_v51 = vmul.f32 %v2949_v5, %v2949_v5  ;;  %939 = vmatpush.msra.mxu0 %v739_v18 }
  0xef   :  { %959 = vmatpush.msra.mxu1 %v740_v19 }
  0xf0   :  { %940 = vmatpush.msra.mxu0 %v735_v25 }
  0xf1   :  { %v1972_v6 = vpop.eup %1971  ;;  %960 = vmatpush.msra.mxu1 %v736_v26 }
  0xf2   :  { %v1974_v7 = vpop.eup %1973  ;;  %v2954_v8 = vmul.f32 %v1972_v6, %v2897_v23  ;;  %941 = vmatpush.msra.mxu0 %v731_v30  ;;  %v1930_v6 = vld [vmem:[%s3146_s9 + $0x68] sm:$0xff] }
  0xf3   :  { %v2957_v9 = vmul.f32 %v1974_v7, %v2899_v0  ;;  %961 = vmatpush.msra.mxu1 %v732_v31  ;;  %v1921_v7 = vld [vmem:[%s3146_s9 + $0x20] sm:$0xff] }
  0xf4   :  { %799 = vmatmul.f32.vlgmr.msra.gmra.mxu2 %v2954_v8  ;;  %v826_v10 = vmul.f32 %v2954_v8, %v2954_v8  ;;  %942 = vmatpush.msra.mxu0 %v727_v35 }
  0xf5   :  { %819 = vmatmul.f32.vlgmr.msra.gmra.mxu3 %v2957_v9  ;;  %844 = vmatmul.f32.vlgmr.msrb.gmra.mxu0 %v824_v50  ;;  %v827_v23 = vmul.f32 %v2957_v9, %v2957_v9  ;;  %v1929_v50 = vld [vmem:[%s3146_s9 + $0x60] sm:$0xff] }
  0xf6   :  { %864 = vmatmul.f32.vlgmr.msrb.gmra.mxu1 %v825_v51  ;;  %979 = vmatpush.msra.mxu2 %v741_v16  ;;  %v1938_v51 = vld [vmem:[%s3146_s9 + $0xa8] sm:$0xff] }
  0xf7   :  { %999 = vmatpush.msra.mxu3 %v742_v17  ;;  %962 = vmatpush.msra.mxu1 %v728_v36 }
  0xf8   :  { %980 = vmatpush.msra.mxu2 %v737_v20  ;;  %1024 = vmatpush.msrb.mxu0 %v739_v18  ;;  %v1926_v18 = vld [vmem:[%s3146_s9 + $0x48] sm:$0xff] }
  0xf9   :  { %1000 = vmatpush.msra.mxu3 %v738_v21  ;;  %1044 = vmatpush.msrb.mxu1 %v740_v19  ;;  %v1935_v19 = vld [vmem:[%s3146_s9 + $0x90] sm:$0xff] }
  0xfa   :  { %981 = vmatpush.msra.mxu2 %v733_v27  ;;  %1025 = vmatpush.msrb.mxu0 %v735_v25  ;;  %v1942_v25 = vld [vmem:[%s3146_s9 + $0xc8] sm:$0xff] }
  0xfb   :  { %1001 = vmatpush.msra.mxu3 %v734_v29  ;;  %1045 = vmatpush.msrb.mxu1 %v736_v26  ;;  %v1933_v26 = vld [vmem:[%s3146_s9 + $0x80] sm:$0xff] }
  0xfc   :  { %884 = vmatmul.f32.vlgmr.msrb.gmra.mxu2 %v826_v10  ;;  %1026 = vmatpush.msrb.mxu0 %v731_v30  ;;  %v1946_v10 = vld [vmem:[%s3146_s9 + $0xe8] sm:$0xff]  ;;  %v1100_v30 = vld [vmem:[%s3142_s5] sm:$0xf] }
  0xfd   :  { %904 = vmatmul.f32.vlgmr.msrb.gmra.mxu3 %v827_v23  ;;  %982 = vmatpush.msra.mxu2 %v729_v32  ;;  %v1920_v23 = vld [vmem:[%s3146_s9 + $0x18] sm:$0xff] }
  0xfe   :  { %1002 = vmatpush.msra.mxu3 %v730_v33  ;;  %1046 = vmatpush.msrb.mxu1 %v732_v31  ;;  %v1114_v31 = vld [vmem:[%s3143_s6] sm:$0xf] }
  0xff   :  { %1064 = vmatpush.msrb.mxu2 %v741_v16  ;;  %1027 = vmatpush.msrb.mxu0 %v727_v35  ;;  %v1944_v16 = vld [vmem:[%s3146_s9 + $0xd8] sm:$0xff] }
 0x100   :  { %1084 = vmatpush.msrb.mxu3 %v742_v17  ;;  %1047 = vmatpush.msrb.mxu1 %v728_v36  ;;  %v1918_v17 = vld [vmem:[%s3146_s9 + $0x8] sm:$0xff]  ;;  %v1102_v36 = vperm.slane %v1100_v30, 0 }
 0x101   :  { %1065 = vmatpush.msrb.mxu2 %v737_v20  ;;  %v1943_v20 = vld [vmem:[%s3146_s9 + $0xd0] sm:$0xff] }
 0x102   :  { %1085 = vmatpush.msrb.mxu3 %v738_v21  ;;  %v1917_v21 = vld [vmem:[%s3146_s9] sm:$0xff] }
 0x103   :  { %1066 = vmatpush.msrb.mxu2 %v733_v27  ;;  %v1941_v27 = vld [vmem:[%s3146_s9 + $0xc0] sm:$0xff] }
 0x104   :  { %1086 = vmatpush.msrb.mxu3 %v734_v29 }
 0x105   :  { %1067 = vmatpush.msrb.mxu2 %v729_v32 }
 0x106   :  { %1087 = vmatpush.msrb.mxu3 %v730_v33 }
 0x16a   :  { %v760_v0 = vpop.f32.mrf.mxu0 }
 0x16b   :  { %v780_v11 = vpop.f32.mrf.mxu1 }
 0x16c   :  { %v781_v12 = vadd.f32 %v780_v11, %v760_v0  ;;  %v1928_v0 = vld [vmem:[%s3146_s9 + $0x58] sm:$0xff]  ;;  %v1937_v11 = vld [vmem:[%s3146_s9 + $0xa0] sm:$0xff] }
 0x172   :  { %v845_v22 = vpop.f32.mrf.mxu0 }
 0x173   :  { %v865_v24 = vpop.f32.mrf.mxu1 }
 0x174   :  { %v866_v34 = vadd.f32 %v865_v24, %v845_v22  ;;  %v1925_v22 = vld [vmem:[%s3146_s9 + $0x40] sm:$0xff]  ;;  %v1934_v24 = vld [vmem:[%s3146_s9 + $0x88] sm:$0xff] }
 0x177   :  { %v800_v13 = vpop.f32.mrf.mxu2 }
 0x178   :  { %v801_v14 = vadd.f32 %v800_v13, %v781_v12  ;;  %v820_v15 = vpop.f32.mrf.mxu3  ;;  %v1945_v12 = vld [vmem:[%s3146_s9 + $0xe0] sm:$0xff]  ;;  %v1919_v13 = vld [vmem:[%s3146_s9 + $0x10] sm:$0xff] }
 0x17a   :  { %v821_v28 = vadd.f32 %v820_v15, %v801_v14  ;;  %v1927_v14 = vld [vmem:[%s3146_s9 + $0x50] sm:$0xff]  ;;  %v1936_v15 = vld [vmem:[%s3146_s9 + $0x98] sm:$0xff]  ;;  %s2003_s9 = smov [#allocation2]  }
 0x17b   :  { %s1450_s29 = sshll.u32 %s2003_s9, 4  ;;  %s1451_s29 = int_to_ptr.vmem [resolvable:$true] %s1450_s29 }
 0x17c   :  { %v823_v38 = vmul.f32 0.0625, %v821_v28 }
 0x17e   :  { %v909_v44 = vmul.f32 %v823_v38, %v823_v38  ;;  %v1007_v3 = vsub.f32 0.0, %v823_v38 }
 0x17f   :  { %v885_v37 = vpop.f32.mrf.mxu2 }
 0x180   :  { %v886_v40 = vadd.f32 %v885_v37, %v866_v34  ;;  %v905_v41 = vpop.f32.mrf.mxu3  ;;  %v1103_v37 = vperm.slane %v1100_v30, 1 }
 0x182   :  { %v906_v45 = vadd.f32 %v905_v41, %v886_v40 }
 0x184   :  { %v908_v46 = vmul.f32 0.0625, %v906_v45  ;;  %v1116_v45 = vperm.slane %v1114_v31, 0 }
 0x186   :  { %v910_v48 = vsub.f32 %v908_v46, %v909_v44  ;;  %v1117_v46 = vperm.slane %v1114_v31, 1 }
 0x188   :  { %v911_v49 = vmax.f32 %v910_v48, 0.0 }
 0x18a   :  { %v912_v43 = vadd.f32 1e-05, %v911_v49 }
 0x18c   :  { %1975 = vrsqrt.f32 %v912_v43  ;;  %vm919_vm7 = vweird.f32 %v912_v43 }
 0x192   :  { %v1976_v47 = vpop.eup %1975 }
 0x193   :  { %v914_v52 = vmul.f32 %v1976_v47, %v912_v43  ;;  %vm920_vm6 = vweird.f32 %v1976_v47 }
 0x194   :  { %vm921_vm9 = vmor %vm919_vm7, %vm920_vm6 }
 0x195   :  { %v915_v53 = vmul.f32 %v1976_v47, %v914_v52 }
 0x197   :  { %v916_v54 = vmul.f32 0.5, %v915_v53  ;;  %v1104_v53 = vperm.slane %v1100_v30, 2 }
 0x199   :  { %v917_v55 = vsub.f32 1.5, %v916_v54 }
 0x19b   :  { %v918_v56 = vmul.f32 %v1976_v47, %v917_v55 }
 0x19d   :  { %v922_v59 = vsel %vm921_vm9, %v1976_v47, %v918_v56 }
 0x19e   :  { %1717 = vmatmul.msk.f32.vlgmr.msra.gmra.mxu0 %vm923_vm8, %v922_v59  ;;  %1718 = vmatmul.msk.f32.vlgmr.msra.gmra.mxu1 %vm923_vm8, %v922_v59  ;;  %v1008_v42 = vmul.f32 %v1007_v3, %v922_v59 }
 0x19f   :  { %1719 = vmatmul.msk.f32.vlgmr.msra.gmra.mxu2 %vm923_vm8, %v922_v59  ;;  %1720 = vmatmul.msk.f32.vlgmr.msra.gmra.mxu3 %vm923_vm8, %v922_v59  ;;  %v1118_v59 = vperm.slane %v1114_v31, 2 }
 0x1a0   :  { %1392 = vmatpush.bf16.msra.mxu0 %v1924_v57  ;;  %1405 = vmatpush.bf16.msra.mxu1 %v1932_v58 }
 0x1a1   :  { %1418 = vmatpush.bf16.msra.mxu2 %v1940_v60  ;;  %1431 = vmatpush.bf16.msra.mxu3 %v1948_v61  ;;  %v1119_v61 = vperm.slane %v1114_v31, 3 }
 0x1a4   :  { %1393 = vmatpush.bf16.msra.mxu0 %v1923_v62  ;;  %1406 = vmatpush.bf16.msra.mxu1 %v1931_v63 }
 0x1a5   :  { %1419 = vmatpush.bf16.msra.mxu2 %v1939_v2  ;;  %1432 = vmatpush.bf16.msra.mxu3 %v1947_v39 }
 0x1a6   :  { %1721 = vmatmul.msk.f32.vlgmr.msrb.gmra.mxu0 %vm923_vm8, %v1008_v42  ;;  %1722 = vmatmul.msk.f32.vlgmr.msrb.gmra.mxu1 %vm923_vm8, %v1008_v42 }
 0x1a7   :  { %1723 = vmatmul.msk.f32.vlgmr.msrb.gmra.mxu2 %vm923_vm8, %v1008_v42  ;;  %1724 = vmatmul.msk.f32.vlgmr.msrb.gmra.mxu3 %vm923_vm8, %v1008_v42 }
 0x1a8   :  { %1394 = vmatpush.bf16.msra.mxu0 %v1922_v1  ;;  %1407 = vmatpush.bf16.msra.mxu1 %v1930_v6  ;;  %v1950_v1 = vld [vmem:[%s3147_s10] ss:$0 sm:$0xff] }
 0x1a9   :  { %1420 = vmatpush.bf16.msra.mxu2 %v1938_v51  ;;  %1433 = vmatpush.bf16.msra.mxu3 %v1946_v10 }
 0x1ac   :  { %1395 = vmatpush.bf16.msra.mxu0 %v1921_v7  ;;  %1408 = vmatpush.bf16.msra.mxu1 %v1929_v50 }
 0x1ad   :  { %1421 = vmatpush.bf16.msra.mxu2 %v1937_v11  ;;  %1434 = vmatpush.bf16.msra.mxu3 %v1945_v12 }
 0x1b0   :  { %1396 = vmatpush.bf16.msra.mxu0 %v1920_v23  ;;  %1409 = vmatpush.bf16.msra.mxu1 %v1928_v0 }
 0x1b1   :  { %1422 = vmatpush.bf16.msra.mxu2 %v1936_v15  ;;  %1435 = vmatpush.bf16.msra.mxu3 %v1944_v16 }
 0x1b4   :  { %1397 = vmatpush.bf16.msra.mxu0 %v1919_v13  ;;  %1410 = vmatpush.bf16.msra.mxu1 %v1927_v14 }
 0x1b5   :  { %1423 = vmatpush.bf16.msra.mxu2 %v1935_v19  ;;  %1436 = vmatpush.bf16.msra.mxu3 %v1943_v20 }
 0x1b8   :  { %1398 = vmatpush.bf16.msra.mxu0 %v1918_v17  ;;  %1411 = vmatpush.bf16.msra.mxu1 %v1926_v18 }
 0x1b9   :  { %1424 = vmatpush.bf16.msra.mxu2 %v1934_v24  ;;  %1437 = vmatpush.bf16.msra.mxu3 %v1942_v25 }
 0x1bc   :  { %1399 = vmatpush.bf16.msra.mxu0 %v1917_v21  ;;  %1412 = vmatpush.bf16.msra.mxu1 %v1925_v22 }
 0x1bd   :  { %1425 = vmatpush.bf16.msra.mxu2 %v1933_v26  ;;  %1438 = vmatpush.bf16.msra.mxu3 %v1941_v27 }
 0x21b   :  { %v944_v28 = vpop.f32.mrf.mxu0  ;;  %v964_v29 = vpop.f32.mrf.mxu1 }
 0x21c   :  { %v1092_v32 = vmul.f32 %v944_v28, %v2946_v4  ;;  %v1093_v33 = vmul.f32 %v964_v29, %v2949_v5  ;;  %v1105_v5 = vperm.slane %v1100_v30, 3 }
 0x222   :  { %v984_v34 = vpop.f32.mrf.mxu2  ;;  %v1004_v35 = vpop.f32.mrf.mxu3 }
 0x223   :  { %v1029_v38 = vpop.f32.mrf.mxu0  ;;  %v1049_v40 = vpop.f32.mrf.mxu1  ;;  %v1094_v52 = vmul.f32 %v984_v34, %v2954_v8  ;;  %v1095_v4 = vmul.f32 %v1004_v35, %v2957_v9 }
 0x224   :  { %v1096_v41 = vadd.f32 %v1092_v32, %v1029_v38  ;;  %v1097_v44 = vadd.f32 %v1093_v33, %v1049_v40 }
 0x226   :  { %v1110_v48 = vmul.f32 %v1102_v36, %v1096_v41  ;;  %v1111_v49 = vmul.f32 %v1103_v37, %v1097_v44 }
 0x228   :  { %v1124_v43 = vadd.f32 %v1116_v45, %v1110_v48  ;;  %v1125_v47 = vadd.f32 %v1117_v46, %v1111_v49 }
 0x22a   :  { %v1128_v54 = vpack.c.bf16 %v1124_v43, %v1124_v43  ;;  %v1129_v55 = vpack.c.bf16 %v1125_v47, %v1125_v47  ;;  %v1069_v56 = vpop.f32.mrf.mxu2  ;;  %v1089_v57 = vpop.f32.mrf.mxu3 }
 0x22b   :  { %v1098_v58 = vadd.f32 %v1094_v52, %v1069_v56  ;;  %v1099_v60 = vadd.f32 %v1095_v4, %v1089_v57 }
 0x22c   :  { %1400 = vmatmul.bf16.vlgmr.msra.gmra.mxu0 %v1128_v54  ;;  %1413 = vmatmul.bf16.vlgmr.msra.gmra.mxu1 %v1129_v55 }
 0x22d   :  { %v1112_v62 = vmul.f32 %v1104_v53, %v1098_v58  ;;  %v1113_v63 = vmul.f32 %v1105_v5, %v1099_v60 }
 0x22f   :  { %v1126_v2 = vadd.f32 %v1118_v59, %v1112_v62  ;;  %v1127_v39 = vadd.f32 %v1119_v61, %v1113_v63 }
 0x231   :  { %v1130_v3 = vpack.c.bf16 %v1126_v2, %v1126_v2  ;;  %v1131_v8 = vpack.c.bf16 %v1127_v39, %v1127_v39 }
 0x233   :  { %1426 = vmatmul.bf16.vlgmr.msra.gmra.mxu2 %v1130_v3  ;;  %1439 = vmatmul.bf16.vlgmr.msra.gmra.mxu3 %v1131_v8 }
 0x2a9   :  { %v1401_v9 = vpop.f32.mrf.mxu0  ;;  %v1414_v42 = vpop.f32.mrf.mxu1 }
 0x2aa   :  { %v1402_v6 = vadd.f32 %v1950_v1, %v1401_v9 }
 0x2ac   :  { %v1415_v51 = vadd.f32 %v1414_v42, %v1402_v6 }
 0x2b1   :  { %v1403_v7 = vpop.f32.mrf.mxu0  ;;  %v1416_v50 = vpop.f32.mrf.mxu1 }
 0x2b6   :  { %v1427_v10 = vpop.f32.mrf.mxu2  ;;  %v1440_v23 = vpop.f32.mrf.mxu3 }
 0x2b7   :  { %v1428_v0 = vadd.f32 %v1427_v10, %v1415_v51 }
 0x2b9   :  { %v1441_v11 = vadd.f32 %v1440_v23, %v1428_v0 }
 0x2bb   :  { %1444 = vst [vmem:[#allocation2] sm:$0x3] %v1441_v11 }
 0x2bc   :  { %1455 = dma.vmem_to_hbm [thread:$0]  %s1451_s29, 32, %s1453_s4, [#allocation3]  }
 0x2be   :  { %v1429_v12 = vpop.f32.mrf.mxu2  ;;  %v1442_v13 = vpop.f32.mrf.mxu3 }
 0x2bf   :  { %2001 = dma.done.wait [#allocation3], 32  }
 0x2c0   :  { %2002 = vsyncadd [#allocation3], 4294967264 }
 0x2c1   :  { %1460 = vsyncpa [#allocation3], 1 }

</bundles_post_ra>
